<compile_context>
chip_gen: v7x
topology: tpu7x:2x2x1
jax: 0.10.0
libtpu: 0.0.40
codegen_flags: <defaults>
</compile_context>

<pallas_src>
import functools
import math

import numpy as np
import jax
import jax.numpy as jnp
from jax.experimental import pallas as pl
from jax.experimental.pallas import tpu as pltpu


_VMEM_LIMIT = 32 * 1024 * 1024      # explicit scoped-VMEM cap (v5e default is 16 MiB)
_LANE_TILE = 65536                  # flattened-spatial tile for the 1x1-conv kernels
_PLANE_BUDGET = 4 * 1024 * 1024     # per-block byte budget for plane-batched resample


# ----------------------------------------------------------------------------
# Glue: interpolation / pooling matrices (plain numpy, built once per shape)
# ----------------------------------------------------------------------------
def bilinear_matrix(out_size, in_size, align_corners):
    W = np.zeros((out_size, in_size), dtype=np.float32)
    if in_size == 1:
        W[:, 0] = 1.0
        return jnp.asarray(W)
    for o in range(out_size):
        if align_corners:
            src = 0.0 if out_size == 1 else o * (in_size - 1) / (out_size - 1)
        else:
            src = (o + 0.5) * in_size / out_size - 0.5
            src = min(max(src, 0.0), float(in_size - 1))
        i0 = min(int(np.floor(src)), in_size - 1)
        i1 = min(i0 + 1, in_size - 1)
        f = src - i0
        W[o, i0] += 1.0 - f
        W[o, i1] += f
    return jnp.asarray(W)


def avgpool_matrix(out_size, in_size):
    W = np.zeros((out_size, in_size), dtype=np.float32)
    k = in_size // out_size
    for o in range(out_size):
        W[o, o * k:(o + 1) * k] = 1.0 / k
    return jnp.asarray(W)


def _plane_chunk(n_planes, per_plane_bytes, budget=_PLANE_BUDGET):
    """Largest divisor of n_planes whose block stays under the byte budget."""
    p = max(1, min(n_planes, budget // max(per_plane_bytes, 1)))
    while n_planes % p:
        p -= 1
    return p


# ----------------------------------------------------------------------------
# Pallas kernel 1: separable resample  out[p] = Wy @ x[p] @ Wx^T
# Several channel planes per grid step (static unroll) to amortize step
# overhead and issue larger DMAs.  dtype-agnostic: f32 for the exact resize /
# avg-pool, bf16 (f32 accumulate) for the decoder 2x upsamples.
# ----------------------------------------------------------------------------
def _resample_kernel(wy_ref, x_ref, wxt_ref, o_ref):
    for p in range(x_ref.shape[0]):                       # static unroll over planes
        t = jnp.dot(wy_ref[...], x_ref[p], preferred_element_type=jnp.float32)
        t = t.astype(wxt_ref.dtype)
        o = jnp.dot(t, wxt_ref[...], preferred_element_type=jnp.float32)
        o_ref[p] = o.astype(o_ref.dtype)


def resample(x_nchw, wy, wx, out_dtype=None):
    """x: (B, C, Hin, Win) -> (B, C, Hout, Wout), out = Wy @ x @ Wx^T per plane."""
    B, C, Hin, Win = x_nchw.shape
    Hout, Wout = wy.shape[0], wx.shape[0]
    out_dtype = x_nchw.dtype if out_dtype is None else out_dtype
    N = B * C
    per_plane = max(Hin * Win * np.dtype(x_nchw.dtype).itemsize,
                    Hout * Wout * np.dtype(out_dtype).itemsize)
    P = _plane_chunk(N, per_plane)

    x_flat = x_nchw.reshape(N, Hin, Win)                  # free reshape (contiguous)
    wy = wy.astype(x_nchw.dtype)
    wxt = wx.astype(x_nchw.dtype).T                       # (Win, Wout)

    out = pl.pallas_call(
        _resample_kernel,
        out_shape=jax.ShapeDtypeStruct((N, Hout, Wout), out_dtype),
        grid=(N // P,),
        in_specs=[
            pl.BlockSpec((Hout, Hin), lambda i: (0, 0)),
            pl.BlockSpec((P, Hin, Win), lambda i: (i, 0, 0)),
            pl.BlockSpec((Win, Wout), lambda i: (0, 0)),
        ],
        out_specs=pl.BlockSpec((P, Hout, Wout), lambda i: (i, 0, 0)),
        compiler_params=pltpu.CompilerParams(
            dimension_semantics=("parallel",),
            vmem_limit_bytes=_VMEM_LIMIT),
    )(wy, x_flat, wxt)
    return out.reshape(B, C, Hout, Wout)


# ----------------------------------------------------------------------------
# Pallas kernel 2: plain 1x1 conv (+ bias, optional LeakyReLU), flat spatial.
# Used once for the tiny encoder conv (3 -> C at 8x8).
# ----------------------------------------------------------------------------
def _conv1x1_kernel(w_ref, b_ref, x_ref, o_ref, *, slope):
    y = jnp.dot(w_ref[...], x_ref[0], preferred_element_type=jnp.float32)
    y = y + b_ref[...]
    if slope is not None:
        y = jnp.where(y >= 0, y, y * slope)
    o_ref[0] = y.astype(o_ref.dtype)


def conv1x1(x_nchw, w, b, slope=None, out_dtype=jnp.float32, max_tile=_LANE_TILE):
    B, Cin, H, Wsp = x_nchw.shape
    Cout = w.shape[0]
    HW = H * Wsp
    T = HW if HW <= max_tile else math.gcd(HW, max_tile)
    x_flat = x_nchw.reshape(B, Cin, HW)
    kernel = functools.partial(_conv1x1_kernel, slope=slope)
    out = pl.pallas_call(
        kernel,
        out_shape=jax.ShapeDtypeStruct((B, Cout, HW), out_dtype),
        grid=(B, HW // T),
        in_specs=[
            pl.BlockSpec((Cout, Cin), lambda bi, ti: (0, 0)),
            pl.BlockSpec((Cout, 1), lambda bi, ti: (0, 0)),
            pl.BlockSpec((1, Cin, T), lambda bi, ti: (bi, 0, ti)),
        ],
        out_specs=pl.BlockSpec((1, Cout, T), lambda bi, ti: (bi, 0, ti)),
        compiler_params=pltpu.CompilerParams(
            dimension_semantics=("parallel", "parallel"),
            vmem_limit_bytes=_VMEM_LIMIT),
    )(w, b.reshape(Cout, 1), x_flat)
    return out.reshape(B, Cout, H, Wsp)


# ----------------------------------------------------------------------------
# Pallas kernel 3: fused per-scale stage
#   feat = LeakyReLU(W_body @ x + b_body)          (f32 accumulate, bf16 store)
#   rgb  = W_rgb @ feat + b_rgb                    (f32 output)
# One load of x per tile feeds both matmuls (removes a full HBM re-read of
# feat at every scale).  At the last scale feat is not written back at all.
# ----------------------------------------------------------------------------
def _stage_kernel(wb_ref, bb_ref, wr_ref, br_ref, x_ref, *out_refs,
                  slope, emit_feat):
    x = x_ref[0]                                            # (Cin, T)
    f = jnp.dot(wb_ref[...], x, preferred_element_type=jnp.float32)
    f = f + bb_ref[...]
    f = jnp.where(f >= 0, f, f * slope)                     # LeakyReLU in f32
    fb = f.astype(wr_ref.dtype)                             # bf16 feat, reused by toRGB
    if emit_feat:
        feat_ref, rgb_ref = out_refs
        feat_ref[0] = fb.astype(feat_ref.dtype)
    else:
        (rgb_ref,) = out_refs
    r = jnp.dot(wr_ref[...], fb, preferred_element_type=jnp.float32)
    rgb_ref[0] = (r + br_ref[...]).astype(rgb_ref.dtype)


def fused_stage(x_nchw, w_body, b_body, w_rgb, b_rgb, *, slope,
                emit_feat=True, feat_dtype=jnp.bfloat16, max_tile=_LANE_TILE):
    B, Cin, H, Wsp = x_nchw.shape
    Cf = w_body.shape[0]
    HW = H * Wsp
    T = HW if HW <= max_tile else math.gcd(HW, max_tile)
    x_flat = x_nchw.reshape(B, Cin, HW)

    out_shape, out_specs = [], []
    if emit_feat:
        out_shape.append(jax.ShapeDtypeStruct((B, Cf, HW), feat_dtype))
        out_specs.append(pl.BlockSpec((1, Cf, T), lambda bi, ti: (bi, 0, ti)))
    out_shape.append(jax.ShapeDtypeStruct((B, 3, HW), jnp.float32))
    out_specs.append(pl.BlockSpec((1, 3, T), lambda bi, ti: (bi, 0, ti)))

    kernel = functools.partial(_stage_kernel, slope=slope, emit_feat=emit_feat)
    outs = pl.pallas_call(
        kernel,
        out_shape=tuple(out_shape),
        grid=(B, HW // T),
        in_specs=[
            pl.BlockSpec((Cf, Cin), lambda bi, ti: (0, 0)),
            pl.BlockSpec((Cf, 1), lambda bi, ti: (0, 0)),
            pl.BlockSpec((3, Cf), lambda bi, ti: (0, 0)),
            pl.BlockSpec((3, 1), lambda bi, ti: (0, 0)),
            pl.BlockSpec((1, Cin, T), lambda bi, ti: (bi, 0, ti)),
        ],
        out_specs=tuple(out_specs),
        compiler_params=pltpu.CompilerParams(
            dimension_semantics=("parallel", "parallel"),
            vmem_limit_bytes=_VMEM_LIMIT),
    )(w_body, b_body.reshape(Cf, 1), w_rgb, b_rgb.reshape(3, 1), x_flat)

    if emit_feat:
        feat, rgb = outs
        return feat.reshape(B, Cf, H, Wsp), rgb.reshape(B, 3, H, Wsp)
    rgb = outs[0]
    return None, rgb.reshape(B, 3, H, Wsp)


# ----------------------------------------------------------------------------
# GFPUpsampler (Pallas)
# ----------------------------------------------------------------------------
class GFPUpsamplerPallas:
    SIZES = (8, 16, 32, 64, 128, 256, 512)
    LRELU_SLOPE = 0.2

    def __init__(self, key, upscale=2, channel_multiplier=2, feat_channels=8):
        # upscale / channel_multiplier kept for signature parity with the
        # PyTorch module; the forward always produces 512x512 output.
        self.upscale = upscale
        self.channel_multiplier = channel_multiplier
        self.C = feat_channels

        keys = jax.random.split(key, 2 + 4 * len(self.SIZES))
        kit = iter(keys)

        def init_w(cout, cin):
            w = jax.random.normal(next(kit), (cout, cin), jnp.float32) / np.sqrt(cin)
            return w.astype(jnp.bfloat16)       # bf16 weights -> native MXU path

        C = self.C
        self.params = {
            "enc_w": init_w(C, 3),
            "enc_b": jnp.zeros((C,), jnp.float32),
            "body_w": {}, "body_b": {}, "rgb_w": {}, "rgb_b": {},
        }
        for s in self.SIZES:
            self.params["body_w"][s] = init_w(C, C)
            self.params["body_b"][s] = 0.01 * jax.random.normal(
                next(kit), (C,), jnp.float32)
            self.params["rgb_w"][s] = init_w(3, C)
            self.params["rgb_b"][s] = 0.01 * jax.random.normal(
                next(kit), (3,), jnp.float32)

        # Fixed resample matrices (independent of input H, W).
        self.pool_512_to_8 = avgpool_matrix(8, 512)
        self.up_mats = {s: bilinear_matrix(2 * s, s, align_corners=False)
                        for s in self.SIZES[:-1]}

        # jit the whole forward: one dispatch, all pallas_calls in one program.
        self._forward = jax.jit(self._forward_impl)

    def __call__(self, img, noise=None):
        """img: (b, 3, h, w) in [-1, 1] -> (image (b,3,512,512), 7 out_rgbs)."""
        return self._forward(img)

    def _forward_impl(self, img):
        B, Cimg, H, W = img.shape
        assert Cimg == 3

        # --- exact: F.interpolate(img, (512,512), bilinear, align_corners=True)
        # Kept in f32 so the "exact" claim holds; only the simplified decoder
        # below runs in bf16 (f32 accumulation).
        wy = bilinear_matrix(512, H, align_corners=True)
        wx = bilinear_matrix(512, W, align_corners=True)
        img512 = resample(img, wy, wx)                                      # f32

        # --- simplified GFPGANv1Clean (see TODO at top of file) -------------
        p = self.params
        pooled = resample(img512, self.pool_512_to_8, self.pool_512_to_8)   # (B,3,8,8)
        feat = conv1x1(pooled.astype(jnp.bfloat16), p["enc_w"], p["enc_b"],
                       slope=self.LRELU_SLOPE, out_dtype=jnp.bfloat16)      # (B,C,8,8)

        out_rgbs = []
        for s in self.SIZES:
            last = (s == 512)
            feat_s, rgb = fused_stage(
                feat, p["body_w"][s], p["body_b"][s],
                p["rgb_w"][s], p["rgb_b"][s],
                slope=self.LRELU_SLOPE, emit_feat=not last)
            out_rgbs.append(rgb)
            if not last:
                # bf16 separable 2x bilinear upsample (matrices are exact in bf16).
                # TODO(synk): fusing this upsample into the NEXT scale's body conv
                # (removing the feat_{2s} HBM round trip) needs halo-tiled manual
                # DMA; left as a follow-up optimization.
                feat = resample(feat_s, self.up_mats[s], self.up_mats[s],
                                out_dtype=jnp.bfloat16)

        image = out_rgbs[-1]
        return image, out_rgbs


# ----------------------------------------------------------------------------
# Pure-JAX reference (mirrors the kernel dtype policy exactly) for verification
# ----------------------------------------------------------------------------
def reference_forward(model, img):
    p = model.params
    slope = model.LRELU_SLOPE
    bf = jnp.bfloat16
    B, _, H, W = img.shape

    wy = bilinear_matrix(512, H, align_corners=True)
    wx = bilinear_matrix(512, W, align_corners=True)
    img512 = jnp.einsum("oy,bcyx,px->bcop", wy, img, wx)
    pool = model.pool_512_to_8
    pooled = jnp.einsum("oy,bcyx,px->bcop", pool, img512, pool)

    def conv(x, w, b, act):
        y = jnp.einsum("oc,bchw->bohw", w, x, preferred_element_type=jnp.float32)
        y = y + b[None, :, None, None]
        if act:
            y = jnp.where(y >= 0, y, y * slope)
        return y

    def up2x(x_bf, u):
        u_bf = u.astype(bf)
        t = jnp.einsum("oh,bchw->bcow", u_bf, x_bf,
                       preferred_element_type=jnp.float32).astype(bf)
        return jnp.einsum("bcow,wq->bcoq", t, u_bf.T,
                          preferred_element_type=jnp.float32).astype(bf)

    feat = conv(pooled.astype(bf), p["enc_w"], p["enc_b"], True).astype(bf)
    out_rgbs = []
    for s in model.SIZES:
        f = conv(feat, p["body_w"][s], p["body_b"][s], True).astype(bf)
        rgb = conv(f, p["rgb_w"][s], p["rgb_b"][s], False)
        out_rgbs.append(rgb)
        if s != 512:
            feat = up2x(f, model.up_mats[s])
    return out_rgbs[-1], out_rgbs


# ----------------------------------------------------------------------------
if __name__ == "__main__":
    key = jax.random.PRNGKey(0)
    k_img, k_par = jax.random.split(key)

    batch, height, width = 2, 16, 16
    img = jax.random.uniform(k_img, (batch, 3, height, width),
                             jnp.float32, minval=-1.0, maxval=1.0)

    model = GFPUpsamplerPallas(k_par, upscale=2, channel_multiplier=2)

    # 1) Verify the exact Pallas bilinear-resize kernel against a dense reference.
    wy = bilinear_matrix(512, height, align_corners=True)
    wx = bilinear_matrix(512, width, align_corners=True)
    img512 = resample(img, wy, wx)
    ref512 = jnp.einsum("oy,bcyx,px->bcop", wy, img, wx)
    np.testing.assert_allclose(np.asarray(img512), np.asarray(ref512),
                               rtol=1e-2, atol=1e-2)

    # 2) Full forward pass (jit-compiled, all Pallas kernels).
    image, out_rgbs = model(img)
    image = jax.block_until_ready(image)
    out_rgbs = [jax.block_until_ready(r) for r in out_rgbs]

    assert image.shape == (batch, 3, 512, 512)
    assert image.dtype == jnp.float32
    assert len(out_rgbs) == 7
    expected_sizes = (8, 16, 32, 64, 128, 256, 512)
    for r, s in zip(out_rgbs, expected_sizes):
        assert r.shape == (batch, 3, s, s), (r.shape, s)
        assert r.dtype == jnp.float32

    # 3) Verify the full forward against a pure-JAX reference with the same
    #    dtype policy (bf16 decoder, f32 accumulation).
    ref_image, ref_rgbs = reference_forward(model, img)
    np.testing.assert_allclose(np.asarray(image), np.asarray(ref_image),
                               rtol=3e-2, atol=3e-2)
    for a, b in zip(out_rgbs, ref_rgbs):
        np.testing.assert_allclose(np.asarray(a), np.asarray(b),
                                   rtol=3e-2, atol=3e-2)

    print("KERNEL_OK")
</pallas_src>

<mosaic_0001>
module attributes {stable_mosaic.version = 11 : i64} {
  func.func @_resample_kernel(%arg0: i32, %arg1: memref<512x16xf32, #tpu.memory_space<vmem>>, %arg2: memref<3x16x16xf32, #tpu.memory_space<vmem>>, %arg3: memref<16x512xf32, #tpu.memory_space<vmem>>, %arg4: memref<3x512x512xf32, #tpu.memory_space<vmem>>) attributes {dimension_semantics = [#tpu.dimension_semantics<parallel>], iteration_bounds = array<i64: 2>, scalar_prefetch = 0 : i64, scratch_operands = 0 : i64, tpu.core_type = #tpu.core_type<tc>, window_params = [{pipeline_mode = #tpu.pipeline_mode<synchronous>, transform_indices = @transform_0, window_bounds = array<i64: 512, 16>}, {transform_indices = @transform_1, window_bounds = array<i64: 3, 16, 16>}, {pipeline_mode = #tpu.pipeline_mode<synchronous>, transform_indices = @transform_2, window_bounds = array<i64: 16, 512>}, {transform_indices = @transform_3, window_bounds = array<i64: 3, 512, 512>}]} {
    %c0 = arith.constant 0 : index
    %c0_0 = arith.constant 0 : index
    %0 = vector.load %arg1[%c0, %c0_0] : memref<512x16xf32, #tpu.memory_space<vmem>>, vector<512x16xf32>
    %c0_1 = arith.constant 0 : index
    %c0_2 = arith.constant 0 : index
    %c0_3 = arith.constant 0 : index
    %1 = vector.load %arg2[%c0_1, %c0_2, %c0_3] : memref<3x16x16xf32, #tpu.memory_space<vmem>>, vector<1x16x16xf32>
    %2 = vector.shape_cast %1 : vector<1x16x16xf32> to vector<16x16xf32>
    %cst = arith.constant dense<0.000000e+00> : vector<512x16xf32>
    %3 = tpu.matmul %0, %2, %cst {dimension_numbers = #tpu.dot_dimension_numbers<[1], [0], [0], [1], [0, 0, 1, 1], [], []>} : vector<512x16xf32>, vector<16x16xf32>, vector<512x16xf32> -> vector<512x16xf32>
    %c0_4 = arith.constant 0 : index
    %c0_5 = arith.constant 0 : index
    %4 = vector.load %arg3[%c0_4, %c0_5] : memref<16x512xf32, #tpu.memory_space<vmem>>, vector<16x512xf32>
    %cst_6 = arith.constant dense<0.000000e+00> : vector<512x512xf32>
    %5 = tpu.matmul %3, %4, %cst_6 {dimension_numbers = #tpu.dot_dimension_numbers<[1], [0], [0], [1], [0, 0, 1, 1], [], []>} : vector<512x16xf32>, vector<16x512xf32>, vector<512x512xf32> -> vector<512x512xf32>
    %c0_7 = arith.constant 0 : index
    %c0_8 = arith.constant 0 : index
    %c0_9 = arith.constant 0 : index
    %6 = vector.load %arg4[%c0_7, %c0_8, %c0_9] : memref<3x512x512xf32, #tpu.memory_space<vmem>>, vector<1x512x512xf32>
    %7 = vector.shape_cast %6 : vector<1x512x512xf32> to vector<512x512xf32>
    %8 = vector.shape_cast %5 : vector<512x512xf32> to vector<1x512x512xf32>
    tpu.vector_store %arg4[%c0_7, %c0_8, %c0_9], %8 {strides = array<i32>} : memref<3x512x512xf32, #tpu.memory_space<vmem>>, vector<1x512x512xf32>,
    %c0_10 = arith.constant 0 : index
    %c0_11 = arith.constant 0 : index
    %9 = vector.load %arg1[%c0_10, %c0_11] : memref<512x16xf32, #tpu.memory_space<vmem>>, vector<512x16xf32>
    %c1 = arith.constant 1 : index
    %c0_12 = arith.constant 0 : index
    %c0_13 = arith.constant 0 : index
    %10 = vector.load %arg2[%c1, %c0_12, %c0_13] : memref<3x16x16xf32, #tpu.memory_space<vmem>>, vector<1x16x16xf32>
    %11 = vector.shape_cast %10 : vector<1x16x16xf32> to vector<16x16xf32>
    %cst_14 = arith.constant dense<0.000000e+00> : vector<512x16xf32>
    %12 = tpu.matmul %9, %11, %cst_14 {dimension_numbers = #tpu.dot_dimension_numbers<[1], [0], [0], [1], [0, 0, 1, 1], [], []>} : vector<512x16xf32>, vector<16x16xf32>, vector<512x16xf32> -> vector<512x16xf32>
    %c0_15 = arith.constant 0 : index
    %c0_16 = arith.constant 0 : index
    %13 = vector.load %arg3[%c0_15, %c0_16] : memref<16x512xf32, #tpu.memory_space<vmem>>, vector<16x512xf32>
    %cst_17 = arith.constant dense<0.000000e+00> : vector<512x512xf32>
    %14 = tpu.matmul %12, %13, %cst_17 {dimension_numbers = #tpu.dot_dimension_numbers<[1], [0], [0], [1], [0, 0, 1, 1], [], []>} : vector<512x16xf32>, vector<16x512xf32>, vector<512x512xf32> -> vector<512x512xf32>
    %c1_18 = arith.constant 1 : index
    %c0_19 = arith.constant 0 : index
    %c0_20 = arith.constant 0 : index
    %15 = vector.load %arg4[%c1_18, %c0_19, %c0_20] : memref<3x512x512xf32, #tpu.memory_space<vmem>>, vector<1x512x512xf32>
    %16 = vector.shape_cast %15 : vector<1x512x512xf32> to vector<512x512xf32>
    %17 = vector.shape_cast %14 : vector<512x512xf32> to vector<1x512x512xf32>
    tpu.vector_store %arg4[%c1_18, %c0_19, %c0_20], %17 {strides = array<i32>} : memref<3x512x512xf32, #tpu.memory_space<vmem>>, vector<1x512x512xf32>,
    %c0_21 = arith.constant 0 : index
    %c0_22 = arith.constant 0 : index
    %18 = vector.load %arg1[%c0_21, %c0_22] : memref<512x16xf32, #tpu.memory_space<vmem>>, vector<512x16xf32>
    %c2 = arith.constant 2 : index
    %c0_23 = arith.constant 0 : index
    %c0_24 = arith.constant 0 : index
    %19 = vector.load %arg2[%c2, %c0_23, %c0_24] : memref<3x16x16xf32, #tpu.memory_space<vmem>>, vector<1x16x16xf32>
    %20 = vector.shape_cast %19 : vector<1x16x16xf32> to vector<16x16xf32>
    %cst_25 = arith.constant dense<0.000000e+00> : vector<512x16xf32>
    %21 = tpu.matmul %18, %20, %cst_25 {dimension_numbers = #tpu.dot_dimension_numbers<[1], [0], [0], [1], [0, 0, 1, 1], [], []>} : vector<512x16xf32>, vector<16x16xf32>, vector<512x16xf32> -> vector<512x16xf32>
    %c0_26 = arith.constant 0 : index
    %c0_27 = arith.constant 0 : index
    %22 = vector.load %arg3[%c0_26, %c0_27] : memref<16x512xf32, #tpu.memory_space<vmem>>, vector<16x512xf32>
    %cst_28 = arith.constant dense<0.000000e+00> : vector<512x512xf32>
    %23 = tpu.matmul %21, %22, %cst_28 {dimension_numbers = #tpu.dot_dimension_numbers<[1], [0], [0], [1], [0, 0, 1, 1], [], []>} : vector<512x16xf32>, vector<16x512xf32>, vector<512x512xf32> -> vector<512x512xf32>
    %c2_29 = arith.constant 2 : index
    %c0_30 = arith.constant 0 : index
    %c0_31 = arith.constant 0 : index
    %24 = vector.load %arg4[%c2_29, %c0_30, %c0_31] : memref<3x512x512xf32, #tpu.memory_space<vmem>>, vector<1x512x512xf32>
    %25 = vector.shape_cast %24 : vector<1x512x512xf32> to vector<512x512xf32>
    %26 = vector.shape_cast %23 : vector<512x512xf32> to vector<1x512x512xf32>
    tpu.vector_store %arg4[%c2_29, %c0_30, %c0_31], %26 {strides = array<i32>} : memref<3x512x512xf32, #tpu.memory_space<vmem>>, vector<1x512x512xf32>,
    return
  }
  func.func @transform_0(%arg0: i32) -> (i32, i32) {
    %c0_i32 = arith.constant 0 : i32
    %c0_i32_0 = arith.constant 0 : i32
    %c0_i32_1 = arith.constant 0 : i32
    return %c0_i32, %c0_i32_0 : i32, i32
  }
  func.func @transform_1(%arg0: i32) -> (i32, i32, i32) {
    %c0_i32 = arith.constant 0 : i32
    %c0_i32_0 = arith.constant 0 : i32
    %c0_i32_1 = arith.constant 0 : i32
    return %arg0, %c0_i32, %c0_i32_0 : i32, i32, i32
  }
  func.func @transform_2(%arg0: i32) -> (i32, i32) {
    %c0_i32 = arith.constant 0 : i32
    %c0_i32_0 = arith.constant 0 : i32
    %c0_i32_1 = arith.constant 0 : i32
    return %c0_i32, %c0_i32_0 : i32, i32
  }
  func.func @transform_3(%arg0: i32) -> (i32, i32, i32) {
    %c0_i32 = arith.constant 0 : i32
    %c0_i32_0 = arith.constant 0 : i32
    %c0_i32_1 = arith.constant 0 : i32
    return %arg0, %c0_i32, %c0_i32_0 : i32, i32, i32
  }
}

</mosaic_0001>

<bundles_post_ra>
// kernel: tpu_custom_call.1
= control target key start
LH: loop header
LB: loop body
LE: loop exit
PB: predicated region body
PF: predicated region fallthrough
CT: control target
= control target key end

     0   :  { %8 = vsyncpa [#allocation3], 0  ;;  %s11243_s0 = inlined_call_operand.vmem [shape: f32[512,16], index: 0, kind: input, shape index: {}]   ;;  %s11244_s1 = inlined_call_operand.hbm [shape: f32[6,16,16], index: 1, kind: input, shape index: {}]   ;;  %s11245_s2 = inlined_call_operand.hbm [shape: f32[16,512], index: 2, kind: input, shape index: {}]   ;;  %s11246_s3 = inlined_call_operand.hbm [shape: f32[6,512,512], index: 3, kind: output, shape index: {}]  }
   0x1   :  { %10 = vsyncpa [#allocation3 + $0x1], 0 }
   0x2   :  { %11 = vsyncpa [#allocation6], 0 }
   0x3   :  { %12 = vsyncpa [#allocation4], 0 }
   0x4   :  { %14 = vsyncpa [#allocation4 + $0x1], 0  ;;  %s8174_s12 = smov 0   ;;  %s8176_s13 = smov 0  }
   0x5   :  { %s8178_s14 = smov 0   ;;  %s8180_s15 = smov 0  }
   0x6 LB: > { %s8195_s16 = sadd.s32 4294967295, %s8142_s15   ;;  %s6301_s17 = sadd.s32 4294967294, %s8142_s15   ;;  %s8142_s15 = sphi %s8180_s15, %s11266_s15   ;;  %s8138_s14 = sphi %s8178_s14, %s11265_s14   ;;  %s8134_s13 = sphi %s8176_s13, %s11264_s13   ;;  %s8130_s12 = sphi %s8174_s12, %s11263_s12  }
   0x7   : > { %p61_p0 = scmp.ne.s32.totalorder %s8134_s13, %s8130_s12  ;;  %p11247_p1 = scmp.eq.s32.totalorder %s8195_s16, 0 }
   0x8   : > { %p112_p3 = scmp.eq.s32.totalorder %s6301_s17, 1  ;;  %p6302_p5 = scmp.ge.s32.totalorder %s8142_s15, 1 }
   0x9   : > { %p8204_p4 = por %p11247_p1, %p61_p0  ;;  %p119_p7 = scmp.lt.s32.totalorder %s8142_s15, 3 }
   0xa   : > { %p8209_p6 = por %p112_p3, %p61_p0  ;;  %s8144_s21 = smov [#allocation5]  }
   0xb   : > { %s11250_s18 = scalar_select %p8204_p4, 1, 0 }
   0xc   : > { %s11251_s19 = scalar_select %p8209_p6, 1, 0 }
   0xd   : > { %p8214_p8 = pnand %p6302_p5, %p119_p7  ;;  %s134_s22 = sshll.u32 %s8144_s21, 4  ;;  %s8218_s22 = int_to_ptr.vmem [resolvable:$true] %s134_s22 }
   0xe   : > { %s8230_s24 = sadd.s32 1, %s8142_s15   ;;  %s48_s25 = sadd.s32 1, %s8138_s14 }
   0xf   : > { %s11252_s20 = scalar_select %p8214_p8, 1, 0 }
  0x10   : > { %p7958_p9 = pneg %p8214_p8  ;;  %s45_s26 = ssub.s32 %s8142_s15, %s8230_s24 }
  0x11   : > { %s8014_s29 = scalar_lea.hbm %s11245_s2, 1024 }
  0x12   : > { %p8225_p11 = pnand %p7958_p9, %p11247_p1  ;;  %p8015_p12 = scmp.ne.s32.totalorder %s11245_s2, %s8014_s29 }
  0x13   : > { %p8021_p5 = scmp.lt.u32.totalorder %s8014_s29, %s11245_s2 }
  0x14   : > { %p8016_p13 = pneg %p8225_p11 }
  0x16   : > { %p8017_p0 = pnand %p8016_p13, %p8015_p12 }
  0x18   : > { %p8018_p3 = pneg %p8017_p0 }
  0x1a   : > { %p8023_p7 = pnand %p8021_p5, %p8018_p3 }
  0x1c   : > { %8026 = shalt.err (!%p8023_p7)
}
  0x1d   : > { %s8027_s7 = scalar_lea.vmem %s8218_s22, 1024  ;;  %p8035_p2 = scmp.lt.s32.totalorder %s8218_s22, %s8218_s22 }
  0x1e   : > { %p8028_p9 = scmp.ne.s32.totalorder %s8218_s22, %s8027_s7  ;;  %p8036_p6 = scmp.lt.s32.totalorder %s8027_s7, %s8027_s7 }
  0x20   : > { %p8030_p10 = pnand %p8028_p9, %p8016_p13  ;;  %p8037_p4 = por %p8036_p6, %p8035_p2 }
  0x22   : > { %p8031_p1 = pneg %p8030_p10 }
  0x24   : > { %p8038_p8 = pnand %p8037_p4, %p8031_p1 }
  0x26   : > { %8041 = shalt.err (!%p8038_p8)
}
  0x27   : > { %s8145_s8 = smov 512   ;;  %s8146_s9 = smov 32  }
  0x28   : > { %7961 = dma.hbm_to_vmem [thread:$0]  (!%p8225_p11), %s11245_s2, 1024, %s8218_s22, [#allocation6], %s8145_s8, %s8145_s8, %s8146_s9  }
  0x29   : > { %p46_p2 = scmp.eq.s32.totalorder %s45_s26, 0  ;;  %p55_p1 = scmp.ne.s32.totalorder %s8138_s14, %s8134_s13 }
  0x2a   : > { %p56_p4 = scmp.eq.s32.totalorder %s8142_s15, 0  ;;  %p7971_p6 = scmp.lt.s32.totalorder %s8142_s15, 2 }
  0x2b   : > { %s8261_s17 = scalar_select %p46_p2, %s8138_s14, %s48_s25  }
  0x2c   : > { %p57_p8 = por %p56_p4, %p55_p1  ;;  %p11254_p10 = scmp.eq.s32.totalorder %s8195_s16, 1 }
  0x2d   : > { %s148_s27 = sand.u32 1, %s8138_s14   ;;  %s7409_s28 = smul.u32 768, %s8142_s15 }
  0x2e   : > { %p8265_p12 = por %p11254_p10, %p55_p1  ;;  %s7947_s29 = smul.u32 48, %s148_s27 }
  0x2f   : > { %s8274_s4 = scalar_lea.hbm %s11244_s1, %s7409_s28  ;;  %p8276_p11 = pnand %p7971_p6, %p57_p8 }
  0x30   : > { %s152_s25 = scalar_lea.vmem [#allocation2], %s7947_s29  ;;  %s8282_s5 = scalar_lea.sflag [#allocation3], %s148_s27 }
  0x31   : > { %s160_s26 = sshll.u32 %s152_s25, 4  ;;  %s8042_s6 = scalar_lea.hbm %s8274_s4, 768  ;;  %s8280_s26 = int_to_ptr.vmem [resolvable:$true] %s160_s26 }
  0x32   : > { %p8043_p13 = scmp.ne.s32.totalorder %s8274_s4, %s8042_s6  ;;  %p8044_p0 = pneg %p8276_p11 }
  0x33   : > { %s8047_s9 = scalar_lea.hbm %s11244_s1, 1536  ;;  %p8048_p7 = scmp.lt.u32.totalorder %s8274_s4, %s11244_s1 }
  0x34   : > { %p8045_p3 = pnand %p8044_p0, %p8043_p13  ;;  %p8049_p9 = scmp.lt.u32.totalorder %s8047_s9, %s8042_s6 }
  0x35   : > { %p8051_p1 = scmp.lt.u32.totalorder %s8042_s6, %s8274_s4 }
  0x36   : > { %p8046_p5 = pneg %p8045_p3  ;;  %p8050_p2 = por %p8049_p9, %p8048_p7 }
  0x38   : > { %p8052_p4 = por %p8051_p1, %p8050_p2 }
  0x3a   : > { %p8053_p6 = pnand %p8052_p4, %p8046_p5 }
  0x3c   : > { %8056 = shalt.err (!%p8053_p6)
}
  0x3d   : > { %s8057_s27 = scalar_lea.vmem %s8280_s26, 768  ;;  %s8147_s28 = smov [#allocation2]  }
  0x3e   : > { %p8058_p8 = scmp.ne.s32.totalorder %s8280_s26, %s8057_s27  ;;  %s8062_s29 = sshll.u32 %s8147_s28, 4  ;;  %s8063_s29 = int_to_ptr.vmem [resolvable:$false] %s8062_s29 }
  0x3f   : > { %s8064_s23 = scalar_lea.vmem %s8063_s29, 1536  ;;  %p8065_p3 = scmp.lt.s32.totalorder %s8280_s26, %s8063_s29 }
  0x40   : > { %p8060_p10 = pnand %p8058_p8, %p8044_p0  ;;  %p8066_p7 = scmp.lt.s32.totalorder %s8064_s23, %s8057_s27 }
  0x42   : > { %p8061_p13 = pneg %p8060_p10  ;;  %p8067_p9 = por %p8066_p7, %p8065_p3 }
  0x44   : > { %p8068_p2 = pnand %p8067_p9, %p8061_p13 }
  0x46   : > { %8071 = shalt.err (!%p8068_p2)
}
  0x47   : > { %s8148_s30 = smov 128   ;;  %s8149_s25 = smov 8  }
  0x48   : > { %7965 = dma.hbm_to_vmem [thread:$0]  (!%p8276_p11), %s8274_s4, 768, %s8280_s26, %s8282_s5, %s8148_s30, %s8148_s30, %s8149_s25  }
  0x49   : > { %p11257_p0 = scmp.ne.s32.totalorder %s11252_s20, 0 }
  0x4a   : > { %s8313_s6 = sand.u32 (!%p11257_p0), 1, %s8134_s13   ;;  %p11258_p5 = scmp.ne.s32.totalorder (!%p11257_p0), %s11250_s18, 0 }
  0x4b   : > { %172 = sbr.rel (%p11257_p0) target bundleno = 1724 (0x6bc), region = 32  ;;  %s175_s8 = scalar_lea.sflag (!%p11257_p0), [#allocation3], %s8313_s6 }
  0x4c   : > { %s7948_s7 = smul.u32 (!%p11257_p0), 48, %s8313_s6 }
  0x4e   : > { %s8317_s9 = scalar_lea.vmem (!%p11257_p0), [#allocation2], %s7948_s7 }
  0x52   : > { %8117 = dma.done.wait (%p11258_p5), %s175_s8, 768  }
  0x53   : > { %8119 = vsyncadd (%p11258_p5), %s175_s8, 4294966528  ;;  %p11259_p11 = scmp.eq.s32.totalorder %s8195_s16, 0 }
  0x55   : > { %8121 = dma.done.wait (%p11259_p11), [#allocation6], 1024   ;;  %p11260_p1 = pmov %p11259_p11 }
  0x56   : > { %vm273_vm0 = vcmask 130048   ;;  %v271_v0 = vld [vmem:[%s8317_s9] sm:$0xff]  ;;  %v272_v1 = vld [vmem:[%s8317_s9 + $0x8] sm:$0xff]  ;;  %s7949_s20 = smul.u32 6144, %s8313_s6  ;;  %s8151_s25 = smov [#allocation7]  }
  0x57   : > { %8123 = vsyncadd (%p11260_p1), [#allocation6], 4294966272  ;;  %v207_v2 = vld [vmem:[%s11243_s0] sm:$0xff]  ;;  %v7909_v3 = vpack.c.bf16 %v272_v1, %v271_v0  ;;  %v208_v4 = vld [vmem:[%s11243_s0 + $0x8] sm:$0xff]  ;;  %s7410_s11 = smul.u32 98304, %s8195_s16  ;;  %s6204_s16 = scalar_lea.sflag [#allocation4], %s8313_s6 }
  0x58   : > { %7613 = vmatprep.mubr.msk.f32.mxu0 %vm273_vm0, %v207_v2  ;;  %v209_v5 = vld [vmem:[%s11243_s0 + $0x10] sm:$0xff]  ;;  %v210_v6 = vld [vmem:[%s11243_s0 + $0x18] sm:$0xff]  ;;  %v211_v7 = vld [vmem:[%s11243_s0 + $0x20] sm:$0xff]  ;;  %s8976_s4 = scalar_lea.vmem [#allocation7], %s7949_s20  ;;  %s8076_s7 = sshll.u32 %s8151_s25, 4  ;;  %s8077_s7 = int_to_ptr.vmem [resolvable:$false] %s8076_s7 }
  0x59   : > { %7910 = vmatprep.subr.bf16.mxu0 %v7909_v3  ;;  %7945 = vmatprep.subr.bf16.mxu1 %v7909_v3  ;;  %v239_v8 = vld [vmem:[%s11243_s0 + $0x100] sm:$0xff]  ;;  %v240_v9 = vld [vmem:[%s11243_s0 + $0x108] sm:$0xff]  ;;  %v241_v11 = vld [vmem:[%s11243_s0 + $0x110] sm:$0xff]  ;;  %s6218_s27 = sshll.u32 %s8976_s4, 4  ;;  %s11193_s23 = scalar_lea.hbm %s11246_s3, %s7410_s11  ;;  %s11195_s27 = int_to_ptr.vmem [resolvable:$true] %s6218_s27 }
  0x5a   : > { %7912 = vmatpush3.bf16.msra.mxu0 %v7909_v3  ;;  %7946 = vmatpush3.bf16.msra.mxu1 %v7909_v3  ;;  %v212_v10 = vld [vmem:[%s11243_s0 + $0x28] sm:$0xff]  ;;  %v213_v12 = vld [vmem:[%s11243_s0 + $0x30] sm:$0xff]  ;;  %v242_v15 = vld [vmem:[%s11243_s0 + $0x118] sm:$0xff]  ;;  %s8072_s30 = scalar_lea.vmem %s11195_s27, 98304  ;;  %s8078_s8 = scalar_lea.vmem %s8077_s7, 196608 }
  0x5b   : > { %7661 = vmatprep.mubr.msk.f32.mxu1 %vm273_vm0, %v239_v8  ;;  %v852_v13 = vld [vmem:[#allocation5 + $0x8] sm:$0xff]  ;;  %v851_v17 = vld [vmem:[#allocation5] sm:$0xff]  ;;  %v214_v21 = vld [vmem:[%s11243_s0 + $0x38] sm:$0xff]  ;;  %p8073_p4 = scmp.ne.s32.totalorder %s11195_s27, %s8072_s30  ;;  %p8079_p10 = scmp.lt.s32.totalorder %s11195_s27, %s8077_s7 }
  0x5c   : > { %v856_v14 = vld [vmem:[#allocation5 + $0x28] sm:$0xff]  ;;  %v855_v18 = vld [vmem:[#allocation5 + $0x20] sm:$0xff]  ;;  %v245_v24 = vld [vmem:[%s11243_s0 + $0x130] sm:$0xff]  ;;  %p8080_p13 = scmp.lt.s32.totalorder %s8078_s8, %s8072_s30 }
  0x5d   : > { %7614 = vmatmul.mubr.msk.f32.vlgmr.msra.gmra.mrb[0].mxu0 %vm273_vm0, %v208_v4  ;;  %7662 = vmatmul.mubr.msk.f32.vlgmr.msra.gmra.mrb[0].mxu1 %vm273_vm0, %v240_v9  ;;  %v7913_v16 = vpack.c.bf16 %v856_v14, %v852_v13  ;;  %v243_v19 = vld [vmem:[%s11243_s0 + $0x120] sm:$0xff]  ;;  %v8374_v20 = vpack.c.bf16 %v855_v18, %v851_v17  ;;  %v244_v23 = vld [vmem:[%s11243_s0 + $0x128] sm:$0xff]  ;;  %v217_v26 = vld [vmem:[%s11243_s0 + $0x50] sm:$0xff]  ;;  %p8074_p6 = pnand %p8073_p4, %p8265_p12 }
  0x5e   : > { %7616 = vmatprep.mubr.msk.f32.mxu0 %vm273_vm0, %v209_v5  ;;  %7664 = vmatprep.mubr.msk.f32.mxu1 %vm273_vm0, %v241_v11  ;;  %v215_v22 = vld [vmem:[%s11243_s0 + $0x40] sm:$0xff]  ;;  %v216_v25 = vld [vmem:[%s11243_s0 + $0x48] sm:$0xff]  ;;  %v246_v27 = vld [vmem:[%s11243_s0 + $0x138] sm:$0xff]  ;;  %p8081_p3 = por %p8080_p13, %p8079_p10 }
  0x5f   : > { %7914 = vmatprep.subr.bf16.mxu1 %v7913_v16  ;;  %v247_v28 = vld [vmem:[%s11243_s0 + $0x140] sm:$0xff]  ;;  %v854_v29 = vld [vmem:[#allocation5 + $0x18] sm:$0xff]  ;;  %v853_v33 = vld [vmem:[#allocation5 + $0x10] sm:$0xff]  ;;  %p8075_p8 = pneg %p8074_p6 }
  0x60   : > { %7916 = vmatpush1.bf16.msra.mxu1 %v8374_v20  ;;  %v858_v30 = vld [vmem:[#allocation5 + $0x38] sm:$0xff]  ;;  %v857_v34 = vld [vmem:[#allocation5 + $0x30] sm:$0xff]  ;;  %v219_v35 = vld [vmem:[%s11243_s0 + $0x60] sm:$0xff] }
  0x61   : > { %7617 = vmatmul.mubr.msk.f32.gmra.mrb[2].mxu0 %vm273_vm0, %v210_v6  ;;  %7665 = vmatmul.mubr.msk.f32.gmra.mrb[2].mxu1 %vm273_vm0, %v242_v15  ;;  %v218_v31 = vld [vmem:[%s11243_s0 + $0x58] sm:$0xff]  ;;  %v7917_v32 = vpack.c.bf16 %v858_v30, %v854_v29  ;;  %v7919_v36 = vpack.c.bf16 %v857_v34, %v853_v33  ;;  %v248_v37 = vld [vmem:[%s11243_s0 + $0x148] sm:$0xff]  ;;  %v249_v38 = vld [vmem:[%s11243_s0 + $0x150] sm:$0xff]  ;;  %v8150_v15 = vmov 0.0   ;;  %p8082_p7 = pnand %p8081_p3, %p8075_p8 }
  0x62   : > { %7619 = vmatprep.mubr.msk.f32.mxu0 %vm273_vm0, %v211_v7  ;;  %7667 = vmatprep.mubr.msk.f32.mxu1 %vm273_vm0, %v243_v19  ;;  %v220_v39 = vld [vmem:[%s11243_s0 + $0x68] sm:$0xff]  ;;  %v221_v40 = vld [vmem:[%s11243_s0 + $0x70] sm:$0xff]  ;;  %v250_v41 = vld [vmem:[%s11243_s0 + $0x158] sm:$0xff] }
  0x63   : > { %7918 = vmatprep.subr.bf16.mxu0 %v7917_v32  ;;  %v251_v42 = vld [vmem:[%s11243_s0 + $0x160] sm:$0xff]  ;;  %v222_v43 = vld [vmem:[%s11243_s0 + $0x78] sm:$0xff]  ;;  %v252_v45 = vld [vmem:[%s11243_s0 + $0x168] sm:$0xff] }
  0x64   : > { %7920 = vmatpush1.bf16.msra.mxu0 %v7919_v36  ;;  %v223_v44 = vld [vmem:[%s11243_s0 + $0x80] sm:$0xff]  ;;  %v253_v46 = vld [vmem:[%s11243_s0 + $0x170] sm:$0xff]  ;;  %v224_v47 = vld [vmem:[%s11243_s0 + $0x88] sm:$0xff] }
  0x65   : > { %7620 = vmatmul.mubr.msk.f32.gmra.mrb[4].mxu0 %vm273_vm0, %v212_v10  ;;  %7668 = vmatmul.mubr.msk.f32.gmra.mrb[4].mxu1 %vm273_vm0, %v244_v23  ;;  %v225_v48 = vld [vmem:[%s11243_s0 + $0x90] sm:$0xff]  ;;  %v254_v49 = vld [vmem:[%s11243_s0 + $0x178] sm:$0xff]  ;;  %v255_v50 = vld [vmem:[%s11243_s0 + $0x180] sm:$0xff] }
  0x66   : > { %7622 = vmatprep.mubr.msk.f32.mxu0 %vm273_vm0, %v213_v12  ;;  %7670 = vmatprep.mubr.msk.f32.mxu1 %vm273_vm0, %v245_v24  ;;  %v226_v51 = vld [vmem:[%s11243_s0 + $0x98] sm:$0xff]  ;;  %v227_v52 = vld [vmem:[%s11243_s0 + $0xa0] sm:$0xff]  ;;  %v256_v53 = vld [vmem:[%s11243_s0 + $0x188] sm:$0xff] }
  0x67   : > { %7926 = vmatprep.subr.bf16.mxu0 %v7913_v16  ;;  %v257_v54 = vld [vmem:[%s11243_s0 + $0x190] sm:$0xff]  ;;  %v228_v55 = vld [vmem:[%s11243_s0 + $0xa8] sm:$0xff]  ;;  %v258_v57 = vld [vmem:[%s11243_s0 + $0x198] sm:$0xff] }
  0x68   : > { %v229_v56 = vld [vmem:[%s11243_s0 + $0xb0] sm:$0xff]  ;;  %v259_v58 = vld [vmem:[%s11243_s0 + $0x1a0] sm:$0xff]  ;;  %v230_v59 = vld [vmem:[%s11243_s0 + $0xb8] sm:$0xff] }
  0x69   : > { %7623 = vmatmul.mubr.msk.f32.gmra.mrb[6].mxu0 %vm273_vm0, %v214_v21  ;;  %7671 = vmatmul.mubr.msk.f32.gmra.mrb[6].mxu1 %vm273_vm0, %v246_v27  ;;  %v231_v60 = vld [vmem:[%s11243_s0 + $0xc0] sm:$0xff]  ;;  %v260_v61 = vld [vmem:[%s11243_s0 + $0x1a8] sm:$0xff]  ;;  %v261_v62 = vld [vmem:[%s11243_s0 + $0x1b0] sm:$0xff] }
  0x6a   : > { %7625 = vmatprep.mubr.msk.f32.mxu0 %vm273_vm0, %v215_v22  ;;  %7673 = vmatprep.mubr.msk.f32.mxu1 %vm273_vm0, %v247_v28  ;;  %v232_v63 = vld [vmem:[%s11243_s0 + $0xc8] sm:$0xff]  ;;  %v233_v0 = vld [vmem:[%s11243_s0 + $0xd0] sm:$0xff]  ;;  %v262_v1 = vld [vmem:[%s11243_s0 + $0x1b8] sm:$0xff] }
  0x6b   : > { %v263_v2 = vld [vmem:[%s11243_s0 + $0x1c0] sm:$0xff]  ;;  %v234_v3 = vld [vmem:[%s11243_s0 + $0xd8] sm:$0xff]  ;;  %v264_v5 = vld [vmem:[%s11243_s0 + $0x1c8] sm:$0xff] }
  0x6c   : > { %v235_v4 = vld [vmem:[%s11243_s0 + $0xe0] sm:$0xff]  ;;  %v265_v6 = vld [vmem:[%s11243_s0 + $0x1d0] sm:$0xff]  ;;  %v236_v7 = vld [vmem:[%s11243_s0 + $0xe8] sm:$0xff] }
  0x6d   : > { %7626 = vmatmul.mubr.msk.f32.gmra.mrb[8].mxu0 %vm273_vm0, %v216_v25  ;;  %7674 = vmatmul.mubr.msk.f32.gmra.mrb[8].mxu1 %vm273_vm0, %v248_v37  ;;  %v237_v8 = vld [vmem:[%s11243_s0 + $0xf0] sm:$0xff]  ;;  %v266_v9 = vld [vmem:[%s11243_s0 + $0x1d8] sm:$0xff]  ;;  %v267_v10 = vld [vmem:[%s11243_s0 + $0x1e0] sm:$0xff] }
  0x6e   : > { %7628 = vmatprep.mubr.msk.f32.mxu0 %vm273_vm0, %v217_v26  ;;  %7676 = vmatprep.mubr.msk.f32.mxu1 %vm273_vm0, %v249_v38  ;;  %v238_v11 = vld [vmem:[%s11243_s0 + $0xf8] sm:$0xff]  ;;  %v268_v12 = vld [vmem:[%s11243_s0 + $0x1e8] sm:$0xff]  ;;  %v269_v13 = vld [vmem:[%s11243_s0 + $0x1f0] sm:$0xff] }
  0x6f   : > { %v270_v14 = vld [vmem:[%s11243_s0 + $0x1f8] sm:$0xff]  ;;  %v6501_v16 = vld [vmem:[%s8317_s9 + $0x10] sm:$0xff] }
  0x70   : > { %v6502_v17 = vld [vmem:[%s8317_s9 + $0x18] sm:$0xff] }
  0x71   : > { %7629 = vmatmul.mubr.msk.f32.gmra.mrb[10].mxu0 %vm273_vm0, %v218_v31  ;;  %7677 = vmatmul.mubr.msk.f32.gmra.mrb[10].mxu1 %vm273_vm0, %v250_v41  ;;  %v7921_v18 = vpack.c.bf16 %v6502_v17, %v6501_v16 }
  0x72   : > { %7631 = vmatprep.mubr.msk.f32.mxu0 %vm273_vm0, %v219_v35  ;;  %7679 = vmatprep.mubr.msk.f32.mxu1 %vm273_vm0, %v251_v42 }
  0x73   : > { %7922 = vmatprep.subr.bf16.mxu1 %v7921_v18 }
  0x75   : > { %7632 = vmatmul.mubr.msk.f32.gmra.mrb[12].mxu0 %vm273_vm0, %v220_v39  ;;  %7680 = vmatmul.mubr.msk.f32.gmra.mrb[12].mxu1 %vm273_vm0, %v252_v45 }
  0x76   : > { %7634 = vmatprep.mubr.msk.f32.mxu0 %vm273_vm0, %v221_v40  ;;  %7682 = vmatprep.mubr.msk.f32.mxu1 %vm273_vm0, %v253_v46 }
  0x79   : > { %7635 = vmatmul.mubr.msk.f32.gmra.mrb[14].mxu0 %vm273_vm0, %v222_v43  ;;  %7683 = vmatmul.mubr.msk.f32.gmra.mrb[14].mxu1 %vm273_vm0, %v254_v49 }
  0x7a   : > { %7637 = vmatprep.mubr.msk.f32.mxu0 %vm273_vm0, %v223_v44  ;;  %7685 = vmatprep.mubr.msk.f32.mxu1 %vm273_vm0, %v255_v50 }
  0x7d   : > { %7638 = vmatmul.mubr.msk.f32.gmra.mrb[16].mxu0 %vm273_vm0, %v224_v47  ;;  %7686 = vmatmul.mubr.msk.f32.gmra.mrb[16].mxu1 %vm273_vm0, %v256_v53 }
  0x7e   : > { %7640 = vmatprep.mubr.msk.f32.mxu0 %vm273_vm0, %v225_v48  ;;  %7688 = vmatprep.mubr.msk.f32.mxu1 %vm273_vm0, %v257_v54 }
  0x81   : > { %7641 = vmatmul.mubr.msk.f32.gmra.mrb[18].mxu0 %vm273_vm0, %v226_v51  ;;  %7689 = vmatmul.mubr.msk.f32.gmra.mrb[18].mxu1 %vm273_vm0, %v258_v57 }
  0x82   : > { %7643 = vmatprep.mubr.msk.f32.mxu0 %vm273_vm0, %v227_v52  ;;  %7691 = vmatprep.mubr.msk.f32.mxu1 %vm273_vm0, %v259_v58 }
  0x85   : > { %7644 = vmatmul.mubr.msk.f32.gmra.mrb[20].mxu0 %vm273_vm0, %v228_v55  ;;  %7692 = vmatmul.mubr.msk.f32.gmra.mrb[20].mxu1 %vm273_vm0, %v260_v61 }
  0x86   : > { %7646 = vmatprep.mubr.msk.f32.mxu0 %vm273_vm0, %v229_v56  ;;  %7694 = vmatprep.mubr.msk.f32.mxu1 %vm273_vm0, %v261_v62 }
  0x89   : > { %7647 = vmatmul.mubr.msk.f32.gmra.mrb[22].mxu0 %vm273_vm0, %v230_v59  ;;  %7695 = vmatmul.mubr.msk.f32.gmra.mrb[22].mxu1 %vm273_vm0, %v262_v1 }
  0x8a   : > { %7649 = vmatprep.mubr.msk.f32.mxu0 %vm273_vm0, %v231_v60  ;;  %7697 = vmatprep.mubr.msk.f32.mxu1 %vm273_vm0, %v263_v2 }
  0x8d   : > { %7650 = vmatmul.mubr.msk.f32.gmra.mrb[24].mxu0 %vm273_vm0, %v232_v63  ;;  %7698 = vmatmul.mubr.msk.f32.gmra.mrb[24].mxu1 %vm273_vm0, %v264_v5 }
  0x8e   : > { %7652 = vmatprep.mubr.msk.f32.mxu0 %vm273_vm0, %v233_v0  ;;  %7700 = vmatprep.mubr.msk.f32.mxu1 %vm273_vm0, %v265_v6 }
  0x91   : > { %7653 = vmatmul.mubr.msk.f32.gmra.mrb[26].mxu0 %vm273_vm0, %v234_v3  ;;  %7701 = vmatmul.mubr.msk.f32.gmra.mrb[26].mxu1 %vm273_vm0, %v266_v9 }
  0x92   : > { %7655 = vmatprep.mubr.msk.f32.mxu0 %vm273_vm0, %v235_v4  ;;  %7703 = vmatprep.mubr.msk.f32.mxu1 %vm273_vm0, %v267_v10 }
  0x95   : > { %7656 = vmatmul.mubr.msk.f32.gmra.mrb[28].mxu0 %vm273_vm0, %v236_v7  ;;  %7704 = vmatmul.mubr.msk.f32.gmra.mrb[28].mxu1 %vm273_vm0, %v268_v12 }
  0x96   : > { %7658 = vmatprep.mubr.msk.f32.mxu0 %vm273_vm0, %v237_v8  ;;  %7706 = vmatprep.mubr.msk.f32.mxu1 %vm273_vm0, %v269_v13 }
  0x99   : > { %7659 = vmatmul.mubr.msk.f32.gmra.mrb[30].mxu0 %vm273_vm0, %v238_v11  ;;  %7707 = vmatmul.mubr.msk.f32.gmra.mrb[30].mxu1 %vm273_vm0, %v270_v14 }
  0x9a   : > { %1115 = vmatprep.mubr.f32.mxu1 %v8150_v15  ;;  %1564 = vmatprep.mubr.f32.mxu0 %v8150_v15 }
 0x130   : > { %v7615_v19 = vpop.f32.mrb[0].mxu0  ;;  %v8599_v24 = vpop.f32.mrb[0].mxu1 }
 0x131   : > { %v532_v21 = vpop.f32.mrb[1].mxu0  ;;  %v8603_v25 = vpop.f32.mrb[1].mxu1 }
 0x132   : > { %6373 = vmatmul.mubr.msk.f32.vlgmr.msra.gmra.mrb[32].mxu1 %vm273_vm0, %v532_v21  ;;  %6437 = vmatmul.mubr.msk.f32.vlgmr.msra.gmra.mrb[32].mxu0 %vm273_vm0, %v532_v21 }
 0x133   : > { %7924 = vmatpush3.bf16.msra.mxu1 %v7921_v18  ;;  %1121 = vmatprep.mubr.f32.mxu1 %v8150_v15 }
 0x134   : > { %1570 = vmatprep.mubr.f32.mxu0 %v8150_v15  ;;  %v7618_v22 = vpop.f32.mrb[2].mxu0  ;;  %7928 = vmatpush1.bf16.msra.mxu0 %v8374_v20  ;;  %v8607_v20 = vpop.f32.mrb[2].mxu1 }
 0x135   : > { %v542_v23 = vpop.f32.mrb[3].mxu0  ;;  %v8611_v28 = vpop.f32.mrb[3].mxu1 }
 0x136   : > { %6374 = vmatmul.mubr.msk.f32.gmra.mrb[34].mxu1 %vm273_vm0, %v7615_v19  ;;  %6438 = vmatmul.mubr.msk.f32.gmra.mrb[34].mxu0 %vm273_vm0, %v7615_v19 }
 0x137   : > { %1127 = vmatprep.mubr.f32.mxu1 %v8150_v15  ;;  %1576 = vmatprep.mubr.f32.mxu0 %v8150_v15 }
 0x138   : > { %v7621_v26 = vpop.f32.mrb[4].mxu0  ;;  %v8615_v31 = vpop.f32.mrb[4].mxu1 }
 0x139   : > { %v552_v27 = vpop.f32.mrb[5].mxu0  ;;  %v8619_v32 = vpop.f32.mrb[5].mxu1 }
 0x13a   : > { %6375 = vmatmul.mubr.msk.f32.gmra.mrb[36].mxu1 %vm273_vm0, %v542_v23  ;;  %6439 = vmatmul.mubr.msk.f32.gmra.mrb[36].mxu0 %vm273_vm0, %v542_v23 }
 0x13b   : > { %1133 = vmatprep.mubr.f32.mxu1 %v8150_v15  ;;  %1582 = vmatprep.mubr.f32.mxu0 %v8150_v15 }
 0x13c   : > { %v7624_v29 = vpop.f32.mrb[6].mxu0  ;;  %v8627_v37 = vpop.f32.mrb[6].mxu1 }
 0x13d   : > { %v562_v30 = vpop.f32.mrb[7].mxu0  ;;  %v8631_v38 = vpop.f32.mrb[7].mxu1 }
 0x13e   : > { %6376 = vmatmul.mubr.msk.f32.gmra.mrb[38].mxu1 %vm273_vm0, %v7618_v22  ;;  %6440 = vmatmul.mubr.msk.f32.gmra.mrb[38].mxu0 %vm273_vm0, %v7618_v22 }
 0x13f   : > { %1139 = vmatprep.mubr.f32.mxu1 %v8150_v15  ;;  %1588 = vmatprep.mubr.f32.mxu0 %v8150_v15 }
 0x140   : > { %v7627_v33 = vpop.f32.mrb[8].mxu0  ;;  %v8641_v43 = vpop.f32.mrb[8].mxu1 }
 0x141   : > { %v572_v34 = vpop.f32.mrb[9].mxu0  ;;  %v8645_v44 = vpop.f32.mrb[9].mxu1 }
 0x142   : > { %6377 = vmatmul.mubr.msk.f32.gmra.mrb[40].mxu1 %vm273_vm0, %v552_v27  ;;  %6441 = vmatmul.mubr.msk.f32.gmra.mrb[40].mxu0 %vm273_vm0, %v552_v27 }
 0x143   : > { %1145 = vmatprep.mubr.f32.mxu1 %v8150_v15  ;;  %1594 = vmatprep.mubr.f32.mxu0 %v8150_v15 }
 0x144   : > { %v7630_v35 = vpop.f32.mrb[10].mxu0  ;;  %v8659_v49 = vpop.f32.mrb[10].mxu1 }
 0x145   : > { %v582_v36 = vpop.f32.mrb[11].mxu0  ;;  %v8663_v50 = vpop.f32.mrb[11].mxu1 }
 0x146   : > { %6378 = vmatmul.mubr.msk.f32.gmra.mrb[42].mxu1 %vm273_vm0, %v7621_v26  ;;  %6442 = vmatmul.mubr.msk.f32.gmra.mrb[42].mxu0 %vm273_vm0, %v7621_v26 }
 0x147   : > { %1151 = vmatprep.mubr.f32.mxu1 %v8150_v15  ;;  %1600 = vmatprep.mubr.f32.mxu0 %v8150_v15 }
 0x148   : > { %v7633_v39 = vpop.f32.mrb[12].mxu0  ;;  %v8671_v53 = vpop.f32.mrb[12].mxu1 }
 0x149   : > { %v592_v40 = vpop.f32.mrb[13].mxu0  ;;  %v8675_v54 = vpop.f32.mrb[13].mxu1 }
 0x14a   : > { %6379 = vmatmul.mubr.msk.f32.gmra.mrb[44].mxu1 %vm273_vm0, %v562_v30  ;;  %6443 = vmatmul.mubr.msk.f32.gmra.mrb[44].mxu0 %vm273_vm0, %v562_v30 }
 0x14b   : > { %1157 = vmatprep.mubr.f32.mxu1 %v8150_v15  ;;  %1606 = vmatprep.mubr.f32.mxu0 %v8150_v15 }
 0x14c   : > { %v8637_v41 = vpop.f32.mrb[14].mxu0  ;;  %v8683_v57 = vpop.f32.mrb[14].mxu1 }
 0x14d   : > { %v602_v42 = vpop.f32.mrb[15].mxu0  ;;  %v8687_v58 = vpop.f32.mrb[15].mxu1 }
 0x14e   : > { %6380 = vmatmul.mubr.msk.f32.gmra.mrb[46].mxu1 %vm273_vm0, %v7624_v29  ;;  %6444 = vmatmul.mubr.msk.f32.gmra.mrb[46].mxu0 %vm273_vm0, %v7624_v29 }
 0x14f   : > { %1163 = vmatprep.mubr.f32.mxu1 %v8150_v15  ;;  %1612 = vmatprep.mubr.f32.mxu0 %v8150_v15 }
 0x150   : > { %v8647_v45 = vpop.f32.mrb[16].mxu0  ;;  %v8695_v61 = vpop.f32.mrb[16].mxu1 }
 0x151   : > { %v612_v46 = vpop.f32.mrb[17].mxu0  ;;  %v8699_v62 = vpop.f32.mrb[17].mxu1 }
 0x152   : > { %6381 = vmatmul.mubr.msk.f32.gmra.mrb[48].mxu1 %vm273_vm0, %v572_v34  ;;  %6445 = vmatmul.mubr.msk.f32.gmra.mrb[48].mxu0 %vm273_vm0, %v572_v34 }
 0x153   : > { %1169 = vmatprep.mubr.f32.mxu1 %v8150_v15  ;;  %1618 = vmatprep.mubr.f32.mxu0 %v8150_v15 }
 0x154   : > { %v8653_v47 = vpop.f32.mrb[18].mxu0  ;;  %v8707_v1 = vpop.f32.mrb[18].mxu1 }
 0x155   : > { %v8655_v48 = vpop.f32.mrb[19].mxu0  ;;  %v8711_v2 = vpop.f32.mrb[19].mxu1 }
 0x156   : > { %6382 = vmatmul.mubr.msk.f32.gmra.mrb[50].mxu1 %vm273_vm0, %v7627_v33  ;;  %6446 = vmatmul.mubr.msk.f32.gmra.mrb[50].mxu0 %vm273_vm0, %v7627_v33 }
 0x157   : > { %1175 = vmatprep.mubr.f32.mxu1 %v8150_v15  ;;  %1624 = vmatprep.mubr.f32.mxu0 %v8150_v15 }
 0x158   : > { %v8665_v51 = vpop.f32.mrb[20].mxu0  ;;  %v8719_v5 = vpop.f32.mrb[20].mxu1 }
 0x159   : > { %v8667_v52 = vpop.f32.mrb[21].mxu0  ;;  %v8723_v6 = vpop.f32.mrb[21].mxu1 }
 0x15a   : > { %6383 = vmatmul.mubr.msk.f32.gmra.mrb[52].mxu1 %vm273_vm0, %v582_v36  ;;  %6447 = vmatmul.mubr.msk.f32.gmra.mrb[52].mxu0 %vm273_vm0, %v582_v36 }
 0x15b   : > { %1181 = vmatprep.mubr.f32.mxu1 %v8150_v15  ;;  %1630 = vmatprep.mubr.f32.mxu0 %v8150_v15 }
 0x15c   : > { %v8677_v55 = vpop.f32.mrb[22].mxu0  ;;  %v8733_v9 = vpop.f32.mrb[22].mxu1 }
 0x15d   : > { %v8679_v56 = vpop.f32.mrb[23].mxu0  ;;  %v8737_v10 = vpop.f32.mrb[23].mxu1 }
 0x15e   : > { %6384 = vmatmul.mubr.msk.f32.gmra.mrb[54].mxu1 %vm273_vm0, %v7630_v35  ;;  %6448 = vmatmul.mubr.msk.f32.gmra.mrb[54].mxu0 %vm273_vm0, %v7630_v35 }
 0x15f   : > { %1187 = vmatprep.mubr.f32.mxu1 %v8150_v15  ;;  %1636 = vmatprep.mubr.f32.mxu0 %v8150_v15 }
 0x160   : > { %v8689_v59 = vpop.f32.mrb[24].mxu0  ;;  %v8741_v11 = vpop.f32.mrb[24].mxu1 }
 0x161   : > { %v8691_v60 = vpop.f32.mrb[25].mxu0  ;;  %v8745_v12 = vpop.f32.mrb[25].mxu1 }
 0x162   : > { %6385 = vmatmul.mubr.msk.f32.gmra.mrb[56].mxu1 %vm273_vm0, %v592_v40  ;;  %6449 = vmatmul.mubr.msk.f32.gmra.mrb[56].mxu0 %vm273_vm0, %v592_v40 }
 0x163   : > { %1193 = vmatprep.mubr.f32.mxu1 %v8150_v15  ;;  %1642 = vmatprep.mubr.f32.mxu0 %v8150_v15 }
 0x164   : > { %v8701_v63 = vpop.f32.mrb[26].mxu0  ;;  %v8751_v13 = vpop.f32.mrb[26].mxu1 }
 0x165   : > { %v8703_v0 = vpop.f32.mrb[27].mxu0  ;;  %v8755_v14 = vpop.f32.mrb[27].mxu1 }
 0x166   : > { %6386 = vmatmul.mubr.msk.f32.gmra.mrb[58].mxu1 %vm273_vm0, %v7633_v39  ;;  %6450 = vmatmul.mubr.msk.f32.gmra.mrb[58].mxu0 %vm273_vm0, %v7633_v39 }
 0x167   : > { %1199 = vmatprep.mubr.f32.mxu1 %v8150_v15  ;;  %1648 = vmatprep.mubr.f32.mxu0 %v8150_v15 }
 0x168   : > { %v8713_v3 = vpop.f32.mrb[28].mxu0  ;;  %v8761_v16 = vpop.f32.mrb[28].mxu1 }
 0x169   : > { %v8715_v4 = vpop.f32.mrb[29].mxu0  ;;  %v8765_v17 = vpop.f32.mrb[29].mxu1 }
 0x16a   : > { %6387 = vmatmul.mubr.msk.f32.gmra.mrb[60].mxu1 %vm273_vm0, %v602_v42  ;;  %6451 = vmatmul.mubr.msk.f32.gmra.mrb[60].mxu0 %vm273_vm0, %v602_v42 }
 0x16b   : > { %1205 = vmatprep.mubr.f32.mxu1 %v8150_v15  ;;  %1654 = vmatprep.mubr.f32.mxu0 %v8150_v15 }
 0x16c   : > { %v8725_v7 = vpop.f32.mrb[30].mxu0  ;;  %v8771_v18 = vpop.f32.mrb[30].mxu1 }
 0x16d   : > { %v8727_v8 = vpop.f32.mrb[31].mxu0  ;;  %v8775_v19 = vpop.f32.mrb[31].mxu1 }
 0x16e   : > { %6388 = vmatmul.mubr.msk.f32.gmra.mrb[62].mxu1 %vm273_vm0, %v8637_v41  ;;  %6452 = vmatmul.mubr.msk.f32.gmra.mrb[62].mxu0 %vm273_vm0, %v8637_v41 }
 0x16f   : > { %1211 = vmatprep.mubr.f32.mxu1 %v8150_v15  ;;  %1660 = vmatprep.mubr.f32.mxu0 %v8150_v15 }
 0x172   : > { %6389 = vmatmul.mubr.msk.f32.gmra.mrb[64].mxu1 %vm273_vm0, %v612_v46  ;;  %6453 = vmatmul.mubr.msk.f32.gmra.mrb[64].mxu0 %vm273_vm0, %v612_v46 }
 0x173   : > { %1217 = vmatprep.mubr.f32.mxu1 %v8150_v15  ;;  %1666 = vmatprep.mubr.f32.mxu0 %v8150_v15 }
 0x176   : > { %6390 = vmatmul.mubr.msk.f32.gmra.mrb[66].mxu1 %vm273_vm0, %v8647_v45  ;;  %6454 = vmatmul.mubr.msk.f32.gmra.mrb[66].mxu0 %vm273_vm0, %v8647_v45 }
 0x177   : > { %1223 = vmatprep.mubr.f32.mxu1 %v8150_v15  ;;  %1672 = vmatprep.mubr.f32.mxu0 %v8150_v15 }
 0x17a   : > { %6391 = vmatmul.mubr.msk.f32.gmra.mrb[68].mxu1 %vm273_vm0, %v8655_v48  ;;  %6455 = vmatmul.mubr.msk.f32.gmra.mrb[68].mxu0 %vm273_vm0, %v8655_v48 }
 0x17b   : > { %1229 = vmatprep.mubr.f32.mxu1 %v8150_v15  ;;  %1678 = vmatprep.mubr.f32.mxu0 %v8150_v15 }
 0x17e   : > { %6392 = vmatmul.mubr.msk.f32.gmra.mrb[70].mxu1 %vm273_vm0, %v8653_v47  ;;  %6456 = vmatmul.mubr.msk.f32.gmra.mrb[70].mxu0 %vm273_vm0, %v8653_v47 }
 0x17f   : > { %1235 = vmatprep.mubr.f32.mxu1 %v8150_v15  ;;  %1684 = vmatprep.mubr.f32.mxu0 %v8150_v15 }
 0x182   : > { %6393 = vmatmul.mubr.msk.f32.gmra.mrb[72].mxu1 %vm273_vm0, %v8667_v52  ;;  %6457 = vmatmul.mubr.msk.f32.gmra.mrb[72].mxu0 %vm273_vm0, %v8667_v52 }
 0x183   : > { %1241 = vmatprep.mubr.f32.mxu1 %v8150_v15  ;;  %1690 = vmatprep.mubr.f32.mxu0 %v8150_v15 }
 0x186   : > { %6394 = vmatmul.mubr.msk.f32.gmra.mrb[74].mxu1 %vm273_vm0, %v8665_v51  ;;  %6458 = vmatmul.mubr.msk.f32.gmra.mrb[74].mxu0 %vm273_vm0, %v8665_v51 }
 0x187   : > { %1247 = vmatprep.mubr.f32.mxu1 %v8150_v15  ;;  %1696 = vmatprep.mubr.f32.mxu0 %v8150_v15 }
 0x18a   : > { %6395 = vmatmul.mubr.msk.f32.gmra.mrb[76].mxu1 %vm273_vm0, %v8679_v56  ;;  %6459 = vmatmul.mubr.msk.f32.gmra.mrb[76].mxu0 %vm273_vm0, %v8679_v56 }
 0x18b   : > { %1253 = vmatprep.mubr.f32.mxu1 %v8150_v15  ;;  %1702 = vmatprep.mubr.f32.mxu0 %v8150_v15 }
 0x18e   : > { %6396 = vmatmul.mubr.msk.f32.gmra.mrb[78].mxu1 %vm273_vm0, %v8677_v55  ;;  %6460 = vmatmul.mubr.msk.f32.gmra.mrb[78].mxu0 %vm273_vm0, %v8677_v55 }
 0x18f   : > { %1259 = vmatprep.mubr.f32.mxu1 %v8150_v15  ;;  %1708 = vmatprep.mubr.f32.mxu0 %v8150_v15 }
 0x192   : > { %6397 = vmatmul.mubr.msk.f32.gmra.mrb[80].mxu1 %vm273_vm0, %v8691_v60  ;;  %6461 = vmatmul.mubr.msk.f32.gmra.mrb[80].mxu0 %vm273_vm0, %v8691_v60  ;;  %v2205_v60 = vld [vmem:[%s11243_s0] sm:$0xff] }
 0x193   : > { %1265 = vmatprep.mubr.f32.mxu1 %v8150_v15  ;;  %1714 = vmatprep.mubr.f32.mxu0 %v8150_v15 }
 0x196   : > { %6398 = vmatmul.mubr.msk.f32.gmra.mrb[82].mxu1 %vm273_vm0, %v8689_v59  ;;  %6462 = vmatmul.mubr.msk.f32.gmra.mrb[82].mxu0 %vm273_vm0, %v8689_v59 }
 0x197   : > { %1271 = vmatprep.mubr.f32.mxu1 %v8150_v15  ;;  %1720 = vmatprep.mubr.f32.mxu0 %v8150_v15 }
 0x19a   : > { %6399 = vmatmul.mubr.msk.f32.gmra.mrb[84].mxu1 %vm273_vm0, %v8703_v0  ;;  %6463 = vmatmul.mubr.msk.f32.gmra.mrb[84].mxu0 %vm273_vm0, %v8703_v0 }
 0x19b   : > { %1277 = vmatprep.mubr.f32.mxu1 %v8150_v15  ;;  %1726 = vmatprep.mubr.f32.mxu0 %v8150_v15 }
 0x19e   : > { %6400 = vmatmul.mubr.msk.f32.gmra.mrb[86].mxu1 %vm273_vm0, %v8701_v63  ;;  %6464 = vmatmul.mubr.msk.f32.gmra.mrb[86].mxu0 %vm273_vm0, %v8701_v63 }
 0x19f   : > { %1283 = vmatprep.mubr.f32.mxu1 %v8150_v15  ;;  %1732 = vmatprep.mubr.f32.mxu0 %v8150_v15 }
 0x1a2   : > { %6401 = vmatmul.mubr.msk.f32.gmra.mrb[88].mxu1 %vm273_vm0, %v8715_v4  ;;  %6465 = vmatmul.mubr.msk.f32.gmra.mrb[88].mxu0 %vm273_vm0, %v8715_v4 }
 0x1a3   : > { %1289 = vmatprep.mubr.f32.mxu1 %v8150_v15  ;;  %1738 = vmatprep.mubr.f32.mxu0 %v8150_v15 }
 0x1a6   : > { %6402 = vmatmul.mubr.msk.f32.gmra.mrb[90].mxu1 %vm273_vm0, %v8713_v3  ;;  %6466 = vmatmul.mubr.msk.f32.gmra.mrb[90].mxu0 %vm273_vm0, %v8713_v3 }
 0x1a7   : > { %1295 = vmatprep.mubr.f32.mxu1 %v8150_v15  ;;  %1744 = vmatprep.mubr.f32.mxu0 %v8150_v15 }
 0x1aa   : > { %6403 = vmatmul.mubr.msk.f32.gmra.mrb[92].mxu1 %vm273_vm0, %v8727_v8  ;;  %6467 = vmatmul.mubr.msk.f32.gmra.mrb[92].mxu0 %vm273_vm0, %v8727_v8  ;;  %v2209_v8 = vld [vmem:[%s11243_s0 + $0x20] sm:$0xff] }
 0x1ab   : > { %1301 = vmatprep.mubr.f32.mxu1 %v8150_v15  ;;  %1750 = vmatprep.mubr.f32.mxu0 %v8150_v15 }
 0x1ae   : > { %6404 = vmatmul.mubr.msk.f32.gmra.mrb[94].mxu1 %vm273_vm0, %v8725_v7  ;;  %6468 = vmatmul.mubr.msk.f32.gmra.mrb[94].mxu0 %vm273_vm0, %v8725_v7  ;;  %v2208_v7 = vld [vmem:[%s11243_s0 + $0x18] sm:$0xff] }
 0x1af   : > { %1307 = vmatprep.mubr.f32.mxu1 %v8150_v15  ;;  %1756 = vmatprep.mubr.f32.mxu0 %v8150_v15 }
 0x1b2   : > { %6405 = vmatmul.mubr.msk.f32.gmra.mrb[96].mxu1 %vm273_vm0, %v8603_v25  ;;  %6469 = vmatmul.mubr.msk.f32.gmra.mrb[96].mxu0 %vm273_vm0, %v8603_v25 }
 0x1b3   : > { %1313 = vmatprep.mubr.f32.mxu1 %v8150_v15  ;;  %1762 = vmatprep.mubr.f32.mxu0 %v8150_v15 }
 0x1b6   : > { %6406 = vmatmul.mubr.msk.f32.gmra.mrb[98].mxu1 %vm273_vm0, %v8599_v24  ;;  %6470 = vmatmul.mubr.msk.f32.gmra.mrb[98].mxu0 %vm273_vm0, %v8599_v24 }
 0x1b7   : > { %1319 = vmatprep.mubr.f32.mxu1 %v8150_v15  ;;  %1768 = vmatprep.mubr.f32.mxu0 %v8150_v15 }
 0x1ba   : > { %6407 = vmatmul.mubr.msk.f32.gmra.mrb[100].mxu1 %vm273_vm0, %v8611_v28  ;;  %6471 = vmatmul.mubr.msk.f32.gmra.mrb[100].mxu0 %vm273_vm0, %v8611_v28 }
 0x1bb   : > { %1325 = vmatprep.mubr.f32.mxu1 %v8150_v15  ;;  %1774 = vmatprep.mubr.f32.mxu0 %v8150_v15 }
 0x1be   : > { %6408 = vmatmul.mubr.msk.f32.gmra.mrb[102].mxu1 %vm273_vm0, %v8607_v20  ;;  %6472 = vmatmul.mubr.msk.f32.gmra.mrb[102].mxu0 %vm273_vm0, %v8607_v20 }
 0x1bf   : > { %1331 = vmatprep.mubr.f32.mxu1 %v8150_v15  ;;  %1780 = vmatprep.mubr.f32.mxu0 %v8150_v15 }
 0x1c2   : > { %6409 = vmatmul.mubr.msk.f32.gmra.mrb[104].mxu1 %vm273_vm0, %v8619_v32  ;;  %6473 = vmatmul.mubr.msk.f32.gmra.mrb[104].mxu0 %vm273_vm0, %v8619_v32 }
 0x1c3   : > { %1337 = vmatprep.mubr.f32.mxu1 %v8150_v15  ;;  %1786 = vmatprep.mubr.f32.mxu0 %v8150_v15 }
 0x1c6   : > { %6410 = vmatmul.mubr.msk.f32.gmra.mrb[106].mxu1 %vm273_vm0, %v8615_v31  ;;  %6474 = vmatmul.mubr.msk.f32.gmra.mrb[106].mxu0 %vm273_vm0, %v8615_v31 }
 0x1c7   : > { %1343 = vmatprep.mubr.f32.mxu1 %v8150_v15  ;;  %1792 = vmatprep.mubr.f32.mxu0 %v8150_v15 }
 0x1ca   : > { %6411 = vmatmul.mubr.msk.f32.gmra.mrb[108].mxu1 %vm273_vm0, %v8631_v38  ;;  %6475 = vmatmul.mubr.msk.f32.gmra.mrb[108].mxu0 %vm273_vm0, %v8631_v38 }
 0x1cb   : > { %1349 = vmatprep.mubr.f32.mxu1 %v8150_v15  ;;  %1798 = vmatprep.mubr.f32.mxu0 %v8150_v15 }
 0x1ce   : > { %6412 = vmatmul.mubr.msk.f32.gmra.mrb[110].mxu1 %vm273_vm0, %v8627_v37  ;;  %6476 = vmatmul.mubr.msk.f32.gmra.mrb[110].mxu0 %vm273_vm0, %v8627_v37 }
 0x1cf   : > { %1355 = vmatprep.mubr.f32.mxu1 %v8150_v15  ;;  %1804 = vmatprep.mubr.f32.mxu0 %v8150_v15 }
 0x1d2   : > { %6413 = vmatmul.mubr.msk.f32.gmra.mrb[112].mxu1 %vm273_vm0, %v8645_v44  ;;  %6477 = vmatmul.mubr.msk.f32.gmra.mrb[112].mxu0 %vm273_vm0, %v8645_v44 }
 0x1d3   : > { %1361 = vmatprep.mubr.f32.mxu1 %v8150_v15  ;;  %1810 = vmatprep.mubr.f32.mxu0 %v8150_v15 }
 0x1d6   : > { %6414 = vmatmul.mubr.msk.f32.gmra.mrb[114].mxu1 %vm273_vm0, %v8641_v43  ;;  %6478 = vmatmul.mubr.msk.f32.gmra.mrb[114].mxu0 %vm273_vm0, %v8641_v43 }
 0x1d7   : > { %1367 = vmatprep.mubr.f32.mxu1 %v8150_v15  ;;  %1816 = vmatprep.mubr.f32.mxu0 %v8150_v15 }
 0x1da   : > { %6415 = vmatmul.mubr.msk.f32.gmra.mrb[116].mxu1 %vm273_vm0, %v8663_v50  ;;  %6479 = vmatmul.mubr.msk.f32.gmra.mrb[116].mxu0 %vm273_vm0, %v8663_v50 }
 0x1db   : > { %1373 = vmatprep.mubr.f32.mxu1 %v8150_v15  ;;  %1822 = vmatprep.mubr.f32.mxu0 %v8150_v15 }
 0x1de   : > { %6416 = vmatmul.mubr.msk.f32.gmra.mrb[118].mxu1 %vm273_vm0, %v8659_v49  ;;  %6480 = vmatmul.mubr.msk.f32.gmra.mrb[118].mxu0 %vm273_vm0, %v8659_v49 }
 0x1df   : > { %1379 = vmatprep.mubr.f32.mxu1 %v8150_v15  ;;  %1828 = vmatprep.mubr.f32.mxu0 %v8150_v15 }
 0x1e2   : > { %6417 = vmatmul.mubr.msk.f32.gmra.mrb[120].mxu1 %vm273_vm0, %v8675_v54  ;;  %6481 = vmatmul.mubr.msk.f32.gmra.mrb[120].mxu0 %vm273_vm0, %v8675_v54 }
 0x1e3   : > { %1385 = vmatprep.mubr.f32.mxu1 %v8150_v15  ;;  %1834 = vmatprep.mubr.f32.mxu0 %v8150_v15 }
 0x1e6   : > { %6418 = vmatmul.mubr.msk.f32.gmra.mrb[122].mxu1 %vm273_vm0, %v8671_v53  ;;  %6482 = vmatmul.mubr.msk.f32.gmra.mrb[122].mxu0 %vm273_vm0, %v8671_v53 }
 0x1e7   : > { %1391 = vmatprep.mubr.f32.mxu1 %v8150_v15  ;;  %1840 = vmatprep.mubr.f32.mxu0 %v8150_v15 }
 0x1ea   : > { %6419 = vmatmul.mubr.msk.f32.gmra.mrb[124].mxu1 %vm273_vm0, %v8687_v58  ;;  %6483 = vmatmul.mubr.msk.f32.gmra.mrb[124].mxu0 %vm273_vm0, %v8687_v58 }
 0x1eb   : > { %1397 = vmatprep.mubr.f32.mxu1 %v8150_v15  ;;  %1846 = vmatprep.mubr.f32.mxu0 %v8150_v15 }
 0x1ee   : > { %6420 = vmatmul.mubr.msk.f32.gmra.mrb[126].mxu1 %vm273_vm0, %v8683_v57  ;;  %6484 = vmatmul.mubr.msk.f32.gmra.mrb[126].mxu0 %vm273_vm0, %v8683_v57 }
 0x1ef   : > { %1403 = vmatprep.mubr.f32.mxu1 %v8150_v15  ;;  %1852 = vmatprep.mubr.f32.mxu0 %v8150_v15 }
 0x1f2   : > { %6421 = vmatmul.mubr.msk.f32.gmra.mrb[128].mxu1 %vm273_vm0, %v8699_v62  ;;  %6485 = vmatmul.mubr.msk.f32.gmra.mrb[128].mxu0 %vm273_vm0, %v8699_v62 }
 0x1f3   : > { %1409 = vmatprep.mubr.f32.mxu1 %v8150_v15  ;;  %1858 = vmatprep.mubr.f32.mxu0 %v8150_v15 }
 0x1f6   : > { %6422 = vmatmul.mubr.msk.f32.gmra.mrb[130].mxu1 %vm273_vm0, %v8695_v61  ;;  %6486 = vmatmul.mubr.msk.f32.gmra.mrb[130].mxu0 %vm273_vm0, %v8695_v61 }
 0x1f7   : > { %1415 = vmatprep.mubr.f32.mxu1 %v8150_v15  ;;  %1864 = vmatprep.mubr.f32.mxu0 %v8150_v15 }
 0x1fa   : > { %6423 = vmatmul.mubr.msk.f32.gmra.mrb[132].mxu1 %vm273_vm0, %v8711_v2  ;;  %6487 = vmatmul.mubr.msk.f32.gmra.mrb[132].mxu0 %vm273_vm0, %v8711_v2  ;;  %v2207_v2 = vld [vmem:[%s11243_s0 + $0x10] sm:$0xff] }
 0x1fb   : > { %1421 = vmatprep.mubr.f32.mxu1 %v8150_v15  ;;  %1870 = vmatprep.mubr.f32.mxu0 %v8150_v15 }
 0x1fe   : > { %6424 = vmatmul.mubr.msk.f32.gmra.mrb[134].mxu1 %vm273_vm0, %v8707_v1  ;;  %6488 = vmatmul.mubr.msk.f32.gmra.mrb[134].mxu0 %vm273_vm0, %v8707_v1  ;;  %v2206_v1 = vld [vmem:[%s11243_s0 + $0x8] sm:$0xff] }
 0x1ff   : > { %1427 = vmatprep.mubr.f32.mxu1 %v8150_v15  ;;  %1876 = vmatprep.mubr.f32.mxu0 %v8150_v15 }
 0x202   : > { %6425 = vmatmul.mubr.msk.f32.gmra.mrb[136].mxu1 %vm273_vm0, %v8723_v6  ;;  %6489 = vmatmul.mubr.msk.f32.gmra.mrb[136].mxu0 %vm273_vm0, %v8723_v6 }
 0x203   : > { %1433 = vmatprep.mubr.f32.mxu1 %v8150_v15  ;;  %1882 = vmatprep.mubr.f32.mxu0 %v8150_v15 }
 0x205   : > { %v1117_v21 = vpop.f32.mrb[32].mxu1  ;;  %v1566_v22 = vpop.f32.mrb[32].mxu0 }
 0x206   : > { %1949 = vst [vmem:[%s8976_s4] sm:$0xff] %v1117_v21  ;;  %1951 = vst [vmem:[%s8976_s4 + $0x10] sm:$0xff] %v1566_v22  ;;  %v1119_v23 = vpop.f32.mrb[33].mxu1  ;;  %6426 = vmatmul.mubr.msk.f32.gmra.mrb[138].mxu1 %vm273_vm0, %v8719_v5  ;;  %v1568_v24 = vpop.f32.mrb[33].mxu0  ;;  %6490 = vmatmul.mubr.msk.f32.gmra.mrb[138].mxu0 %vm273_vm0, %v8719_v5  ;;  %v2212_v21 = vld [vmem:[%s11243_s0 + $0x38] sm:$0xff]  ;;  %v2213_v22 = vld [vmem:[%s11243_s0 + $0x40] sm:$0xff] }
 0x207   : > { %1950 = vst [vmem:[%s8976_s4 + $0x8] sm:$0xff] %v1119_v23  ;;  %1952 = vst [vmem:[%s8976_s4 + $0x18] sm:$0xff] %v1568_v24  ;;  %1439 = vmatprep.mubr.f32.mxu1 %v8150_v15  ;;  %1888 = vmatprep.mubr.f32.mxu0 %v8150_v15 }
 0x209   : > { %v1123_v25 = vpop.f32.mrb[34].mxu1  ;;  %v1572_v26 = vpop.f32.mrb[34].mxu0 }
 0x20a   : > { %1953 = vst [vmem:[%s8976_s4 + $0x20] sm:$0xff] %v1123_v25  ;;  %1955 = vst [vmem:[%s8976_s4 + $0x30] sm:$0xff] %v1572_v26  ;;  %v1125_v27 = vpop.f32.mrb[35].mxu1  ;;  %6427 = vmatmul.mubr.msk.f32.gmra.mrb[140].mxu1 %vm273_vm0, %v8737_v10  ;;  %v1574_v20 = vpop.f32.mrb[35].mxu0  ;;  %6491 = vmatmul.mubr.msk.f32.gmra.mrb[140].mxu0 %vm273_vm0, %v8737_v10 }
 0x20b   : > { %1954 = vst [vmem:[%s8976_s4 + $0x28] sm:$0xff] %v1125_v27  ;;  %1956 = vst [vmem:[%s8976_s4 + $0x38] sm:$0xff] %v1574_v20  ;;  %1445 = vmatprep.mubr.f32.mxu1 %v8150_v15  ;;  %1894 = vmatprep.mubr.f32.mxu0 %v8150_v15  ;;  %v2214_v27 = vld [vmem:[%s11243_s0 + $0x48] sm:$0xff]  ;;  %v2215_v20 = vld [vmem:[%s11243_s0 + $0x50] sm:$0xff] }
 0x20d   : > { %v1129_v28 = vpop.f32.mrb[36].mxu1  ;;  %v1578_v29 = vpop.f32.mrb[36].mxu0 }
 0x20e   : > { %1957 = vst [vmem:[%s8976_s4 + $0x40] sm:$0xff] %v1129_v28  ;;  %1959 = vst [vmem:[%s8976_s4 + $0x50] sm:$0xff] %v1578_v29  ;;  %v1131_v30 = vpop.f32.mrb[37].mxu1  ;;  %6428 = vmatmul.mubr.msk.f32.gmra.mrb[142].mxu1 %vm273_vm0, %v8733_v9  ;;  %v1580_v31 = vpop.f32.mrb[37].mxu0  ;;  %6492 = vmatmul.mubr.msk.f32.gmra.mrb[142].mxu0 %vm273_vm0, %v8733_v9 }
 0x20f   : > { %1958 = vst [vmem:[%s8976_s4 + $0x48] sm:$0xff] %v1131_v30  ;;  %1960 = vst [vmem:[%s8976_s4 + $0x58] sm:$0xff] %v1580_v31  ;;  %1451 = vmatprep.mubr.f32.mxu1 %v8150_v15  ;;  %1900 = vmatprep.mubr.f32.mxu0 %v8150_v15 }
 0x211   : > { %v1135_v32 = vpop.f32.mrb[38].mxu1  ;;  %v1584_v33 = vpop.f32.mrb[38].mxu0 }
 0x212   : > { %1961 = vst [vmem:[%s8976_s4 + $0x60] sm:$0xff] %v1135_v32  ;;  %1963 = vst [vmem:[%s8976_s4 + $0x70] sm:$0xff] %v1584_v33  ;;  %v1137_v34 = vpop.f32.mrb[39].mxu1  ;;  %6429 = vmatmul.mubr.msk.f32.gmra.mrb[144].mxu1 %vm273_vm0, %v8745_v12  ;;  %v1586_v35 = vpop.f32.mrb[39].mxu0  ;;  %6493 = vmatmul.mubr.msk.f32.gmra.mrb[144].mxu0 %vm273_vm0, %v8745_v12  ;;  %v2216_v32 = vld [vmem:[%s11243_s0 + $0x58] sm:$0xff]  ;;  %v2217_v33 = vld [vmem:[%s11243_s0 + $0x60] sm:$0xff] }
 0x213   : > { %1962 = vst [vmem:[%s8976_s4 + $0x68] sm:$0xff] %v1137_v34  ;;  %1964 = vst [vmem:[%s8976_s4 + $0x78] sm:$0xff] %v1586_v35  ;;  %1457 = vmatprep.mubr.f32.mxu1 %v8150_v15  ;;  %1906 = vmatprep.mubr.f32.mxu0 %v8150_v15 }
 0x215   : > { %v1141_v36 = vpop.f32.mrb[40].mxu1  ;;  %v1590_v37 = vpop.f32.mrb[40].mxu0 }
 0x216   : > { %1965 = vst [vmem:[%s8976_s4 + $0x80] sm:$0xff] %v1141_v36  ;;  %1967 = vst [vmem:[%s8976_s4 + $0x90] sm:$0xff] %v1590_v37  ;;  %v1143_v38 = vpop.f32.mrb[41].mxu1  ;;  %6430 = vmatmul.mubr.msk.f32.gmra.mrb[146].mxu1 %vm273_vm0, %v8741_v11  ;;  %v1592_v39 = vpop.f32.mrb[41].mxu0  ;;  %6494 = vmatmul.mubr.msk.f32.gmra.mrb[146].mxu0 %vm273_vm0, %v8741_v11 }
 0x217   : > { %1966 = vst [vmem:[%s8976_s4 + $0x88] sm:$0xff] %v1143_v38  ;;  %1968 = vst [vmem:[%s8976_s4 + $0x98] sm:$0xff] %v1592_v39  ;;  %1463 = vmatprep.mubr.f32.mxu1 %v8150_v15  ;;  %1912 = vmatprep.mubr.f32.mxu0 %v8150_v15  ;;  %v2218_v38 = vld [vmem:[%s11243_s0 + $0x68] sm:$0xff]  ;;  %v2219_v39 = vld [vmem:[%s11243_s0 + $0x70] sm:$0xff] }
 0x219   : > { %v1147_v40 = vpop.f32.mrb[42].mxu1  ;;  %v1596_v41 = vpop.f32.mrb[42].mxu0 }
 0x21a   : > { %1969 = vst [vmem:[%s8976_s4 + $0xa0] sm:$0xff] %v1147_v40  ;;  %1971 = vst [vmem:[%s8976_s4 + $0xb0] sm:$0xff] %v1596_v41  ;;  %v1149_v42 = vpop.f32.mrb[43].mxu1  ;;  %6431 = vmatmul.mubr.msk.f32.gmra.mrb[148].mxu1 %vm273_vm0, %v8755_v14  ;;  %v1598_v43 = vpop.f32.mrb[43].mxu0  ;;  %6495 = vmatmul.mubr.msk.f32.gmra.mrb[148].mxu0 %vm273_vm0, %v8755_v14  ;;  %v2211_v14 = vld [vmem:[%s11243_s0 + $0x30] sm:$0xff] }
 0x21b   : > { %1970 = vst [vmem:[%s8976_s4 + $0xa8] sm:$0xff] %v1149_v42  ;;  %1972 = vst [vmem:[%s8976_s4 + $0xb8] sm:$0xff] %v1598_v43  ;;  %1469 = vmatprep.mubr.f32.mxu1 %v8150_v15  ;;  %1918 = vmatprep.mubr.f32.mxu0 %v8150_v15 }
 0x21d   : > { %v1153_v44 = vpop.f32.mrb[44].mxu1  ;;  %v1602_v45 = vpop.f32.mrb[44].mxu0 }
 0x21e   : > { %1973 = vst [vmem:[%s8976_s4 + $0xc0] sm:$0xff] %v1153_v44  ;;  %1975 = vst [vmem:[%s8976_s4 + $0xd0] sm:$0xff] %v1602_v45  ;;  %v1155_v46 = vpop.f32.mrb[45].mxu1  ;;  %6432 = vmatmul.mubr.msk.f32.gmra.mrb[150].mxu1 %vm273_vm0, %v8751_v13  ;;  %v1604_v47 = vpop.f32.mrb[45].mxu0  ;;  %6496 = vmatmul.mubr.msk.f32.gmra.mrb[150].mxu0 %vm273_vm0, %v8751_v13  ;;  %v2210_v13 = vld [vmem:[%s11243_s0 + $0x28] sm:$0xff]  ;;  %v2220_v44 = vld [vmem:[%s11243_s0 + $0x78] sm:$0xff] }
 0x21f   : > { %1974 = vst [vmem:[%s8976_s4 + $0xc8] sm:$0xff] %v1155_v46  ;;  %1976 = vst [vmem:[%s8976_s4 + $0xd8] sm:$0xff] %v1604_v47  ;;  %1475 = vmatprep.mubr.f32.mxu1 %v8150_v15  ;;  %1924 = vmatprep.mubr.f32.mxu0 %v8150_v15  ;;  %v2221_v45 = vld [vmem:[%s11243_s0 + $0x80] sm:$0xff] }
 0x221   : > { %v1159_v48 = vpop.f32.mrb[46].mxu1  ;;  %v1608_v49 = vpop.f32.mrb[46].mxu0 }
 0x222   : > { %1977 = vst [vmem:[%s8976_s4 + $0xe0] sm:$0xff] %v1159_v48  ;;  %1979 = vst [vmem:[%s8976_s4 + $0xf0] sm:$0xff] %v1608_v49  ;;  %v1161_v50 = vpop.f32.mrb[47].mxu1  ;;  %6433 = vmatmul.mubr.msk.f32.gmra.mrb[152].mxu1 %vm273_vm0, %v8765_v17  ;;  %v1610_v51 = vpop.f32.mrb[47].mxu0  ;;  %6497 = vmatmul.mubr.msk.f32.gmra.mrb[152].mxu0 %vm273_vm0, %v8765_v17 }
 0x223   : > { %1978 = vst [vmem:[%s8976_s4 + $0xe8] sm:$0xff] %v1161_v50  ;;  %1980 = vst [vmem:[%s8976_s4 + $0xf8] sm:$0xff] %v1610_v51  ;;  %1481 = vmatprep.mubr.f32.mxu1 %v8150_v15  ;;  %1930 = vmatprep.mubr.f32.mxu0 %v8150_v15  ;;  %v2222_v50 = vld [vmem:[%s11243_s0 + $0x88] sm:$0xff]  ;;  %v2223_v51 = vld [vmem:[%s11243_s0 + $0x90] sm:$0xff] }
 0x225   : > { %v1165_v52 = vpop.f32.mrb[48].mxu1  ;;  %v1614_v53 = vpop.f32.mrb[48].mxu0 }
 0x226   : > { %1981 = vst [vmem:[%s8976_s4 + $0x100] sm:$0xff] %v1165_v52  ;;  %1983 = vst [vmem:[%s8976_s4 + $0x110] sm:$0xff] %v1614_v53  ;;  %v1167_v54 = vpop.f32.mrb[49].mxu1  ;;  %6434 = vmatmul.mubr.msk.f32.gmra.mrb[154].mxu1 %vm273_vm0, %v8761_v16  ;;  %v1616_v55 = vpop.f32.mrb[49].mxu0  ;;  %6498 = vmatmul.mubr.msk.f32.gmra.mrb[154].mxu0 %vm273_vm0, %v8761_v16 }
 0x227   : > { %1982 = vst [vmem:[%s8976_s4 + $0x108] sm:$0xff] %v1167_v54  ;;  %1984 = vst [vmem:[%s8976_s4 + $0x118] sm:$0xff] %v1616_v55  ;;  %1487 = vmatprep.mubr.f32.mxu1 %v8150_v15  ;;  %1936 = vmatprep.mubr.f32.mxu0 %v8150_v15 }
 0x229   : > { %v1171_v56 = vpop.f32.mrb[50].mxu1  ;;  %v1620_v57 = vpop.f32.mrb[50].mxu0 }
 0x22a   : > { %1985 = vst [vmem:[%s8976_s4 + $0x120] sm:$0xff] %v1171_v56  ;;  %1987 = vst [vmem:[%s8976_s4 + $0x130] sm:$0xff] %v1620_v57  ;;  %v1173_v58 = vpop.f32.mrb[51].mxu1  ;;  %6435 = vmatmul.mubr.msk.f32.gmra.mrb[156].mxu1 %vm273_vm0, %v8775_v19  ;;  %v1622_v59 = vpop.f32.mrb[51].mxu0  ;;  %6499 = vmatmul.mubr.msk.f32.gmra.mrb[156].mxu0 %vm273_vm0, %v8775_v19  ;;  %v2224_v56 = vld [vmem:[%s11243_s0 + $0x98] sm:$0xff]  ;;  %v2225_v57 = vld [vmem:[%s11243_s0 + $0xa0] sm:$0xff] }
 0x22b   : > { %1986 = vst [vmem:[%s8976_s4 + $0x128] sm:$0xff] %v1173_v58  ;;  %1988 = vst [vmem:[%s8976_s4 + $0x138] sm:$0xff] %v1622_v59  ;;  %1493 = vmatprep.mubr.f32.mxu1 %v8150_v15  ;;  %1942 = vmatprep.mubr.f32.mxu0 %v8150_v15 }
 0x22d   : > { %v1177_v61 = vpop.f32.mrb[52].mxu1  ;;  %v1626_v62 = vpop.f32.mrb[52].mxu0 }
 0x22e   : > { %1989 = vst [vmem:[%s8976_s4 + $0x140] sm:$0xff] %v1177_v61  ;;  %1991 = vst [vmem:[%s8976_s4 + $0x150] sm:$0xff] %v1626_v62  ;;  %v1179_v63 = vpop.f32.mrb[53].mxu1  ;;  %6436 = vmatmul.mubr.msk.f32.gmra.mrb[158].mxu1 %vm273_vm0, %v8771_v18  ;;  %v1628_v0 = vpop.f32.mrb[53].mxu0  ;;  %6500 = vmatmul.mubr.msk.f32.gmra.mrb[158].mxu0 %vm273_vm0, %v8771_v18  ;;  %v2226_v62 = vld [vmem:[%s11243_s0 + $0xa8] sm:$0xff] }
 0x22f   : > { %1990 = vst [vmem:[%s8976_s4 + $0x148] sm:$0xff] %v1179_v63  ;;  %1992 = vst [vmem:[%s8976_s4 + $0x158] sm:$0xff] %v1628_v0  ;;  %7713 = vmatprep.mubr.msk.f32.mxu1 %vm273_vm0, %v2205_v60  ;;  %3113 = vmatprep.mubr.f32.mxu0 %v8150_v15  ;;  %v2227_v63 = vld [vmem:[%s11243_s0 + $0xb0] sm:$0xff] }
 0x231   : > { %v1183_v3 = vpop.f32.mrb[54].mxu1  ;;  %v1632_v4 = vpop.f32.mrb[54].mxu0 }
 0x232   : > { %1993 = vst [vmem:[%s8976_s4 + $0x160] sm:$0xff] %v1183_v3  ;;  %1995 = vst [vmem:[%s8976_s4 + $0x170] sm:$0xff] %v1632_v4  ;;  %v1185_v5 = vpop.f32.mrb[55].mxu1  ;;  %v1634_v6 = vpop.f32.mrb[55].mxu0  ;;  %7714 = vmatmul.mubr.msk.f32.vlgmr.msra.gmra.mrb[160].mxu1 %vm273_vm0, %v2206_v1  ;;  %v2228_v4 = vld [vmem:[%s11243_s0 + $0xb8] sm:$0xff] }
 0x233   : > { %1994 = vst [vmem:[%s8976_s4 + $0x168] sm:$0xff] %v1185_v5  ;;  %1996 = vst [vmem:[%s8976_s4 + $0x178] sm:$0xff] %v1634_v6  ;;  %7716 = vmatprep.mubr.msk.f32.mxu1 %vm273_vm0, %v2207_v2  ;;  %v2229_v5 = vld [vmem:[%s11243_s0 + $0xc0] sm:$0xff] }
 0x235   : > { %v1189_v9 = vpop.f32.mrb[56].mxu1  ;;  %v1638_v10 = vpop.f32.mrb[56].mxu0 }
 0x236   : > { %1997 = vst [vmem:[%s8976_s4 + $0x180] sm:$0xff] %v1189_v9  ;;  %1999 = vst [vmem:[%s8976_s4 + $0x190] sm:$0xff] %v1638_v10  ;;  %v1191_v11 = vpop.f32.mrb[57].mxu1  ;;  %v1640_v12 = vpop.f32.mrb[57].mxu0  ;;  %7717 = vmatmul.mubr.msk.f32.gmra.mrb[162].mxu1 %vm273_vm0, %v2208_v7  ;;  %v2230_v10 = vld [vmem:[%s11243_s0 + $0xc8] sm:$0xff] }
 0x237   : > { %1998 = vst [vmem:[%s8976_s4 + $0x188] sm:$0xff] %v1191_v11  ;;  %2000 = vst [vmem:[%s8976_s4 + $0x198] sm:$0xff] %v1640_v12  ;;  %7719 = vmatprep.mubr.msk.f32.mxu1 %vm273_vm0, %v2209_v8  ;;  %v2231_v11 = vld [vmem:[%s11243_s0 + $0xd0] sm:$0xff] }
 0x239   : > { %v1195_v16 = vpop.f32.mrb[58].mxu1  ;;  %v1644_v17 = vpop.f32.mrb[58].mxu0 }
 0x23a   : > { %2001 = vst [vmem:[%s8976_s4 + $0x1a0] sm:$0xff] %v1195_v16  ;;  %2003 = vst [vmem:[%s8976_s4 + $0x1b0] sm:$0xff] %v1644_v17  ;;  %v1197_v18 = vpop.f32.mrb[59].mxu1  ;;  %v1646_v19 = vpop.f32.mrb[59].mxu0  ;;  %7720 = vmatmul.mubr.msk.f32.gmra.mrb[164].mxu1 %vm273_vm0, %v2210_v13  ;;  %v2232_v17 = vld [vmem:[%s11243_s0 + $0xd8] sm:$0xff] }
 0x23b   : > { %2002 = vst [vmem:[%s8976_s4 + $0x1a8] sm:$0xff] %v1197_v18  ;;  %2004 = vst [vmem:[%s8976_s4 + $0x1b8] sm:$0xff] %v1646_v19  ;;  %7722 = vmatprep.mubr.msk.f32.mxu1 %vm273_vm0, %v2211_v14  ;;  %v2233_v18 = vld [vmem:[%s11243_s0 + $0xe0] sm:$0xff] }
 0x23d   : > { %v1201_v23 = vpop.f32.mrb[60].mxu1  ;;  %v1650_v24 = vpop.f32.mrb[60].mxu0 }
 0x23e   : > { %2005 = vst [vmem:[%s8976_s4 + $0x1c0] sm:$0xff] %v1201_v23  ;;  %2007 = vst [vmem:[%s8976_s4 + $0x1d0] sm:$0xff] %v1650_v24  ;;  %v1203_v25 = vpop.f32.mrb[61].mxu1  ;;  %v1652_v26 = vpop.f32.mrb[61].mxu0  ;;  %7723 = vmatmul.mubr.msk.f32.gmra.mrb[166].mxu1 %vm273_vm0, %v2212_v21  ;;  %v2234_v24 = vld [vmem:[%s11243_s0 + $0xe8] sm:$0xff] }
 0x23f   : > { %2006 = vst [vmem:[%s8976_s4 + $0x1c8] sm:$0xff] %v1203_v25  ;;  %2008 = vst [vmem:[%s8976_s4 + $0x1d8] sm:$0xff] %v1652_v26  ;;  %7725 = vmatprep.mubr.msk.f32.mxu1 %vm273_vm0, %v2213_v22  ;;  %v2235_v25 = vld [vmem:[%s11243_s0 + $0xf0] sm:$0xff] }
 0x241   : > { %v1207_v28 = vpop.f32.mrb[62].mxu1  ;;  %v1656_v29 = vpop.f32.mrb[62].mxu0 }
 0x242   : > { %2009 = vst [vmem:[%s8976_s4 + $0x1e0] sm:$0xff] %v1207_v28  ;;  %2011 = vst [vmem:[%s8976_s4 + $0x1f0] sm:$0xff] %v1656_v29  ;;  %v1209_v30 = vpop.f32.mrb[63].mxu1  ;;  %v1658_v31 = vpop.f32.mrb[63].mxu0  ;;  %7726 = vmatmul.mubr.msk.f32.gmra.mrb[168].mxu1 %vm273_vm0, %v2214_v27  ;;  %v2236_v29 = vld [vmem:[%s11243_s0 + $0xf8] sm:$0xff] }
 0x243   : > { %2010 = vst [vmem:[%s8976_s4 + $0x1e8] sm:$0xff] %v1209_v30  ;;  %2012 = vst [vmem:[%s8976_s4 + $0x1f8] sm:$0xff] %v1658_v31  ;;  %7728 = vmatprep.mubr.msk.f32.mxu1 %vm273_vm0, %v2215_v20  ;;  %v2237_v30 = vld [vmem:[%s11243_s0 + $0x100] sm:$0xff] }
 0x245   : > { %v1213_v34 = vpop.f32.mrb[64].mxu1  ;;  %v1662_v35 = vpop.f32.mrb[64].mxu0 }
 0x246   : > { %2013 = vst [vmem:[%s8976_s4 + $0x200] sm:$0xff] %v1213_v34  ;;  %2015 = vst [vmem:[%s8976_s4 + $0x210] sm:$0xff] %v1662_v35  ;;  %v1215_v36 = vpop.f32.mrb[65].mxu1  ;;  %v1664_v37 = vpop.f32.mrb[65].mxu0  ;;  %7729 = vmatmul.mubr.msk.f32.gmra.mrb[170].mxu1 %vm273_vm0, %v2216_v32  ;;  %v2238_v35 = vld [vmem:[%s11243_s0 + $0x108] sm:$0xff] }
 0x247   : > { %2014 = vst [vmem:[%s8976_s4 + $0x208] sm:$0xff] %v1215_v36  ;;  %2016 = vst [vmem:[%s8976_s4 + $0x218] sm:$0xff] %v1664_v37  ;;  %7731 = vmatprep.mubr.msk.f32.mxu1 %vm273_vm0, %v2217_v33  ;;  %v2239_v36 = vld [vmem:[%s11243_s0 + $0x110] sm:$0xff] }
 0x249   : > { %v1219_v40 = vpop.f32.mrb[66].mxu1  ;;  %v1668_v41 = vpop.f32.mrb[66].mxu0 }
 0x24a   : > { %2017 = vst [vmem:[%s8976_s4 + $0x220] sm:$0xff] %v1219_v40  ;;  %2019 = vst [vmem:[%s8976_s4 + $0x230] sm:$0xff] %v1668_v41  ;;  %v1221_v42 = vpop.f32.mrb[67].mxu1  ;;  %v1670_v43 = vpop.f32.mrb[67].mxu0  ;;  %7732 = vmatmul.mubr.msk.f32.gmra.mrb[172].mxu1 %vm273_vm0, %v2218_v38  ;;  %v2240_v41 = vld [vmem:[%s11243_s0 + $0x118] sm:$0xff] }
 0x24b   : > { %2018 = vst [vmem:[%s8976_s4 + $0x228] sm:$0xff] %v1221_v42  ;;  %2020 = vst [vmem:[%s8976_s4 + $0x238] sm:$0xff] %v1670_v43  ;;  %7734 = vmatprep.mubr.msk.f32.mxu1 %vm273_vm0, %v2219_v39  ;;  %v2241_v42 = vld [vmem:[%s11243_s0 + $0x120] sm:$0xff] }
 0x24d   : > { %v1225_v46 = vpop.f32.mrb[68].mxu1  ;;  %v1674_v47 = vpop.f32.mrb[68].mxu0 }
 0x24e   : > { %2021 = vst [vmem:[%s8976_s4 + $0x240] sm:$0xff] %v1225_v46  ;;  %2023 = vst [vmem:[%s8976_s4 + $0x250] sm:$0xff] %v1674_v47  ;;  %v1227_v48 = vpop.f32.mrb[69].mxu1  ;;  %v1676_v49 = vpop.f32.mrb[69].mxu0  ;;  %7735 = vmatmul.mubr.msk.f32.gmra.mrb[174].mxu1 %vm273_vm0, %v2220_v44  ;;  %v2242_v47 = vld [vmem:[%s11243_s0 + $0x128] sm:$0xff] }
 0x24f   : > { %2022 = vst [vmem:[%s8976_s4 + $0x248] sm:$0xff] %v1227_v48  ;;  %2024 = vst [vmem:[%s8976_s4 + $0x258] sm:$0xff] %v1676_v49  ;;  %7737 = vmatprep.mubr.msk.f32.mxu1 %vm273_vm0, %v2221_v45  ;;  %v2243_v48 = vld [vmem:[%s11243_s0 + $0x130] sm:$0xff] }
 0x251   : > { %v1231_v52 = vpop.f32.mrb[70].mxu1  ;;  %v1680_v53 = vpop.f32.mrb[70].mxu0 }
 0x252   : > { %2025 = vst [vmem:[%s8976_s4 + $0x260] sm:$0xff] %v1231_v52  ;;  %2027 = vst [vmem:[%s8976_s4 + $0x270] sm:$0xff] %v1680_v53  ;;  %v1233_v54 = vpop.f32.mrb[71].mxu1  ;;  %v1682_v55 = vpop.f32.mrb[71].mxu0  ;;  %7738 = vmatmul.mubr.msk.f32.gmra.mrb[176].mxu1 %vm273_vm0, %v2222_v50  ;;  %v2244_v53 = vld [vmem:[%s11243_s0 + $0x138] sm:$0xff] }
 0x253   : > { %2026 = vst [vmem:[%s8976_s4 + $0x268] sm:$0xff] %v1233_v54  ;;  %2028 = vst [vmem:[%s8976_s4 + $0x278] sm:$0xff] %v1682_v55  ;;  %7740 = vmatprep.mubr.msk.f32.mxu1 %vm273_vm0, %v2223_v51  ;;  %v2245_v54 = vld [vmem:[%s11243_s0 + $0x140] sm:$0xff] }
 0x255   : > { %v1237_v58 = vpop.f32.mrb[72].mxu1  ;;  %v1686_v59 = vpop.f32.mrb[72].mxu0 }
 0x256   : > { %2029 = vst [vmem:[%s8976_s4 + $0x280] sm:$0xff] %v1237_v58  ;;  %2031 = vst [vmem:[%s8976_s4 + $0x290] sm:$0xff] %v1686_v59  ;;  %v1239_v60 = vpop.f32.mrb[73].mxu1  ;;  %v1688_v61 = vpop.f32.mrb[73].mxu0  ;;  %7741 = vmatmul.mubr.msk.f32.gmra.mrb[178].mxu1 %vm273_vm0, %v2224_v56  ;;  %v2246_v59 = vld [vmem:[%s11243_s0 + $0x148] sm:$0xff] }
 0x257   : > { %2030 = vst [vmem:[%s8976_s4 + $0x288] sm:$0xff] %v1239_v60  ;;  %2032 = vst [vmem:[%s8976_s4 + $0x298] sm:$0xff] %v1688_v61  ;;  %7743 = vmatprep.mubr.msk.f32.mxu1 %vm273_vm0, %v2225_v57  ;;  %v2247_v60 = vld [vmem:[%s11243_s0 + $0x150] sm:$0xff]  ;;  %v2852_v61 = vld [vmem:[#allocation5 + $0x18] sm:$0xff] }
 0x259   : > { %v1243_v0 = vpop.f32.mrb[74].mxu1  ;;  %v1692_v1 = vpop.f32.mrb[74].mxu0 }
 0x25a   : > { %2033 = vst [vmem:[%s8976_s4 + $0x2a0] sm:$0xff] %v1243_v0  ;;  %2035 = vst [vmem:[%s8976_s4 + $0x2b0] sm:$0xff] %v1692_v1  ;;  %v1245_v2 = vpop.f32.mrb[75].mxu1  ;;  %v1694_v3 = vpop.f32.mrb[75].mxu0  ;;  %7744 = vmatmul.mubr.msk.f32.gmra.mrb[180].mxu1 %vm273_vm0, %v2226_v62  ;;  %v2856_v62 = vld [vmem:[#allocation5 + $0x38] sm:$0xff] }
 0x25b   : > { %2034 = vst [vmem:[%s8976_s4 + $0x2a8] sm:$0xff] %v1245_v2  ;;  %2036 = vst [vmem:[%s8976_s4 + $0x2b8] sm:$0xff] %v1694_v3  ;;  %7746 = vmatprep.mubr.msk.f32.mxu1 %vm273_vm0, %v2227_v63  ;;  %v7929_v1 = vpack.c.bf16 %v2856_v62, %v2852_v61  ;;  %v2851_v2 = vld [vmem:[#allocation5 + $0x10] sm:$0xff] }
 0x25c   : > { %v2855_v3 = vld [vmem:[#allocation5 + $0x30] sm:$0xff] }
 0x25d   : > { %v1249_v6 = vpop.f32.mrb[76].mxu1  ;;  %v1698_v7 = vpop.f32.mrb[76].mxu0  ;;  %7930 = vmatprep.subr.bf16.mxu1 %v7929_v1  ;;  %v2266_v1 = vld [vmem:[%s11243_s0 + $0x1e8] sm:$0xff] }
 0x25e   : > { %2037 = vst [vmem:[%s8976_s4 + $0x2c0] sm:$0xff] %v1249_v6  ;;  %2039 = vst [vmem:[%s8976_s4 + $0x2d0] sm:$0xff] %v1698_v7  ;;  %v1251_v8 = vpop.f32.mrb[77].mxu1  ;;  %v1700_v9 = vpop.f32.mrb[77].mxu0  ;;  %7747 = vmatmul.mubr.msk.f32.gmra.mrb[182].mxu1 %vm273_vm0, %v2228_v4  ;;  %v7931_v6 = vpack.c.bf16 %v2855_v3, %v2851_v2  ;;  %v2248_v7 = vld [vmem:[%s11243_s0 + $0x158] sm:$0xff]  ;;  %v2267_v2 = vld [vmem:[%s11243_s0 + $0x1f0] sm:$0xff] }
 0x25f   : > { %2038 = vst [vmem:[%s8976_s4 + $0x2c8] sm:$0xff] %v1251_v8  ;;  %2040 = vst [vmem:[%s8976_s4 + $0x2d8] sm:$0xff] %v1700_v9  ;;  %7749 = vmatprep.mubr.msk.f32.mxu1 %vm273_vm0, %v2229_v5  ;;  %v2249_v8 = vld [vmem:[%s11243_s0 + $0x160] sm:$0xff] }
 0x260   : > { %7932 = vmatpush1.bf16.msra.mxu1 %v7931_v6 }
 0x261   : > { %v1255_v12 = vpop.f32.mrb[78].mxu1  ;;  %v1704_v13 = vpop.f32.mrb[78].mxu0 }
 0x262   : > { %2041 = vst [vmem:[%s8976_s4 + $0x2e0] sm:$0xff] %v1255_v12  ;;  %2043 = vst [vmem:[%s8976_s4 + $0x2f0] sm:$0xff] %v1704_v13  ;;  %v1257_v14 = vpop.f32.mrb[79].mxu1  ;;  %v1706_v16 = vpop.f32.mrb[79].mxu0  ;;  %7750 = vmatmul.mubr.msk.f32.gmra.mrb[184].mxu1 %vm273_vm0, %v2230_v10  ;;  %v6951_v13 = vld [vmem:[%s8317_s9 + $0x20] sm:$0xff] }
 0x263   : > { %2042 = vst [vmem:[%s8976_s4 + $0x2e8] sm:$0xff] %v1257_v14  ;;  %2044 = vst [vmem:[%s8976_s4 + $0x2f8] sm:$0xff] %v1706_v16  ;;  %7752 = vmatprep.mubr.msk.f32.mxu1 %vm273_vm0, %v2231_v11  ;;  %v6952_v14 = vld [vmem:[%s8317_s9 + $0x28] sm:$0xff] }
 0x264   : > { %v2250_v16 = vld [vmem:[%s11243_s0 + $0x168] sm:$0xff] }
 0x265   : > { %v1261_v19 = vpop.f32.mrb[80].mxu1  ;;  %v1710_v21 = vpop.f32.mrb[80].mxu0 }
 0x266   : > { %2045 = vst [vmem:[%s8976_s4 + $0x300] sm:$0xff] %v1261_v19  ;;  %2047 = vst [vmem:[%s8976_s4 + $0x310] sm:$0xff] %v1710_v21  ;;  %v1263_v22 = vpop.f32.mrb[81].mxu1  ;;  %v1712_v23 = vpop.f32.mrb[81].mxu0  ;;  %7753 = vmatmul.mubr.msk.f32.gmra.mrb[186].mxu1 %vm273_vm0, %v2232_v17  ;;  %v9360_v17 = vpack.c.bf16 %v6952_v14, %v6951_v13 }
 0x267   : > { %2046 = vst [vmem:[%s8976_s4 + $0x308] sm:$0xff] %v1263_v22  ;;  %2048 = vst [vmem:[%s8976_s4 + $0x318] sm:$0xff] %v1712_v23  ;;  %7755 = vmatprep.mubr.msk.f32.mxu1 %vm273_vm0, %v2233_v18  ;;  %v2251_v18 = vld [vmem:[%s11243_s0 + $0x170] sm:$0xff] }
 0x268   : > { %7934 = vmatprep.subr.bf16.mxu0 %v9360_v17 }
 0x269   : > { %v1267_v26 = vpop.f32.mrb[82].mxu1  ;;  %v1716_v27 = vpop.f32.mrb[82].mxu0 }
 0x26a   : > { %2049 = vst [vmem:[%s8976_s4 + $0x320] sm:$0xff] %v1267_v26  ;;  %2051 = vst [vmem:[%s8976_s4 + $0x330] sm:$0xff] %v1716_v27  ;;  %v1269_v20 = vpop.f32.mrb[83].mxu1  ;;  %v1718_v28 = vpop.f32.mrb[83].mxu0  ;;  %7756 = vmatmul.mubr.msk.f32.gmra.mrb[188].mxu1 %vm273_vm0, %v2234_v24  ;;  %v2252_v24 = vld [vmem:[%s11243_s0 + $0x178] sm:$0xff] }
 0x26b   : > { %2050 = vst [vmem:[%s8976_s4 + $0x328] sm:$0xff] %v1269_v20  ;;  %2052 = vst [vmem:[%s8976_s4 + $0x338] sm:$0xff] %v1718_v28  ;;  %7758 = vmatprep.mubr.msk.f32.mxu1 %vm273_vm0, %v2235_v25  ;;  %v2253_v25 = vld [vmem:[%s11243_s0 + $0x180] sm:$0xff] }
 0x26d   : > { %v1273_v31 = vpop.f32.mrb[84].mxu1  ;;  %v1722_v32 = vpop.f32.mrb[84].mxu0 }
 0x26e   : > { %2053 = vst [vmem:[%s8976_s4 + $0x340] sm:$0xff] %v1273_v31  ;;  %2055 = vst [vmem:[%s8976_s4 + $0x350] sm:$0xff] %v1722_v32  ;;  %v1275_v33 = vpop.f32.mrb[85].mxu1  ;;  %v1724_v34 = vpop.f32.mrb[85].mxu0  ;;  %7759 = vmatmul.mubr.msk.f32.gmra.mrb[190].mxu1 %vm273_vm0, %v2236_v29  ;;  %v2254_v29 = vld [vmem:[%s11243_s0 + $0x188] sm:$0xff] }
 0x26f   : > { %2054 = vst [vmem:[%s8976_s4 + $0x348] sm:$0xff] %v1275_v33  ;;  %2056 = vst [vmem:[%s8976_s4 + $0x358] sm:$0xff] %v1724_v34  ;;  %7761 = vmatprep.mubr.msk.f32.mxu1 %vm273_vm0, %v2237_v30  ;;  %v2255_v30 = vld [vmem:[%s11243_s0 + $0x190] sm:$0xff] }
 0x271   : > { %v1279_v37 = vpop.f32.mrb[86].mxu1  ;;  %v1728_v38 = vpop.f32.mrb[86].mxu0 }
 0x272   : > { %2057 = vst [vmem:[%s8976_s4 + $0x360] sm:$0xff] %v1279_v37  ;;  %2059 = vst [vmem:[%s8976_s4 + $0x370] sm:$0xff] %v1728_v38  ;;  %v1281_v39 = vpop.f32.mrb[87].mxu1  ;;  %v1730_v40 = vpop.f32.mrb[87].mxu0  ;;  %7762 = vmatmul.mubr.msk.f32.gmra.mrb[192].mxu1 %vm273_vm0, %v2238_v35  ;;  %v2256_v35 = vld [vmem:[%s11243_s0 + $0x198] sm:$0xff] }
 0x273   : > { %2058 = vst [vmem:[%s8976_s4 + $0x368] sm:$0xff] %v1281_v39  ;;  %2060 = vst [vmem:[%s8976_s4 + $0x378] sm:$0xff] %v1730_v40  ;;  %7764 = vmatprep.mubr.msk.f32.mxu1 %vm273_vm0, %v2239_v36  ;;  %v2257_v36 = vld [vmem:[%s11243_s0 + $0x1a0] sm:$0xff] }
 0x275   : > { %v1285_v43 = vpop.f32.mrb[88].mxu1  ;;  %v1734_v44 = vpop.f32.mrb[88].mxu0 }
 0x276   : > { %2061 = vst [vmem:[%s8976_s4 + $0x380] sm:$0xff] %v1285_v43  ;;  %2063 = vst [vmem:[%s8976_s4 + $0x390] sm:$0xff] %v1734_v44  ;;  %v1287_v45 = vpop.f32.mrb[89].mxu1  ;;  %v1736_v46 = vpop.f32.mrb[89].mxu0  ;;  %7765 = vmatmul.mubr.msk.f32.gmra.mrb[194].mxu1 %vm273_vm0, %v2240_v41  ;;  %v2258_v41 = vld [vmem:[%s11243_s0 + $0x1a8] sm:$0xff] }
 0x277   : > { %2062 = vst [vmem:[%s8976_s4 + $0x388] sm:$0xff] %v1287_v45  ;;  %2064 = vst [vmem:[%s8976_s4 + $0x398] sm:$0xff] %v1736_v46  ;;  %7767 = vmatprep.mubr.msk.f32.mxu1 %vm273_vm0, %v2241_v42  ;;  %v2259_v42 = vld [vmem:[%s11243_s0 + $0x1b0] sm:$0xff] }
 0x279   : > { %v1291_v49 = vpop.f32.mrb[90].mxu1  ;;  %v1740_v50 = vpop.f32.mrb[90].mxu0 }
 0x27a   : > { %2065 = vst [vmem:[%s8976_s4 + $0x3a0] sm:$0xff] %v1291_v49  ;;  %2067 = vst [vmem:[%s8976_s4 + $0x3b0] sm:$0xff] %v1740_v50  ;;  %v1293_v51 = vpop.f32.mrb[91].mxu1  ;;  %v1742_v52 = vpop.f32.mrb[91].mxu0  ;;  %7768 = vmatmul.mubr.msk.f32.gmra.mrb[196].mxu1 %vm273_vm0, %v2242_v47  ;;  %v2260_v47 = vld [vmem:[%s11243_s0 + $0x1b8] sm:$0xff] }
 0x27b   : > { %2066 = vst [vmem:[%s8976_s4 + $0x3a8] sm:$0xff] %v1293_v51  ;;  %2068 = vst [vmem:[%s8976_s4 + $0x3b8] sm:$0xff] %v1742_v52  ;;  %7770 = vmatprep.mubr.msk.f32.mxu1 %vm273_vm0, %v2243_v48  ;;  %v2261_v48 = vld [vmem:[%s11243_s0 + $0x1c0] sm:$0xff] }
 0x27d   : > { %v1297_v55 = vpop.f32.mrb[92].mxu1  ;;  %v1746_v56 = vpop.f32.mrb[92].mxu0 }
 0x27e   : > { %2069 = vst [vmem:[%s8976_s4 + $0x3c0] sm:$0xff] %v1297_v55  ;;  %2071 = vst [vmem:[%s8976_s4 + $0x3d0] sm:$0xff] %v1746_v56  ;;  %v1299_v57 = vpop.f32.mrb[93].mxu1  ;;  %v1748_v58 = vpop.f32.mrb[93].mxu0  ;;  %7771 = vmatmul.mubr.msk.f32.gmra.mrb[198].mxu1 %vm273_vm0, %v2244_v53  ;;  %v2262_v53 = vld [vmem:[%s11243_s0 + $0x1c8] sm:$0xff] }
 0x27f   : > { %2070 = vst [vmem:[%s8976_s4 + $0x3c8] sm:$0xff] %v1299_v57  ;;  %2072 = vst [vmem:[%s8976_s4 + $0x3d8] sm:$0xff] %v1748_v58  ;;  %7773 = vmatprep.mubr.msk.f32.mxu1 %vm273_vm0, %v2245_v54  ;;  %v2263_v54 = vld [vmem:[%s11243_s0 + $0x1d0] sm:$0xff] }
 0x281   : > { %v1303_v63 = vpop.f32.mrb[94].mxu1  ;;  %v1752_v0 = vpop.f32.mrb[94].mxu0 }
 0x282   : > { %2073 = vst [vmem:[%s8976_s4 + $0x3e0] sm:$0xff] %v1303_v63  ;;  %2075 = vst [vmem:[%s8976_s4 + $0x3f0] sm:$0xff] %v1752_v0  ;;  %v1305_v4 = vpop.f32.mrb[95].mxu1  ;;  %v1754_v5 = vpop.f32.mrb[95].mxu0  ;;  %7774 = vmatmul.mubr.msk.f32.gmra.mrb[200].mxu1 %vm273_vm0, %v2246_v59  ;;  %v2264_v59 = vld [vmem:[%s11243_s0 + $0x1d8] sm:$0xff] }
 0x283   : > { %2074 = vst [vmem:[%s8976_s4 + $0x3e8] sm:$0xff] %v1305_v4  ;;  %2076 = vst [vmem:[%s8976_s4 + $0x3f8] sm:$0xff] %v1754_v5  ;;  %7776 = vmatprep.mubr.msk.f32.mxu1 %vm273_vm0, %v2247_v60  ;;  %v2265_v60 = vld [vmem:[%s11243_s0 + $0x1e0] sm:$0xff] }
 0x285   : > { %v1309_v9 = vpop.f32.mrb[96].mxu1  ;;  %v1758_v10 = vpop.f32.mrb[96].mxu0 }
 0x286   : > { %2077 = vst [vmem:[%s8976_s4 + $0x400] sm:$0xff] %v1309_v9  ;;  %2079 = vst [vmem:[%s8976_s4 + $0x410] sm:$0xff] %v1758_v10  ;;  %v1311_v11 = vpop.f32.mrb[97].mxu1  ;;  %v1760_v12 = vpop.f32.mrb[97].mxu0  ;;  %7777 = vmatmul.mubr.msk.f32.gmra.mrb[202].mxu1 %vm273_vm0, %v2248_v7  ;;  %v2268_v7 = vld [vmem:[%s11243_s0 + $0x1f8] sm:$0xff] }
 0x287   : > { %2078 = vst [vmem:[%s8976_s4 + $0x408] sm:$0xff] %v1311_v11  ;;  %2080 = vst [vmem:[%s8976_s4 + $0x418] sm:$0xff] %v1760_v12  ;;  %7779 = vmatprep.mubr.msk.f32.mxu1 %vm273_vm0, %v2249_v8 }
 0x289   : > { %v1315_v19 = vpop.f32.mrb[98].mxu1  ;;  %v1764_v21 = vpop.f32.mrb[98].mxu0 }
 0x28a   : > { %2081 = vst [vmem:[%s8976_s4 + $0x420] sm:$0xff] %v1315_v19  ;;  %2083 = vst [vmem:[%s8976_s4 + $0x430] sm:$0xff] %v1764_v21  ;;  %v1317_v22 = vpop.f32.mrb[99].mxu1  ;;  %v1766_v23 = vpop.f32.mrb[99].mxu0  ;;  %7780 = vmatmul.mubr.msk.f32.gmra.mrb[204].mxu1 %vm273_vm0, %v2250_v16 }
 0x28b   : > { %2082 = vst [vmem:[%s8976_s4 + $0x428] sm:$0xff] %v1317_v22  ;;  %2084 = vst [vmem:[%s8976_s4 + $0x438] sm:$0xff] %v1766_v23  ;;  %7782 = vmatprep.mubr.msk.f32.mxu1 %vm273_vm0, %v2251_v18 }
 0x28d   : > { %v1321_v26 = vpop.f32.mrb[100].mxu1  ;;  %v1770_v27 = vpop.f32.mrb[100].mxu0 }
 0x28e   : > { %2085 = vst [vmem:[%s8976_s4 + $0x440] sm:$0xff] %v1321_v26  ;;  %2087 = vst [vmem:[%s8976_s4 + $0x450] sm:$0xff] %v1770_v27  ;;  %v1323_v20 = vpop.f32.mrb[101].mxu1  ;;  %v1772_v28 = vpop.f32.mrb[101].mxu0  ;;  %7783 = vmatmul.mubr.msk.f32.gmra.mrb[206].mxu1 %vm273_vm0, %v2252_v24 }
 0x28f   : > { %2086 = vst [vmem:[%s8976_s4 + $0x448] sm:$0xff] %v1323_v20  ;;  %2088 = vst [vmem:[%s8976_s4 + $0x458] sm:$0xff] %v1772_v28  ;;  %7785 = vmatprep.mubr.msk.f32.mxu1 %vm273_vm0, %v2253_v25 }
 0x291   : > { %v1327_v31 = vpop.f32.mrb[102].mxu1  ;;  %v1776_v32 = vpop.f32.mrb[102].mxu0 }
 0x292   : > { %2089 = vst [vmem:[%s8976_s4 + $0x460] sm:$0xff] %v1327_v31  ;;  %2091 = vst [vmem:[%s8976_s4 + $0x470] sm:$0xff] %v1776_v32  ;;  %v1329_v33 = vpop.f32.mrb[103].mxu1  ;;  %v1778_v34 = vpop.f32.mrb[103].mxu0  ;;  %7786 = vmatmul.mubr.msk.f32.gmra.mrb[208].mxu1 %vm273_vm0, %v2254_v29 }
 0x293   : > { %2090 = vst [vmem:[%s8976_s4 + $0x468] sm:$0xff] %v1329_v33  ;;  %2092 = vst [vmem:[%s8976_s4 + $0x478] sm:$0xff] %v1778_v34  ;;  %7788 = vmatprep.mubr.msk.f32.mxu1 %vm273_vm0, %v2255_v30 }
 0x295   : > { %v1333_v37 = vpop.f32.mrb[104].mxu1  ;;  %v1782_v38 = vpop.f32.mrb[104].mxu0 }
 0x296   : > { %2093 = vst [vmem:[%s8976_s4 + $0x480] sm:$0xff] %v1333_v37  ;;  %2095 = vst [vmem:[%s8976_s4 + $0x490] sm:$0xff] %v1782_v38  ;;  %v1335_v39 = vpop.f32.mrb[105].mxu1  ;;  %v1784_v40 = vpop.f32.mrb[105].mxu0  ;;  %7789 = vmatmul.mubr.msk.f32.gmra.mrb[210].mxu1 %vm273_vm0, %v2256_v35 }
 0x297   : > { %2094 = vst [vmem:[%s8976_s4 + $0x488] sm:$0xff] %v1335_v39  ;;  %2096 = vst [vmem:[%s8976_s4 + $0x498] sm:$0xff] %v1784_v40  ;;  %7791 = vmatprep.mubr.msk.f32.mxu1 %vm273_vm0, %v2257_v36 }
 0x299   : > { %v1339_v43 = vpop.f32.mrb[106].mxu1  ;;  %v1788_v44 = vpop.f32.mrb[106].mxu0 }
 0x29a   : > { %2097 = vst [vmem:[%s8976_s4 + $0x4a0] sm:$0xff] %v1339_v43  ;;  %2099 = vst [vmem:[%s8976_s4 + $0x4b0] sm:$0xff] %v1788_v44  ;;  %v1341_v45 = vpop.f32.mrb[107].mxu1  ;;  %v1790_v46 = vpop.f32.mrb[107].mxu0  ;;  %7792 = vmatmul.mubr.msk.f32.gmra.mrb[212].mxu1 %vm273_vm0, %v2258_v41 }
 0x29b   : > { %2098 = vst [vmem:[%s8976_s4 + $0x4a8] sm:$0xff] %v1341_v45  ;;  %2100 = vst [vmem:[%s8976_s4 + $0x4b8] sm:$0xff] %v1790_v46  ;;  %7794 = vmatprep.mubr.msk.f32.mxu1 %vm273_vm0, %v2259_v42 }
 0x29d   : > { %v1345_v49 = vpop.f32.mrb[108].mxu1  ;;  %v1794_v50 = vpop.f32.mrb[108].mxu0 }
 0x29e   : > { %2101 = vst [vmem:[%s8976_s4 + $0x4c0] sm:$0xff] %v1345_v49  ;;  %2103 = vst [vmem:[%s8976_s4 + $0x4d0] sm:$0xff] %v1794_v50  ;;  %v1347_v51 = vpop.f32.mrb[109].mxu1  ;;  %v1796_v52 = vpop.f32.mrb[109].mxu0  ;;  %7795 = vmatmul.mubr.msk.f32.gmra.mrb[214].mxu1 %vm273_vm0, %v2260_v47 }
 0x29f   : > { %2102 = vst [vmem:[%s8976_s4 + $0x4c8] sm:$0xff] %v1347_v51  ;;  %2104 = vst [vmem:[%s8976_s4 + $0x4d8] sm:$0xff] %v1796_v52  ;;  %7797 = vmatprep.mubr.msk.f32.mxu1 %vm273_vm0, %v2261_v48 }
 0x2a1   : > { %v1351_v55 = vpop.f32.mrb[110].mxu1  ;;  %v1800_v56 = vpop.f32.mrb[110].mxu0 }
 0x2a2   : > { %2105 = vst [vmem:[%s8976_s4 + $0x4e0] sm:$0xff] %v1351_v55  ;;  %2107 = vst [vmem:[%s8976_s4 + $0x4f0] sm:$0xff] %v1800_v56  ;;  %v1353_v57 = vpop.f32.mrb[111].mxu1  ;;  %v1802_v58 = vpop.f32.mrb[111].mxu0  ;;  %7798 = vmatmul.mubr.msk.f32.gmra.mrb[216].mxu1 %vm273_vm0, %v2262_v53 }
 0x2a3   : > { %2106 = vst [vmem:[%s8976_s4 + $0x4e8] sm:$0xff] %v1353_v57  ;;  %2108 = vst [vmem:[%s8976_s4 + $0x4f8] sm:$0xff] %v1802_v58  ;;  %7800 = vmatprep.mubr.msk.f32.mxu1 %vm273_vm0, %v2263_v54 }
 0x2a5   : > { %v1357_v61 = vpop.f32.mrb[112].mxu1  ;;  %v1806_v62 = vpop.f32.mrb[112].mxu0 }
 0x2a6   : > { %2109 = vst [vmem:[%s8976_s4 + $0x500] sm:$0xff] %v1357_v61  ;;  %2111 = vst [vmem:[%s8976_s4 + $0x510] sm:$0xff] %v1806_v62  ;;  %v1359_v63 = vpop.f32.mrb[113].mxu1  ;;  %v1808_v0 = vpop.f32.mrb[113].mxu0  ;;  %7801 = vmatmul.mubr.msk.f32.gmra.mrb[218].mxu1 %vm273_vm0, %v2264_v59 }
 0x2a7   : > { %2110 = vst [vmem:[%s8976_s4 + $0x508] sm:$0xff] %v1359_v63  ;;  %2112 = vst [vmem:[%s8976_s4 + $0x518] sm:$0xff] %v1808_v0  ;;  %7803 = vmatprep.mubr.msk.f32.mxu1 %vm273_vm0, %v2265_v60 }
 0x2a9   : > { %v1363_v3 = vpop.f32.mrb[114].mxu1  ;;  %v1812_v4 = vpop.f32.mrb[114].mxu0 }
 0x2aa   : > { %2113 = vst [vmem:[%s8976_s4 + $0x520] sm:$0xff] %v1363_v3  ;;  %2115 = vst [vmem:[%s8976_s4 + $0x530] sm:$0xff] %v1812_v4  ;;  %v1365_v5 = vpop.f32.mrb[115].mxu1  ;;  %v1814_v6 = vpop.f32.mrb[115].mxu0  ;;  %7804 = vmatmul.mubr.msk.f32.gmra.mrb[220].mxu1 %vm273_vm0, %v2266_v1 }
 0x2ab   : > { %2114 = vst [vmem:[%s8976_s4 + $0x528] sm:$0xff] %v1365_v5  ;;  %2116 = vst [vmem:[%s8976_s4 + $0x538] sm:$0xff] %v1814_v6  ;;  %7806 = vmatprep.mubr.msk.f32.mxu1 %vm273_vm0, %v2267_v2 }
 0x2ad   : > { %v1369_v8 = vpop.f32.mrb[116].mxu1  ;;  %v1818_v9 = vpop.f32.mrb[116].mxu0 }
 0x2ae   : > { %2117 = vst [vmem:[%s8976_s4 + $0x540] sm:$0xff] %v1369_v8  ;;  %2119 = vst [vmem:[%s8976_s4 + $0x550] sm:$0xff] %v1818_v9  ;;  %v1371_v10 = vpop.f32.mrb[117].mxu1  ;;  %v1820_v11 = vpop.f32.mrb[117].mxu0  ;;  %7807 = vmatmul.mubr.msk.f32.gmra.mrb[222].mxu1 %vm273_vm0, %v2268_v7 }
 0x2af   : > { %2118 = vst [vmem:[%s8976_s4 + $0x548] sm:$0xff] %v1371_v10  ;;  %2120 = vst [vmem:[%s8976_s4 + $0x558] sm:$0xff] %v1820_v11  ;;  %3562 = vmatprep.mubr.f32.mxu1 %v8150_v15 }
 0x2b1   : > { %v1375_v12 = vpop.f32.mrb[118].mxu1  ;;  %v1824_v13 = vpop.f32.mrb[118].mxu0 }
 0x2b2   : > { %2121 = vst [vmem:[%s8976_s4 + $0x560] sm:$0xff] %v1375_v12  ;;  %2123 = vst [vmem:[%s8976_s4 + $0x570] sm:$0xff] %v1824_v13  ;;  %v1377_v14 = vpop.f32.mrb[119].mxu1  ;;  %v1826_v16 = vpop.f32.mrb[119].mxu0 }
 0x2b3   : > { %2122 = vst [vmem:[%s8976_s4 + $0x568] sm:$0xff] %v1377_v14  ;;  %2124 = vst [vmem:[%s8976_s4 + $0x578] sm:$0xff] %v1826_v16 }
 0x2b5   : > { %v1381_v18 = vpop.f32.mrb[120].mxu1  ;;  %v1830_v19 = vpop.f32.mrb[120].mxu0 }
 0x2b6   : > { %2125 = vst [vmem:[%s8976_s4 + $0x580] sm:$0xff] %v1381_v18  ;;  %2127 = vst [vmem:[%s8976_s4 + $0x590] sm:$0xff] %v1830_v19  ;;  %v1383_v21 = vpop.f32.mrb[121].mxu1  ;;  %v1832_v22 = vpop.f32.mrb[121].mxu0 }
 0x2b7   : > { %2126 = vst [vmem:[%s8976_s4 + $0x588] sm:$0xff] %v1383_v21  ;;  %2128 = vst [vmem:[%s8976_s4 + $0x598] sm:$0xff] %v1832_v22 }
 0x2b9   : > { %v1387_v23 = vpop.f32.mrb[122].mxu1  ;;  %v1836_v24 = vpop.f32.mrb[122].mxu0 }
 0x2ba   : > { %2129 = vst [vmem:[%s8976_s4 + $0x5a0] sm:$0xff] %v1387_v23  ;;  %2131 = vst [vmem:[%s8976_s4 + $0x5b0] sm:$0xff] %v1836_v24  ;;  %v1389_v25 = vpop.f32.mrb[123].mxu1  ;;  %v1838_v26 = vpop.f32.mrb[123].mxu0 }
 0x2bb   : > { %2130 = vst [vmem:[%s8976_s4 + $0x5a8] sm:$0xff] %v1389_v25  ;;  %2132 = vst [vmem:[%s8976_s4 + $0x5b8] sm:$0xff] %v1838_v26 }
 0x2bd   : > { %v1393_v27 = vpop.f32.mrb[124].mxu1  ;;  %v1842_v20 = vpop.f32.mrb[124].mxu0 }
 0x2be   : > { %2133 = vst [vmem:[%s8976_s4 + $0x5c0] sm:$0xff] %v1393_v27  ;;  %2135 = vst [vmem:[%s8976_s4 + $0x5d0] sm:$0xff] %v1842_v20  ;;  %v1395_v28 = vpop.f32.mrb[125].mxu1  ;;  %v1844_v29 = vpop.f32.mrb[125].mxu0 }
 0x2bf   : > { %2134 = vst [vmem:[%s8976_s4 + $0x5c8] sm:$0xff] %v1395_v28  ;;  %2136 = vst [vmem:[%s8976_s4 + $0x5d8] sm:$0xff] %v1844_v29 }
 0x2c1   : > { %v1399_v30 = vpop.f32.mrb[126].mxu1  ;;  %v1848_v31 = vpop.f32.mrb[126].mxu0 }
 0x2c2   : > { %2137 = vst [vmem:[%s8976_s4 + $0x5e0] sm:$0xff] %v1399_v30  ;;  %2139 = vst [vmem:[%s8976_s4 + $0x5f0] sm:$0xff] %v1848_v31  ;;  %v1401_v32 = vpop.f32.mrb[127].mxu1  ;;  %v1850_v33 = vpop.f32.mrb[127].mxu0 }
 0x2c3   : > { %2138 = vst [vmem:[%s8976_s4 + $0x5e8] sm:$0xff] %v1401_v32  ;;  %2140 = vst [vmem:[%s8976_s4 + $0x5f8] sm:$0xff] %v1850_v33 }
 0x2c5   : > { %v1405_v34 = vpop.f32.mrb[128].mxu1  ;;  %v1854_v35 = vpop.f32.mrb[128].mxu0 }
 0x2c6   : > { %2141 = vst [vmem:[%s8976_s4 + $0x600] sm:$0xff] %v1405_v34  ;;  %2143 = vst [vmem:[%s8976_s4 + $0x610] sm:$0xff] %v1854_v35  ;;  %v1407_v36 = vpop.f32.mrb[129].mxu1  ;;  %v1856_v37 = vpop.f32.mrb[129].mxu0 }
 0x2c7   : > { %2142 = vst [vmem:[%s8976_s4 + $0x608] sm:$0xff] %v1407_v36  ;;  %2144 = vst [vmem:[%s8976_s4 + $0x618] sm:$0xff] %v1856_v37 }
 0x2c9   : > { %v1411_v38 = vpop.f32.mrb[130].mxu1  ;;  %v1860_v39 = vpop.f32.mrb[130].mxu0 }
 0x2ca   : > { %2145 = vst [vmem:[%s8976_s4 + $0x620] sm:$0xff] %v1411_v38  ;;  %2147 = vst [vmem:[%s8976_s4 + $0x630] sm:$0xff] %v1860_v39  ;;  %v1413_v40 = vpop.f32.mrb[131].mxu1  ;;  %v1862_v41 = vpop.f32.mrb[131].mxu0 }
 0x2cb   : > { %2146 = vst [vmem:[%s8976_s4 + $0x628] sm:$0xff] %v1413_v40  ;;  %2148 = vst [vmem:[%s8976_s4 + $0x638] sm:$0xff] %v1862_v41 }
 0x2cd   : > { %v1417_v42 = vpop.f32.mrb[132].mxu1  ;;  %v1866_v43 = vpop.f32.mrb[132].mxu0 }
 0x2ce   : > { %2149 = vst [vmem:[%s8976_s4 + $0x640] sm:$0xff] %v1417_v42  ;;  %2151 = vst [vmem:[%s8976_s4 + $0x650] sm:$0xff] %v1866_v43  ;;  %v1419_v44 = vpop.f32.mrb[133].mxu1  ;;  %v1868_v45 = vpop.f32.mrb[133].mxu0 }
 0x2cf   : > { %2150 = vst [vmem:[%s8976_s4 + $0x648] sm:$0xff] %v1419_v44  ;;  %2152 = vst [vmem:[%s8976_s4 + $0x658] sm:$0xff] %v1868_v45 }
 0x2d1   : > { %v1423_v46 = vpop.f32.mrb[134].mxu1  ;;  %v1872_v47 = vpop.f32.mrb[134].mxu0 }
 0x2d2   : > { %2153 = vst [vmem:[%s8976_s4 + $0x660] sm:$0xff] %v1423_v46  ;;  %2155 = vst [vmem:[%s8976_s4 + $0x670] sm:$0xff] %v1872_v47  ;;  %v1425_v48 = vpop.f32.mrb[135].mxu1  ;;  %v1874_v49 = vpop.f32.mrb[135].mxu0 }
 0x2d3   : > { %2154 = vst [vmem:[%s8976_s4 + $0x668] sm:$0xff] %v1425_v48  ;;  %2156 = vst [vmem:[%s8976_s4 + $0x678] sm:$0xff] %v1874_v49 }
 0x2d5   : > { %v1429_v50 = vpop.f32.mrb[136].mxu1  ;;  %v1878_v51 = vpop.f32.mrb[136].mxu0 }
 0x2d6   : > { %2157 = vst [vmem:[%s8976_s4 + $0x680] sm:$0xff] %v1429_v50  ;;  %2159 = vst [vmem:[%s8976_s4 + $0x690] sm:$0xff] %v1878_v51  ;;  %v1431_v52 = vpop.f32.mrb[137].mxu1  ;;  %v1880_v53 = vpop.f32.mrb[137].mxu0 }
 0x2d7   : > { %2158 = vst [vmem:[%s8976_s4 + $0x688] sm:$0xff] %v1431_v52  ;;  %2160 = vst [vmem:[%s8976_s4 + $0x698] sm:$0xff] %v1880_v53 }
 0x2d9   : > { %v1435_v54 = vpop.f32.mrb[138].mxu1  ;;  %v1884_v55 = vpop.f32.mrb[138].mxu0 }
 0x2da   : > { %2161 = vst [vmem:[%s8976_s4 + $0x6a0] sm:$0xff] %v1435_v54  ;;  %2163 = vst [vmem:[%s8976_s4 + $0x6b0] sm:$0xff] %v1884_v55  ;;  %v1437_v56 = vpop.f32.mrb[139].mxu1  ;;  %v1886_v57 = vpop.f32.mrb[139].mxu0 }
 0x2db   : > { %2162 = vst [vmem:[%s8976_s4 + $0x6a8] sm:$0xff] %v1437_v56  ;;  %2164 = vst [vmem:[%s8976_s4 + $0x6b8] sm:$0xff] %v1886_v57 }
 0x2dd   : > { %v1441_v58 = vpop.f32.mrb[140].mxu1  ;;  %v1890_v59 = vpop.f32.mrb[140].mxu0 }
 0x2de   : > { %2165 = vst [vmem:[%s8976_s4 + $0x6c0] sm:$0xff] %v1441_v58  ;;  %2167 = vst [vmem:[%s8976_s4 + $0x6d0] sm:$0xff] %v1890_v59  ;;  %v1443_v60 = vpop.f32.mrb[141].mxu1  ;;  %v1892_v61 = vpop.f32.mrb[141].mxu0 }
 0x2df   : > { %2166 = vst [vmem:[%s8976_s4 + $0x6c8] sm:$0xff] %v1443_v60  ;;  %2168 = vst [vmem:[%s8976_s4 + $0x6d8] sm:$0xff] %v1892_v61 }
 0x2e1   : > { %v1447_v62 = vpop.f32.mrb[142].mxu1  ;;  %v1896_v63 = vpop.f32.mrb[142].mxu0 }
 0x2e2   : > { %2169 = vst [vmem:[%s8976_s4 + $0x6e0] sm:$0xff] %v1447_v62  ;;  %2171 = vst [vmem:[%s8976_s4 + $0x6f0] sm:$0xff] %v1896_v63  ;;  %v1449_v0 = vpop.f32.mrb[143].mxu1  ;;  %v1898_v1 = vpop.f32.mrb[143].mxu0 }
 0x2e3   : > { %2170 = vst [vmem:[%s8976_s4 + $0x6e8] sm:$0xff] %v1449_v0  ;;  %2172 = vst [vmem:[%s8976_s4 + $0x6f8] sm:$0xff] %v1898_v1 }
 0x2e5   : > { %v1453_v2 = vpop.f32.mrb[144].mxu1  ;;  %v1902_v3 = vpop.f32.mrb[144].mxu0 }
 0x2e6   : > { %2173 = vst [vmem:[%s8976_s4 + $0x700] sm:$0xff] %v1453_v2  ;;  %2175 = vst [vmem:[%s8976_s4 + $0x710] sm:$0xff] %v1902_v3  ;;  %v1455_v4 = vpop.f32.mrb[145].mxu1  ;;  %v1904_v5 = vpop.f32.mrb[145].mxu0 }
 0x2e7   : > { %2174 = vst [vmem:[%s8976_s4 + $0x708] sm:$0xff] %v1455_v4  ;;  %2176 = vst [vmem:[%s8976_s4 + $0x718] sm:$0xff] %v1904_v5 }
 0x2e9   : > { %v1459_v6 = vpop.f32.mrb[146].mxu1  ;;  %v1908_v7 = vpop.f32.mrb[146].mxu0 }
 0x2ea   : > { %2177 = vst [vmem:[%s8976_s4 + $0x720] sm:$0xff] %v1459_v6  ;;  %2179 = vst [vmem:[%s8976_s4 + $0x730] sm:$0xff] %v1908_v7  ;;  %v1461_v8 = vpop.f32.mrb[147].mxu1  ;;  %v1910_v9 = vpop.f32.mrb[147].mxu0 }
 0x2eb   : > { %2178 = vst [vmem:[%s8976_s4 + $0x728] sm:$0xff] %v1461_v8  ;;  %2180 = vst [vmem:[%s8976_s4 + $0x738] sm:$0xff] %v1910_v9 }
 0x2ed   : > { %v1465_v10 = vpop.f32.mrb[148].mxu1  ;;  %v1914_v11 = vpop.f32.mrb[148].mxu0 }
 0x2ee   : > { %2181 = vst [vmem:[%s8976_s4 + $0x740] sm:$0xff] %v1465_v10  ;;  %2183 = vst [vmem:[%s8976_s4 + $0x750] sm:$0xff] %v1914_v11  ;;  %v1467_v12 = vpop.f32.mrb[149].mxu1  ;;  %v1916_v13 = vpop.f32.mrb[149].mxu0 }
 0x2ef   : > { %2182 = vst [vmem:[%s8976_s4 + $0x748] sm:$0xff] %v1467_v12  ;;  %2184 = vst [vmem:[%s8976_s4 + $0x758] sm:$0xff] %v1916_v13 }
 0x2f1   : > { %v1471_v14 = vpop.f32.mrb[150].mxu1  ;;  %v1920_v16 = vpop.f32.mrb[150].mxu0 }
 0x2f2   : > { %2185 = vst [vmem:[%s8976_s4 + $0x760] sm:$0xff] %v1471_v14  ;;  %2187 = vst [vmem:[%s8976_s4 + $0x770] sm:$0xff] %v1920_v16  ;;  %v1473_v18 = vpop.f32.mrb[151].mxu1  ;;  %v1922_v19 = vpop.f32.mrb[151].mxu0  ;;  %v4849_v16 = vld [vmem:[#allocation5 + $0x8] sm:$0xff] }
 0x2f3   : > { %2186 = vst [vmem:[%s8976_s4 + $0x768] sm:$0xff] %v1473_v18  ;;  %2188 = vst [vmem:[%s8976_s4 + $0x778] sm:$0xff] %v1922_v19  ;;  %v4853_v18 = vld [vmem:[#allocation5 + $0x28] sm:$0xff]  ;;  %v4848_v19 = vld [vmem:[#allocation5] sm:$0xff] }
 0x2f5   : > { %v1477_v21 = vpop.f32.mrb[152].mxu1  ;;  %v1926_v22 = vpop.f32.mrb[152].mxu0 }
 0x2f6   : > { %2189 = vst [vmem:[%s8976_s4 + $0x780] sm:$0xff] %v1477_v21  ;;  %2191 = vst [vmem:[%s8976_s4 + $0x790] sm:$0xff] %v1926_v22  ;;  %v1479_v23 = vpop.f32.mrb[153].mxu1  ;;  %v1928_v24 = vpop.f32.mrb[153].mxu0  ;;  %v7937_v22 = vpack.c.bf16 %v4853_v18, %v4849_v16 }
 0x2f7   : > { %2190 = vst [vmem:[%s8976_s4 + $0x788] sm:$0xff] %v1479_v23  ;;  %2192 = vst [vmem:[%s8976_s4 + $0x798] sm:$0xff] %v1928_v24  ;;  %v4852_v23 = vld [vmem:[#allocation5 + $0x20] sm:$0xff] }
 0x2f8   : > { %7938 = vmatprep.subr.bf16.mxu1 %v7937_v22 }
 0x2f9   : > { %v1483_v25 = vpop.f32.mrb[154].mxu1  ;;  %v1932_v26 = vpop.f32.mrb[154].mxu0 }
 0x2fa   : > { %2193 = vst [vmem:[%s8976_s4 + $0x7a0] sm:$0xff] %v1483_v25  ;;  %2195 = vst [vmem:[%s8976_s4 + $0x7b0] sm:$0xff] %v1932_v26  ;;  %v1485_v27 = vpop.f32.mrb[155].mxu1  ;;  %v1934_v20 = vpop.f32.mrb[155].mxu0  ;;  %v7939_v25 = vpack.c.bf16 %v4852_v23, %v4848_v19 }
 0x2fb   : > { %2194 = vst [vmem:[%s8976_s4 + $0x7a8] sm:$0xff] %v1485_v27  ;;  %2196 = vst [vmem:[%s8976_s4 + $0x7b8] sm:$0xff] %v1934_v20 }
 0x2fd   : > { %v1489_v28 = vpop.f32.mrb[156].mxu1  ;;  %v1938_v29 = vpop.f32.mrb[156].mxu0 }
 0x2fe   : > { %2197 = vst [vmem:[%s8976_s4 + $0x7c0] sm:$0xff] %v1489_v28  ;;  %2199 = vst [vmem:[%s8976_s4 + $0x7d0] sm:$0xff] %v1938_v29  ;;  %v1491_v30 = vpop.f32.mrb[157].mxu1  ;;  %v1940_v31 = vpop.f32.mrb[157].mxu0 }
 0x2ff   : > { %2198 = vst [vmem:[%s8976_s4 + $0x7c8] sm:$0xff] %v1491_v30  ;;  %2200 = vst [vmem:[%s8976_s4 + $0x7d8] sm:$0xff] %v1940_v31 }
 0x301   : > { %v1495_v32 = vpop.f32.mrb[158].mxu1  ;;  %v1944_v33 = vpop.f32.mrb[158].mxu0 }
 0x302   : > { %2201 = vst [vmem:[%s8976_s4 + $0x7e0] sm:$0xff] %v1495_v32  ;;  %2203 = vst [vmem:[%s8976_s4 + $0x7f0] sm:$0xff] %v1944_v33  ;;  %v1497_v34 = vpop.f32.mrb[159].mxu1  ;;  %v1946_v35 = vpop.f32.mrb[159].mxu0 }
 0x303   : > { %2202 = vst [vmem:[%s8976_s4 + $0x7e8] sm:$0xff] %v1497_v34  ;;  %2204 = vst [vmem:[%s8976_s4 + $0x7f8] sm:$0xff] %v1946_v35 }
 0x305   : > { %v7715_v36 = vpop.f32.mrb[160].mxu1 }
 0x306   : > { %v2530_v37 = vpop.f32.mrb[161].mxu1 }
 0x307   : > { %6567 = vmatmul.mubr.msk.f32.vlgmr.msra.gmra.mrb[160].mxu0 %vm273_vm0, %v2530_v37  ;;  %6631 = vmatmul.mubr.msk.f32.vlgmr.msra.gmra.mrb[224].mxu1 %vm273_vm0, %v2530_v37 }
 0x308   : > { %7936 = vmatpush3.bf16.msra.mxu0 %v9360_v17  ;;  %3119 = vmatprep.mubr.f32.mxu0 %v8150_v15 }
 0x309   : > { %3568 = vmatprep.mubr.f32.mxu1 %v8150_v15  ;;  %v7718_v38 = vpop.f32.mrb[162].mxu1  ;;  %7940 = vmatpush1.bf16.msra.mxu1 %v7939_v25  ;;  %v4850_v25 = vld [vmem:[#allocation5 + $0x10] sm:$0xff] }
 0x30a   : > { %v2540_v39 = vpop.f32.mrb[163].mxu1 }
 0x30b   : > { %6568 = vmatmul.mubr.msk.f32.gmra.mrb[162].mxu0 %vm273_vm0, %v7715_v36  ;;  %6632 = vmatmul.mubr.msk.f32.gmra.mrb[226].mxu1 %vm273_vm0, %v7715_v36 }
 0x30c   : > { %3125 = vmatprep.mubr.f32.mxu0 %v8150_v15  ;;  %3574 = vmatprep.mubr.f32.mxu1 %v8150_v15 }
 0x30d   : > { %v7721_v40 = vpop.f32.mrb[164].mxu1 }
 0x30e   : > { %v2550_v41 = vpop.f32.mrb[165].mxu1 }
 0x30f   : > { %6569 = vmatmul.mubr.msk.f32.gmra.mrb[164].mxu0 %vm273_vm0, %v2540_v39  ;;  %6633 = vmatmul.mubr.msk.f32.gmra.mrb[228].mxu1 %vm273_vm0, %v2540_v39 }
 0x310   : > { %3131 = vmatprep.mubr.f32.mxu0 %v8150_v15  ;;  %3580 = vmatprep.mubr.f32.mxu1 %v8150_v15 }
 0x311   : > { %v7724_v17 = vpop.f32.mrb[166].mxu1 }
 0x312   : > { %v2560_v42 = vpop.f32.mrb[167].mxu1 }
 0x313   : > { %6570 = vmatmul.mubr.msk.f32.gmra.mrb[166].mxu0 %vm273_vm0, %v7718_v38  ;;  %6634 = vmatmul.mubr.msk.f32.gmra.mrb[230].mxu1 %vm273_vm0, %v7718_v38 }
 0x314   : > { %3137 = vmatprep.mubr.f32.mxu0 %v8150_v15  ;;  %3586 = vmatprep.mubr.f32.mxu1 %v8150_v15 }
 0x315   : > { %v7727_v43 = vpop.f32.mrb[168].mxu1 }
 0x316   : > { %v2570_v44 = vpop.f32.mrb[169].mxu1 }
 0x317   : > { %6571 = vmatmul.mubr.msk.f32.gmra.mrb[168].mxu0 %vm273_vm0, %v2550_v41  ;;  %6635 = vmatmul.mubr.msk.f32.gmra.mrb[232].mxu1 %vm273_vm0, %v2550_v41 }
 0x318   : > { %3143 = vmatprep.mubr.f32.mxu0 %v8150_v15  ;;  %3592 = vmatprep.mubr.f32.mxu1 %v8150_v15 }
 0x319   : > { %v7730_v45 = vpop.f32.mrb[170].mxu1 }
 0x31a   : > { %v2580_v46 = vpop.f32.mrb[171].mxu1 }
 0x31b   : > { %6572 = vmatmul.mubr.msk.f32.gmra.mrb[170].mxu0 %vm273_vm0, %v7721_v40  ;;  %6636 = vmatmul.mubr.msk.f32.gmra.mrb[234].mxu1 %vm273_vm0, %v7721_v40 }
 0x31c   : > { %3149 = vmatprep.mubr.f32.mxu0 %v8150_v15  ;;  %3598 = vmatprep.mubr.f32.mxu1 %v8150_v15 }
 0x31d   : > { %v7733_v47 = vpop.f32.mrb[172].mxu1 }
 0x31e   : > { %v2590_v48 = vpop.f32.mrb[173].mxu1 }
 0x31f   : > { %6573 = vmatmul.mubr.msk.f32.gmra.mrb[172].mxu0 %vm273_vm0, %v2560_v42  ;;  %6637 = vmatmul.mubr.msk.f32.gmra.mrb[236].mxu1 %vm273_vm0, %v2560_v42 }
 0x320   : > { %3155 = vmatprep.mubr.f32.mxu0 %v8150_v15  ;;  %3604 = vmatprep.mubr.f32.mxu1 %v8150_v15 }
 0x321   : > { %v7736_v49 = vpop.f32.mrb[174].mxu1 }
 0x322   : > { %v2600_v50 = vpop.f32.mrb[175].mxu1 }
 0x323   : > { %6574 = vmatmul.mubr.msk.f32.gmra.mrb[174].mxu0 %vm273_vm0, %v7724_v17  ;;  %6638 = vmatmul.mubr.msk.f32.gmra.mrb[238].mxu1 %vm273_vm0, %v7724_v17 }
 0x324   : > { %3161 = vmatprep.mubr.f32.mxu0 %v8150_v15  ;;  %3610 = vmatprep.mubr.f32.mxu1 %v8150_v15 }
 0x325   : > { %v7739_v51 = vpop.f32.mrb[176].mxu1 }
 0x326   : > { %v2610_v52 = vpop.f32.mrb[177].mxu1 }
 0x327   : > { %6575 = vmatmul.mubr.msk.f32.gmra.mrb[176].mxu0 %vm273_vm0, %v2570_v44  ;;  %6639 = vmatmul.mubr.msk.f32.gmra.mrb[240].mxu1 %vm273_vm0, %v2570_v44 }
 0x328   : > { %3167 = vmatprep.mubr.f32.mxu0 %v8150_v15  ;;  %3616 = vmatprep.mubr.f32.mxu1 %v8150_v15 }
 0x329   : > { %v9598_v53 = vpop.f32.mrb[178].mxu1 }
 0x32a   : > { %v2620_v54 = vpop.f32.mrb[179].mxu1 }
 0x32b   : > { %6576 = vmatmul.mubr.msk.f32.gmra.mrb[178].mxu0 %vm273_vm0, %v7727_v43  ;;  %6640 = vmatmul.mubr.msk.f32.gmra.mrb[242].mxu1 %vm273_vm0, %v7727_v43 }
 0x32c   : > { %3173 = vmatprep.mubr.f32.mxu0 %v8150_v15  ;;  %3622 = vmatprep.mubr.f32.mxu1 %v8150_v15 }
 0x32d   : > { %v9604_v55 = vpop.f32.mrb[180].mxu1 }
 0x32e   : > { %v2630_v56 = vpop.f32.mrb[181].mxu1 }
 0x32f   : > { %6577 = vmatmul.mubr.msk.f32.gmra.mrb[180].mxu0 %vm273_vm0, %v2580_v46  ;;  %6641 = vmatmul.mubr.msk.f32.gmra.mrb[244].mxu1 %vm273_vm0, %v2580_v46  ;;  %v4851_v46 = vld [vmem:[#allocation5 + $0x18] sm:$0xff] }
 0x330   : > { %3179 = vmatprep.mubr.f32.mxu0 %v8150_v15  ;;  %3628 = vmatprep.mubr.f32.mxu1 %v8150_v15 }
 0x331   : > { %v9610_v57 = vpop.f32.mrb[182].mxu1 }
 0x332   : > { %v9612_v58 = vpop.f32.mrb[183].mxu1 }
 0x333   : > { %6578 = vmatmul.mubr.msk.f32.gmra.mrb[182].mxu0 %vm273_vm0, %v7730_v45  ;;  %6642 = vmatmul.mubr.msk.f32.gmra.mrb[246].mxu1 %vm273_vm0, %v7730_v45 }
 0x334   : > { %3185 = vmatprep.mubr.f32.mxu0 %v8150_v15  ;;  %3634 = vmatprep.mubr.f32.mxu1 %v8150_v15 }
 0x335   : > { %v9618_v59 = vpop.f32.mrb[184].mxu1 }
 0x336   : > { %v9620_v60 = vpop.f32.mrb[185].mxu1 }
 0x337   : > { %6579 = vmatmul.mubr.msk.f32.gmra.mrb[184].mxu0 %vm273_vm0, %v2590_v48  ;;  %6643 = vmatmul.mubr.msk.f32.gmra.mrb[248].mxu1 %vm273_vm0, %v2590_v48 }
 0x338   : > { %3191 = vmatprep.mubr.f32.mxu0 %v8150_v15  ;;  %3640 = vmatprep.mubr.f32.mxu1 %v8150_v15 }
 0x339   : > { %v9626_v61 = vpop.f32.mrb[186].mxu1 }
 0x33a   : > { %v9628_v62 = vpop.f32.mrb[187].mxu1 }
 0x33b   : > { %6580 = vmatmul.mubr.msk.f32.gmra.mrb[186].mxu0 %vm273_vm0, %v7733_v47  ;;  %6644 = vmatmul.mubr.msk.f32.gmra.mrb[250].mxu1 %vm273_vm0, %v7733_v47  ;;  %v4855_v47 = vld [vmem:[#allocation5 + $0x38] sm:$0xff] }
 0x33c   : > { %3197 = vmatprep.mubr.f32.mxu0 %v8150_v15  ;;  %3646 = vmatprep.mubr.f32.mxu1 %v8150_v15  ;;  %v7941_v48 = vpack.c.bf16 %v4855_v47, %v4851_v46 }
 0x33d   : > { %v9634_v63 = vpop.f32.mrb[188].mxu1 }
 0x33e   : > { %v9636_v0 = vpop.f32.mrb[189].mxu1  ;;  %7942 = vmatprep.subr.bf16.mxu0 %v7941_v48  ;;  %v4211_v48 = vld [vmem:[%s11243_s0 + $0x38] sm:$0xff] }
 0x33f   : > { %6581 = vmatmul.mubr.msk.f32.gmra.mrb[188].mxu0 %vm273_vm0, %v2600_v50  ;;  %6645 = vmatmul.mubr.msk.f32.gmra.mrb[252].mxu1 %vm273_vm0, %v2600_v50 }
 0x340   : > { %3203 = vmatprep.mubr.f32.mxu0 %v8150_v15  ;;  %3652 = vmatprep.mubr.f32.mxu1 %v8150_v15 }
 0x341   : > { %v9642_v1 = vpop.f32.mrb[190].mxu1 }
 0x342   : > { %v9644_v2 = vpop.f32.mrb[191].mxu1 }
 0x343   : > { %6582 = vmatmul.mubr.msk.f32.gmra.mrb[190].mxu0 %vm273_vm0, %v7736_v49  ;;  %6646 = vmatmul.mubr.msk.f32.gmra.mrb[254].mxu1 %vm273_vm0, %v7736_v49 }
 0x344   : > { %3209 = vmatprep.mubr.f32.mxu0 %v8150_v15  ;;  %3658 = vmatprep.mubr.f32.mxu1 %v8150_v15 }
 0x345   : > { %v9650_v3 = vpop.f32.mrb[192].mxu1 }
 0x346   : > { %v9652_v4 = vpop.f32.mrb[193].mxu1 }
 0x347   : > { %6583 = vmatmul.mubr.msk.f32.gmra.mrb[192].mxu0 %vm273_vm0, %v2610_v52  ;;  %6647 = vmatmul.mubr.msk.f32.gmra.mrb[0].mxu1 %vm273_vm0, %v2610_v52 }
 0x348   : > { %3215 = vmatprep.mubr.f32.mxu0 %v8150_v15  ;;  %3664 = vmatprep.mubr.f32.mxu1 %v8150_v15 }
 0x349   : > { %v9658_v5 = vpop.f32.mrb[194].mxu1 }
 0x34a   : > { %v9660_v6 = vpop.f32.mrb[195].mxu1 }
 0x34b   : > { %6584 = vmatmul.mubr.msk.f32.gmra.mrb[194].mxu0 %vm273_vm0, %v7739_v51  ;;  %6648 = vmatmul.mubr.msk.f32.gmra.mrb[2].mxu1 %vm273_vm0, %v7739_v51 }
 0x34c   : > { %3221 = vmatprep.mubr.f32.mxu0 %v8150_v15  ;;  %3670 = vmatprep.mubr.f32.mxu1 %v8150_v15 }
 0x34d   : > { %v9666_v7 = vpop.f32.mrb[196].mxu1 }
 0x34e   : > { %v9668_v8 = vpop.f32.mrb[197].mxu1 }
 0x34f   : > { %6585 = vmatmul.mubr.msk.f32.gmra.mrb[196].mxu0 %vm273_vm0, %v2620_v54  ;;  %6649 = vmatmul.mubr.msk.f32.gmra.mrb[4].mxu1 %vm273_vm0, %v2620_v54 }
 0x350   : > { %3227 = vmatprep.mubr.f32.mxu0 %v8150_v15  ;;  %3676 = vmatprep.mubr.f32.mxu1 %v8150_v15 }
 0x351   : > { %v9674_v9 = vpop.f32.mrb[198].mxu1 }
 0x352   : > { %v9676_v10 = vpop.f32.mrb[199].mxu1 }
 0x353   : > { %6586 = vmatmul.mubr.msk.f32.gmra.mrb[198].mxu0 %vm273_vm0, %v9598_v53  ;;  %6650 = vmatmul.mubr.msk.f32.gmra.mrb[6].mxu1 %vm273_vm0, %v9598_v53 }
 0x354   : > { %3233 = vmatprep.mubr.f32.mxu0 %v8150_v15  ;;  %3682 = vmatprep.mubr.f32.mxu1 %v8150_v15 }
 0x355   : > { %v9684_v11 = vpop.f32.mrb[200].mxu1 }
 0x356   : > { %v9686_v12 = vpop.f32.mrb[201].mxu1 }
 0x357   : > { %6587 = vmatmul.mubr.msk.f32.gmra.mrb[200].mxu0 %vm273_vm0, %v2630_v56  ;;  %6651 = vmatmul.mubr.msk.f32.gmra.mrb[8].mxu1 %vm273_vm0, %v2630_v56 }
 0x358   : > { %3239 = vmatprep.mubr.f32.mxu0 %v8150_v15  ;;  %3688 = vmatprep.mubr.f32.mxu1 %v8150_v15 }
 0x359   : > { %v9692_v13 = vpop.f32.mrb[202].mxu1 }
 0x35a   : > { %v9694_v14 = vpop.f32.mrb[203].mxu1 }
 0x35b   : > { %6588 = vmatmul.mubr.msk.f32.gmra.mrb[202].mxu0 %vm273_vm0, %v9604_v55  ;;  %6652 = vmatmul.mubr.msk.f32.gmra.mrb[10].mxu1 %vm273_vm0, %v9604_v55 }
 0x35c   : > { %3245 = vmatprep.mubr.f32.mxu0 %v8150_v15  ;;  %3694 = vmatprep.mubr.f32.mxu1 %v8150_v15 }
 0x35d   : > { %v9702_v21 = vpop.f32.mrb[204].mxu1 }
 0x35e   : > { %v9704_v24 = vpop.f32.mrb[205].mxu1 }
 0x35f   : > { %6589 = vmatmul.mubr.msk.f32.gmra.mrb[204].mxu0 %vm273_vm0, %v9612_v58  ;;  %6653 = vmatmul.mubr.msk.f32.gmra.mrb[12].mxu1 %vm273_vm0, %v9612_v58 }
 0x360   : > { %3251 = vmatprep.mubr.f32.mxu0 %v8150_v15  ;;  %3700 = vmatprep.mubr.f32.mxu1 %v8150_v15 }
 0x361   : > { %v9712_v26 = vpop.f32.mrb[206].mxu1 }
 0x362   : > { %v9714_v27 = vpop.f32.mrb[207].mxu1 }
 0x363   : > { %6590 = vmatmul.mubr.msk.f32.gmra.mrb[206].mxu0 %vm273_vm0, %v9610_v57  ;;  %6654 = vmatmul.mubr.msk.f32.gmra.mrb[14].mxu1 %vm273_vm0, %v9610_v57 }
 0x364   : > { %3257 = vmatprep.mubr.f32.mxu0 %v8150_v15  ;;  %3706 = vmatprep.mubr.f32.mxu1 %v8150_v15 }
 0x365   : > { %v9722_v20 = vpop.f32.mrb[208].mxu1 }
 0x366   : > { %v9724_v28 = vpop.f32.mrb[209].mxu1 }
 0x367   : > { %6591 = vmatmul.mubr.msk.f32.gmra.mrb[208].mxu0 %vm273_vm0, %v9620_v60  ;;  %6655 = vmatmul.mubr.msk.f32.gmra.mrb[16].mxu1 %vm273_vm0, %v9620_v60 }
 0x368   : > { %3263 = vmatprep.mubr.f32.mxu0 %v8150_v15  ;;  %3712 = vmatprep.mubr.f32.mxu1 %v8150_v15 }
 0x369   : > { %v9732_v29 = vpop.f32.mrb[210].mxu1 }
 0x36a   : > { %v9734_v30 = vpop.f32.mrb[211].mxu1 }
 0x36b   : > { %6592 = vmatmul.mubr.msk.f32.gmra.mrb[210].mxu0 %vm273_vm0, %v9618_v59  ;;  %6656 = vmatmul.mubr.msk.f32.gmra.mrb[18].mxu1 %vm273_vm0, %v9618_v59 }
 0x36c   : > { %3269 = vmatprep.mubr.f32.mxu0 %v8150_v15  ;;  %3718 = vmatprep.mubr.f32.mxu1 %v8150_v15 }
 0x36d   : > { %v9742_v31 = vpop.f32.mrb[212].mxu1 }
 0x36e   : > { %v9744_v32 = vpop.f32.mrb[213].mxu1 }
 0x36f   : > { %6593 = vmatmul.mubr.msk.f32.gmra.mrb[212].mxu0 %vm273_vm0, %v9628_v62  ;;  %6657 = vmatmul.mubr.msk.f32.gmra.mrb[20].mxu1 %vm273_vm0, %v9628_v62 }
 0x370   : > { %3275 = vmatprep.mubr.f32.mxu0 %v8150_v15  ;;  %3724 = vmatprep.mubr.f32.mxu1 %v8150_v15 }
 0x371   : > { %v9752_v33 = vpop.f32.mrb[214].mxu1 }
 0x372   : > { %v9754_v34 = vpop.f32.mrb[215].mxu1 }
 0x373   : > { %6594 = vmatmul.mubr.msk.f32.gmra.mrb[214].mxu0 %vm273_vm0, %v9626_v61  ;;  %6658 = vmatmul.mubr.msk.f32.gmra.mrb[22].mxu1 %vm273_vm0, %v9626_v61 }
 0x374   : > { %3281 = vmatprep.mubr.f32.mxu0 %v8150_v15  ;;  %3730 = vmatprep.mubr.f32.mxu1 %v8150_v15 }
 0x375   : > { %v9762_v35 = vpop.f32.mrb[216].mxu1 }
 0x376   : > { %v9764_v36 = vpop.f32.mrb[217].mxu1 }
 0x377   : > { %6595 = vmatmul.mubr.msk.f32.gmra.mrb[216].mxu0 %vm273_vm0, %v9636_v0  ;;  %6659 = vmatmul.mubr.msk.f32.gmra.mrb[24].mxu1 %vm273_vm0, %v9636_v0 }
 0x378   : > { %3287 = vmatprep.mubr.f32.mxu0 %v8150_v15  ;;  %3736 = vmatprep.mubr.f32.mxu1 %v8150_v15 }
 0x379   : > { %v9772_v37 = vpop.f32.mrb[218].mxu1 }
 0x37a   : > { %v9774_v38 = vpop.f32.mrb[219].mxu1 }
 0x37b   : > { %6596 = vmatmul.mubr.msk.f32.gmra.mrb[218].mxu0 %vm273_vm0, %v9634_v63  ;;  %6660 = vmatmul.mubr.msk.f32.gmra.mrb[26].mxu1 %vm273_vm0, %v9634_v63 }
 0x37c   : > { %3293 = vmatprep.mubr.f32.mxu0 %v8150_v15  ;;  %3742 = vmatprep.mubr.f32.mxu1 %v8150_v15 }
 0x37d   : > { %v9782_v39 = vpop.f32.mrb[220].mxu1 }
 0x37e   : > { %v9784_v40 = vpop.f32.mrb[221].mxu1 }
 0x37f   : > { %6597 = vmatmul.mubr.msk.f32.gmra.mrb[220].mxu0 %vm273_vm0, %v9644_v2  ;;  %6661 = vmatmul.mubr.msk.f32.gmra.mrb[28].mxu1 %vm273_vm0, %v9644_v2 }
 0x380   : > { %3299 = vmatprep.mubr.f32.mxu0 %v8150_v15  ;;  %3748 = vmatprep.mubr.f32.mxu1 %v8150_v15 }
 0x381   : > { %v9792_v41 = vpop.f32.mrb[222].mxu1 }
 0x382   : > { %v9794_v17 = vpop.f32.mrb[223].mxu1 }
 0x383   : > { %6598 = vmatmul.mubr.msk.f32.gmra.mrb[222].mxu0 %vm273_vm0, %v9642_v1  ;;  %6662 = vmatmul.mubr.msk.f32.gmra.mrb[30].mxu1 %vm273_vm0, %v9642_v1 }
 0x384   : > { %3305 = vmatprep.mubr.f32.mxu0 %v8150_v15  ;;  %3754 = vmatprep.mubr.f32.mxu1 %v8150_v15 }
 0x387   : > { %6599 = vmatmul.mubr.msk.f32.gmra.mrb[224].mxu0 %vm273_vm0, %v9652_v4  ;;  %6663 = vmatmul.mubr.msk.f32.gmra.mrb[32].mxu1 %vm273_vm0, %v9652_v4 }
 0x388   : > { %3311 = vmatprep.mubr.f32.mxu0 %v8150_v15  ;;  %3760 = vmatprep.mubr.f32.mxu1 %v8150_v15 }
 0x38b   : > { %6600 = vmatmul.mubr.msk.f32.gmra.mrb[226].mxu0 %vm273_vm0, %v9650_v3  ;;  %6664 = vmatmul.mubr.msk.f32.gmra.mrb[34].mxu1 %vm273_vm0, %v9650_v3 }
 0x38c   : > { %3317 = vmatprep.mubr.f32.mxu0 %v8150_v15  ;;  %3766 = vmatprep.mubr.f32.mxu1 %v8150_v15 }
 0x38f   : > { %6601 = vmatmul.mubr.msk.f32.gmra.mrb[228].mxu0 %vm273_vm0, %v9660_v6  ;;  %6665 = vmatmul.mubr.msk.f32.gmra.mrb[36].mxu1 %vm273_vm0, %v9660_v6 }
 0x390   : > { %3323 = vmatprep.mubr.f32.mxu0 %v8150_v15  ;;  %3772 = vmatprep.mubr.f32.mxu1 %v8150_v15 }
 0x393   : > { %6602 = vmatmul.mubr.msk.f32.gmra.mrb[230].mxu0 %vm273_vm0, %v9658_v5  ;;  %6666 = vmatmul.mubr.msk.f32.gmra.mrb[38].mxu1 %vm273_vm0, %v9658_v5 }
 0x394   : > { %3329 = vmatprep.mubr.f32.mxu0 %v8150_v15  ;;  %3778 = vmatprep.mubr.f32.mxu1 %v8150_v15 }
 0x397   : > { %6603 = vmatmul.mubr.msk.f32.gmra.mrb[232].mxu0 %vm273_vm0, %v9668_v8  ;;  %6667 = vmatmul.mubr.msk.f32.gmra.mrb[40].mxu1 %vm273_vm0, %v9668_v8 }
 0x398   : > { %3335 = vmatprep.mubr.f32.mxu0 %v8150_v15  ;;  %3784 = vmatprep.mubr.f32.mxu1 %v8150_v15 }
 0x39b   : > { %6604 = vmatmul.mubr.msk.f32.gmra.mrb[234].mxu0 %vm273_vm0, %v9666_v7  ;;  %6668 = vmatmul.mubr.msk.f32.gmra.mrb[42].mxu1 %vm273_vm0, %v9666_v7 }
 0x39c   : > { %3341 = vmatprep.mubr.f32.mxu0 %v8150_v15  ;;  %3790 = vmatprep.mubr.f32.mxu1 %v8150_v15 }
 0x39f   : > { %6605 = vmatmul.mubr.msk.f32.gmra.mrb[236].mxu0 %vm273_vm0, %v9676_v10  ;;  %6669 = vmatmul.mubr.msk.f32.gmra.mrb[44].mxu1 %vm273_vm0, %v9676_v10 }
 0x3a0   : > { %3347 = vmatprep.mubr.f32.mxu0 %v8150_v15  ;;  %3796 = vmatprep.mubr.f32.mxu1 %v8150_v15 }
 0x3a3   : > { %6606 = vmatmul.mubr.msk.f32.gmra.mrb[238].mxu0 %vm273_vm0, %v9674_v9  ;;  %6670 = vmatmul.mubr.msk.f32.gmra.mrb[46].mxu1 %vm273_vm0, %v9674_v9 }
 0x3a4   : > { %3353 = vmatprep.mubr.f32.mxu0 %v8150_v15  ;;  %3802 = vmatprep.mubr.f32.mxu1 %v8150_v15 }
 0x3a7   : > { %6607 = vmatmul.mubr.msk.f32.gmra.mrb[240].mxu0 %vm273_vm0, %v9686_v12  ;;  %6671 = vmatmul.mubr.msk.f32.gmra.mrb[48].mxu1 %vm273_vm0, %v9686_v12 }
 0x3a8   : > { %3359 = vmatprep.mubr.f32.mxu0 %v8150_v15  ;;  %3808 = vmatprep.mubr.f32.mxu1 %v8150_v15 }
 0x3ab   : > { %6608 = vmatmul.mubr.msk.f32.gmra.mrb[242].mxu0 %vm273_vm0, %v9684_v11  ;;  %6672 = vmatmul.mubr.msk.f32.gmra.mrb[50].mxu1 %vm273_vm0, %v9684_v11 }
 0x3ac   : > { %3365 = vmatprep.mubr.f32.mxu0 %v8150_v15  ;;  %3814 = vmatprep.mubr.f32.mxu1 %v8150_v15 }
 0x3af   : > { %6609 = vmatmul.mubr.msk.f32.gmra.mrb[244].mxu0 %vm273_vm0, %v9694_v14  ;;  %6673 = vmatmul.mubr.msk.f32.gmra.mrb[52].mxu1 %vm273_vm0, %v9694_v14 }
 0x3b0   : > { %3371 = vmatprep.mubr.f32.mxu0 %v8150_v15  ;;  %3820 = vmatprep.mubr.f32.mxu1 %v8150_v15 }
 0x3b3   : > { %6610 = vmatmul.mubr.msk.f32.gmra.mrb[246].mxu0 %vm273_vm0, %v9692_v13  ;;  %6674 = vmatmul.mubr.msk.f32.gmra.mrb[54].mxu1 %vm273_vm0, %v9692_v13 }
 0x3b4   : > { %3377 = vmatprep.mubr.f32.mxu0 %v8150_v15  ;;  %3826 = vmatprep.mubr.f32.mxu1 %v8150_v15 }
 0x3b7   : > { %6611 = vmatmul.mubr.msk.f32.gmra.mrb[248].mxu0 %vm273_vm0, %v9704_v24  ;;  %6675 = vmatmul.mubr.msk.f32.gmra.mrb[56].mxu1 %vm273_vm0, %v9704_v24  ;;  %v4204_v24 = vld [vmem:[%s11243_s0] sm:$0xff] }
 0x3b8   : > { %3383 = vmatprep.mubr.f32.mxu0 %v8150_v15  ;;  %3832 = vmatprep.mubr.f32.mxu1 %v8150_v15 }
 0x3bb   : > { %6612 = vmatmul.mubr.msk.f32.gmra.mrb[250].mxu0 %vm273_vm0, %v9702_v21  ;;  %6676 = vmatmul.mubr.msk.f32.gmra.mrb[58].mxu1 %vm273_vm0, %v9702_v21 }
 0x3bc   : > { %3389 = vmatprep.mubr.f32.mxu0 %v8150_v15  ;;  %3838 = vmatprep.mubr.f32.mxu1 %v8150_v15 }
 0x3bf   : > { %6613 = vmatmul.mubr.msk.f32.gmra.mrb[252].mxu0 %vm273_vm0, %v9714_v27  ;;  %6677 = vmatmul.mubr.msk.f32.gmra.mrb[60].mxu1 %vm273_vm0, %v9714_v27 }
 0x3c0   : > { %3395 = vmatprep.mubr.f32.mxu0 %v8150_v15  ;;  %3844 = vmatprep.mubr.f32.mxu1 %v8150_v15 }
 0x3c3   : > { %6614 = vmatmul.mubr.msk.f32.gmra.mrb[254].mxu0 %vm273_vm0, %v9712_v26  ;;  %6678 = vmatmul.mubr.msk.f32.gmra.mrb[62].mxu1 %vm273_vm0, %v9712_v26  ;;  %v4854_v26 = vld [vmem:[#allocation5 + $0x30] sm:$0xff] }
 0x3c4   : > { %3401 = vmatprep.mubr.f32.mxu0 %v8150_v15  ;;  %3850 = vmatprep.mubr.f32.mxu1 %v8150_v15 }
 0x3c7   : > { %6615 = vmatmul.mubr.msk.f32.gmra.mrb[0].mxu0 %vm273_vm0, %v9724_v28  ;;  %6679 = vmatmul.mubr.msk.f32.gmra.mrb[64].mxu1 %vm273_vm0, %v9724_v28 }
 0x3c8   : > { %3407 = vmatprep.mubr.f32.mxu0 %v8150_v15  ;;  %3856 = vmatprep.mubr.f32.mxu1 %v8150_v15 }
 0x3cb   : > { %6616 = vmatmul.mubr.msk.f32.gmra.mrb[2].mxu0 %vm273_vm0, %v9722_v20  ;;  %6680 = vmatmul.mubr.msk.f32.gmra.mrb[66].mxu1 %vm273_vm0, %v9722_v20 }
 0x3cc   : > { %3413 = vmatprep.mubr.f32.mxu0 %v8150_v15  ;;  %3862 = vmatprep.mubr.f32.mxu1 %v8150_v15 }
 0x3cf   : > { %6617 = vmatmul.mubr.msk.f32.gmra.mrb[4].mxu0 %vm273_vm0, %v9734_v30  ;;  %6681 = vmatmul.mubr.msk.f32.gmra.mrb[68].mxu1 %vm273_vm0, %v9734_v30  ;;  %v4205_v30 = vld [vmem:[%s11243_s0 + $0x8] sm:$0xff] }
 0x3d0   : > { %3419 = vmatprep.mubr.f32.mxu0 %v8150_v15  ;;  %3868 = vmatprep.mubr.f32.mxu1 %v8150_v15 }
 0x3d3   : > { %6618 = vmatmul.mubr.msk.f32.gmra.mrb[6].mxu0 %vm273_vm0, %v9732_v29  ;;  %6682 = vmatmul.mubr.msk.f32.gmra.mrb[70].mxu1 %vm273_vm0, %v9732_v29 }
 0x3d4   : > { %3425 = vmatprep.mubr.f32.mxu0 %v8150_v15  ;;  %3874 = vmatprep.mubr.f32.mxu1 %v8150_v15 }
 0x3d7   : > { %6619 = vmatmul.mubr.msk.f32.gmra.mrb[8].mxu0 %vm273_vm0, %v9744_v32  ;;  %6683 = vmatmul.mubr.msk.f32.gmra.mrb[72].mxu1 %vm273_vm0, %v9744_v32  ;;  %v4206_v32 = vld [vmem:[%s11243_s0 + $0x10] sm:$0xff] }
 0x3d8   : > { %3431 = vmatprep.mubr.f32.mxu0 %v8150_v15  ;;  %3880 = vmatprep.mubr.f32.mxu1 %v8150_v15 }
 0x3da   : > { %v3115_v42 = vpop.f32.mrb[160].mxu0  ;;  %v3564_v43 = vpop.f32.mrb[224].mxu1 }
 0x3db   : > { %6695 = vst [vmem:[%s8976_s4 + $0x800] sm:$0xff] %v3115_v42  ;;  %6697 = vst [vmem:[%s8976_s4 + $0x810] sm:$0xff] %v3564_v43  ;;  %v3117_v44 = vpop.f32.mrb[161].mxu0  ;;  %6620 = vmatmul.mubr.msk.f32.gmra.mrb[10].mxu0 %vm273_vm0, %v9742_v31  ;;  %v3566_v45 = vpop.f32.mrb[225].mxu1  ;;  %6684 = vmatmul.mubr.msk.f32.gmra.mrb[74].mxu1 %vm273_vm0, %v9742_v31  ;;  %v7943_v31 = vpack.c.bf16 %v4854_v26, %v4850_v25  ;;  %v4209_v42 = vld [vmem:[%s11243_s0 + $0x28] sm:$0xff]  ;;  %v4210_v43 = vld [vmem:[%s11243_s0 + $0x30] sm:$0xff] }
 0x3dc   : > { %6696 = vst [vmem:[%s8976_s4 + $0x808] sm:$0xff] %v3117_v44  ;;  %6698 = vst [vmem:[%s8976_s4 + $0x818] sm:$0xff] %v3566_v45  ;;  %3437 = vmatprep.mubr.f32.mxu0 %v8150_v15  ;;  %3886 = vmatprep.mubr.f32.mxu1 %v8150_v15 }
 0x3de   : > { %v3121_v49 = vpop.f32.mrb[162].mxu0  ;;  %v3570_v50 = vpop.f32.mrb[226].mxu1 }
 0x3df   : > { %6699 = vst [vmem:[%s8976_s4 + $0x820] sm:$0xff] %v3121_v49  ;;  %6701 = vst [vmem:[%s8976_s4 + $0x830] sm:$0xff] %v3570_v50  ;;  %v3123_v51 = vpop.f32.mrb[163].mxu0  ;;  %6621 = vmatmul.mubr.msk.f32.gmra.mrb[12].mxu0 %vm273_vm0, %v9754_v34  ;;  %v3572_v52 = vpop.f32.mrb[227].mxu1  ;;  %6685 = vmatmul.mubr.msk.f32.gmra.mrb[76].mxu1 %vm273_vm0, %v9754_v34  ;;  %v4212_v49 = vld [vmem:[%s11243_s0 + $0x40] sm:$0xff] }
 0x3e0   : > { %6700 = vst [vmem:[%s8976_s4 + $0x828] sm:$0xff] %v3123_v51  ;;  %6702 = vst [vmem:[%s8976_s4 + $0x838] sm:$0xff] %v3572_v52  ;;  %3443 = vmatprep.mubr.f32.mxu0 %v8150_v15  ;;  %3892 = vmatprep.mubr.f32.mxu1 %v8150_v15 }
 0x3e2   : > { %v3127_v53 = vpop.f32.mrb[164].mxu0  ;;  %v3576_v54 = vpop.f32.mrb[228].mxu1 }
 0x3e3   : > { %6703 = vst [vmem:[%s8976_s4 + $0x840] sm:$0xff] %v3127_v53  ;;  %6705 = vst [vmem:[%s8976_s4 + $0x850] sm:$0xff] %v3576_v54  ;;  %v3129_v55 = vpop.f32.mrb[165].mxu0  ;;  %6622 = vmatmul.mubr.msk.f32.gmra.mrb[14].mxu0 %vm273_vm0, %v9752_v33  ;;  %v3578_v56 = vpop.f32.mrb[229].mxu1  ;;  %6686 = vmatmul.mubr.msk.f32.gmra.mrb[78].mxu1 %vm273_vm0, %v9752_v33  ;;  %v4213_v54 = vld [vmem:[%s11243_s0 + $0x48] sm:$0xff] }
 0x3e4   : > { %6704 = vst [vmem:[%s8976_s4 + $0x848] sm:$0xff] %v3129_v55  ;;  %6706 = vst [vmem:[%s8976_s4 + $0x858] sm:$0xff] %v3578_v56  ;;  %3449 = vmatprep.mubr.f32.mxu0 %v8150_v15  ;;  %3898 = vmatprep.mubr.f32.mxu1 %v8150_v15  ;;  %v4214_v55 = vld [vmem:[%s11243_s0 + $0x50] sm:$0xff] }
 0x3e6   : > { %v3133_v57 = vpop.f32.mrb[166].mxu0  ;;  %v3582_v58 = vpop.f32.mrb[230].mxu1 }
 0x3e7   : > { %6707 = vst [vmem:[%s8976_s4 + $0x860] sm:$0xff] %v3133_v57  ;;  %6709 = vst [vmem:[%s8976_s4 + $0x870] sm:$0xff] %v3582_v58  ;;  %v3135_v59 = vpop.f32.mrb[167].mxu0  ;;  %6623 = vmatmul.mubr.msk.f32.gmra.mrb[16].mxu0 %vm273_vm0, %v9764_v36  ;;  %v3584_v60 = vpop.f32.mrb[231].mxu1  ;;  %6687 = vmatmul.mubr.msk.f32.gmra.mrb[80].mxu1 %vm273_vm0, %v9764_v36 }
 0x3e8   : > { %6708 = vst [vmem:[%s8976_s4 + $0x868] sm:$0xff] %v3135_v59  ;;  %6710 = vst [vmem:[%s8976_s4 + $0x878] sm:$0xff] %v3584_v60  ;;  %3455 = vmatprep.mubr.f32.mxu0 %v8150_v15  ;;  %3904 = vmatprep.mubr.f32.mxu1 %v8150_v15  ;;  %v4215_v60 = vld [vmem:[%s11243_s0 + $0x58] sm:$0xff] }
 0x3ea   : > { %v3139_v61 = vpop.f32.mrb[168].mxu0  ;;  %v3588_v62 = vpop.f32.mrb[232].mxu1 }
 0x3eb   : > { %6711 = vst [vmem:[%s8976_s4 + $0x880] sm:$0xff] %v3139_v61  ;;  %6713 = vst [vmem:[%s8976_s4 + $0x890] sm:$0xff] %v3588_v62  ;;  %v3141_v63 = vpop.f32.mrb[169].mxu0  ;;  %6624 = vmatmul.mubr.msk.f32.gmra.mrb[18].mxu0 %vm273_vm0, %v9762_v35  ;;  %v3590_v0 = vpop.f32.mrb[233].mxu1  ;;  %6688 = vmatmul.mubr.msk.f32.gmra.mrb[82].mxu1 %vm273_vm0, %v9762_v35  ;;  %v4216_v61 = vld [vmem:[%s11243_s0 + $0x60] sm:$0xff] }
 0x3ec   : > { %6712 = vst [vmem:[%s8976_s4 + $0x888] sm:$0xff] %v3141_v63  ;;  %6714 = vst [vmem:[%s8976_s4 + $0x898] sm:$0xff] %v3590_v0  ;;  %3461 = vmatprep.mubr.f32.mxu0 %v8150_v15  ;;  %3910 = vmatprep.mubr.f32.mxu1 %v8150_v15 }
 0x3ee   : > { %v3145_v1 = vpop.f32.mrb[170].mxu0  ;;  %v3594_v2 = vpop.f32.mrb[234].mxu1 }
 0x3ef   : > { %6715 = vst [vmem:[%s8976_s4 + $0x8a0] sm:$0xff] %v3145_v1  ;;  %6717 = vst [vmem:[%s8976_s4 + $0x8b0] sm:$0xff] %v3594_v2  ;;  %v3147_v3 = vpop.f32.mrb[171].mxu0  ;;  %6625 = vmatmul.mubr.msk.f32.gmra.mrb[20].mxu0 %vm273_vm0, %v9774_v38  ;;  %v3596_v4 = vpop.f32.mrb[235].mxu1  ;;  %6689 = vmatmul.mubr.msk.f32.gmra.mrb[84].mxu1 %vm273_vm0, %v9774_v38  ;;  %v4208_v38 = vld [vmem:[%s11243_s0 + $0x20] sm:$0xff]  ;;  %v4217_v2 = vld [vmem:[%s11243_s0 + $0x68] sm:$0xff] }
 0x3f0   : > { %6716 = vst [vmem:[%s8976_s4 + $0x8a8] sm:$0xff] %v3147_v3  ;;  %6718 = vst [vmem:[%s8976_s4 + $0x8b8] sm:$0xff] %v3596_v4  ;;  %3467 = vmatprep.mubr.f32.mxu0 %v8150_v15  ;;  %3916 = vmatprep.mubr.f32.mxu1 %v8150_v15  ;;  %v4218_v3 = vld [vmem:[%s11243_s0 + $0x70] sm:$0xff] }
 0x3f2   : > { %v3151_v5 = vpop.f32.mrb[172].mxu0  ;;  %v3600_v6 = vpop.f32.mrb[236].mxu1 }
 0x3f3   : > { %6719 = vst [vmem:[%s8976_s4 + $0x8c0] sm:$0xff] %v3151_v5  ;;  %6721 = vst [vmem:[%s8976_s4 + $0x8d0] sm:$0xff] %v3600_v6  ;;  %v3153_v7 = vpop.f32.mrb[173].mxu0  ;;  %6626 = vmatmul.mubr.msk.f32.gmra.mrb[22].mxu0 %vm273_vm0, %v9772_v37  ;;  %v3602_v8 = vpop.f32.mrb[237].mxu1  ;;  %6690 = vmatmul.mubr.msk.f32.gmra.mrb[86].mxu1 %vm273_vm0, %v9772_v37  ;;  %v4207_v37 = vld [vmem:[%s11243_s0 + $0x18] sm:$0xff] }
 0x3f4   : > { %6720 = vst [vmem:[%s8976_s4 + $0x8c8] sm:$0xff] %v3153_v7  ;;  %6722 = vst [vmem:[%s8976_s4 + $0x8d8] sm:$0xff] %v3602_v8  ;;  %3473 = vmatprep.mubr.f32.mxu0 %v8150_v15  ;;  %3922 = vmatprep.mubr.f32.mxu1 %v8150_v15  ;;  %v4219_v8 = vld [vmem:[%s11243_s0 + $0x78] sm:$0xff] }
 0x3f6   : > { %v3157_v9 = vpop.f32.mrb[174].mxu0  ;;  %v3606_v10 = vpop.f32.mrb[238].mxu1 }
 0x3f7   : > { %6723 = vst [vmem:[%s8976_s4 + $0x8e0] sm:$0xff] %v3157_v9  ;;  %6725 = vst [vmem:[%s8976_s4 + $0x8f0] sm:$0xff] %v3606_v10  ;;  %v3159_v11 = vpop.f32.mrb[175].mxu0  ;;  %6627 = vmatmul.mubr.msk.f32.gmra.mrb[24].mxu0 %vm273_vm0, %v9784_v40  ;;  %v3608_v12 = vpop.f32.mrb[239].mxu1  ;;  %6691 = vmatmul.mubr.msk.f32.gmra.mrb[88].mxu1 %vm273_vm0, %v9784_v40  ;;  %v4220_v9 = vld [vmem:[%s11243_s0 + $0x80] sm:$0xff] }
 0x3f8   : > { %6724 = vst [vmem:[%s8976_s4 + $0x8e8] sm:$0xff] %v3159_v11  ;;  %6726 = vst [vmem:[%s8976_s4 + $0x8f8] sm:$0xff] %v3608_v12  ;;  %3479 = vmatprep.mubr.f32.mxu0 %v8150_v15  ;;  %3928 = vmatprep.mubr.f32.mxu1 %v8150_v15 }
 0x3fa   : > { %v3163_v13 = vpop.f32.mrb[176].mxu0  ;;  %v3612_v14 = vpop.f32.mrb[240].mxu1 }
 0x3fb   : > { %6727 = vst [vmem:[%s8976_s4 + $0x900] sm:$0xff] %v3163_v13  ;;  %6729 = vst [vmem:[%s8976_s4 + $0x910] sm:$0xff] %v3612_v14  ;;  %v3165_v16 = vpop.f32.mrb[177].mxu0  ;;  %6628 = vmatmul.mubr.msk.f32.gmra.mrb[26].mxu0 %vm273_vm0, %v9782_v39  ;;  %v3614_v18 = vpop.f32.mrb[241].mxu1  ;;  %6692 = vmatmul.mubr.msk.f32.gmra.mrb[90].mxu1 %vm273_vm0, %v9782_v39  ;;  %v4221_v14 = vld [vmem:[%s11243_s0 + $0x88] sm:$0xff] }
 0x3fc   : > { %6728 = vst [vmem:[%s8976_s4 + $0x908] sm:$0xff] %v3165_v16  ;;  %6730 = vst [vmem:[%s8976_s4 + $0x918] sm:$0xff] %v3614_v18  ;;  %3485 = vmatprep.mubr.f32.mxu0 %v8150_v15  ;;  %3934 = vmatprep.mubr.f32.mxu1 %v8150_v15  ;;  %v4222_v16 = vld [vmem:[%s11243_s0 + $0x90] sm:$0xff] }
 0x3fe   : > { %v3169_v19 = vpop.f32.mrb[178].mxu0  ;;  %v3618_v21 = vpop.f32.mrb[242].mxu1 }
 0x3ff   : > { %6731 = vst [vmem:[%s8976_s4 + $0x920] sm:$0xff] %v3169_v19  ;;  %6733 = vst [vmem:[%s8976_s4 + $0x930] sm:$0xff] %v3618_v21  ;;  %v3171_v22 = vpop.f32.mrb[179].mxu0  ;;  %6629 = vmatmul.mubr.msk.f32.gmra.mrb[28].mxu0 %vm273_vm0, %v9794_v17  ;;  %v3620_v23 = vpop.f32.mrb[243].mxu1  ;;  %6693 = vmatmul.mubr.msk.f32.gmra.mrb[92].mxu1 %vm273_vm0, %v9794_v17 }
 0x400   : > { %6732 = vst [vmem:[%s8976_s4 + $0x928] sm:$0xff] %v3171_v22  ;;  %6734 = vst [vmem:[%s8976_s4 + $0x938] sm:$0xff] %v3620_v23  ;;  %3491 = vmatprep.mubr.f32.mxu0 %v8150_v15  ;;  %3940 = vmatprep.mubr.f32.mxu1 %v8150_v15  ;;  %v4223_v23 = vld [vmem:[%s11243_s0 + $0x98] sm:$0xff] }
 0x402   : > { %v3175_v27 = vpop.f32.mrb[180].mxu0  ;;  %v3624_v20 = vpop.f32.mrb[244].mxu1 }
 0x403   : > { %6735 = vst [vmem:[%s8976_s4 + $0x940] sm:$0xff] %v3175_v27  ;;  %6737 = vst [vmem:[%s8976_s4 + $0x950] sm:$0xff] %v3624_v20  ;;  %v3177_v28 = vpop.f32.mrb[181].mxu0  ;;  %6630 = vmatmul.mubr.msk.f32.gmra.mrb[30].mxu0 %vm273_vm0, %v9792_v41  ;;  %v3626_v29 = vpop.f32.mrb[245].mxu1  ;;  %6694 = vmatmul.mubr.msk.f32.gmra.mrb[94].mxu1 %vm273_vm0, %v9792_v41 }
 0x404   : > { %6736 = vst [vmem:[%s8976_s4 + $0x948] sm:$0xff] %v3177_v28  ;;  %6738 = vst [vmem:[%s8976_s4 + $0x958] sm:$0xff] %v3626_v29  ;;  %7813 = vmatprep.mubr.msk.f32.mxu0 %vm273_vm0, %v4204_v24  ;;  %5112 = vmatprep.mubr.f32.mxu1 %v8150_v15  ;;  %v4224_v24 = vld [vmem:[%s11243_s0 + $0xa0] sm:$0xff]  ;;  %v4225_v28 = vld [vmem:[%s11243_s0 + $0xa8] sm:$0xff] }
 0x405   : > { %v4226_v29 = vld [vmem:[%s11243_s0 + $0xb0] sm:$0xff] }
 0x406   : > { %v3181_v33 = vpop.f32.mrb[182].mxu0  ;;  %v3630_v34 = vpop.f32.mrb[246].mxu1 }
 0x407   : > { %6739 = vst [vmem:[%s8976_s4 + $0x960] sm:$0xff] %v3181_v33  ;;  %6741 = vst [vmem:[%s8976_s4 + $0x970] sm:$0xff] %v3630_v34  ;;  %v3183_v35 = vpop.f32.mrb[183].mxu0  ;;  %v3632_v36 = vpop.f32.mrb[247].mxu1  ;;  %7814 = vmatmul.mubr.msk.f32.vlgmr.msra.gmra.mrb[32].mxu0 %vm273_vm0, %v4205_v30  ;;  %v4227_v34 = vld [vmem:[%s11243_s0 + $0xb8] sm:$0xff] }
 0x408   : > { %6740 = vst [vmem:[%s8976_s4 + $0x968] sm:$0xff] %v3183_v35  ;;  %6742 = vst [vmem:[%s8976_s4 + $0x978] sm:$0xff] %v3632_v36  ;;  %7816 = vmatprep.mubr.msk.f32.mxu0 %vm273_vm0, %v4206_v32  ;;  %7944 = vmatpush1.bf16.msra.mxu0 %v7943_v31  ;;  %v4228_v35 = vld [vmem:[%s11243_s0 + $0xc0] sm:$0xff] }
 0x40a   : > { %v3187_v39 = vpop.f32.mrb[184].mxu0  ;;  %v3636_v40 = vpop.f32.mrb[248].mxu1 }
 0x40b   : > { %6743 = vst [vmem:[%s8976_s4 + $0x980] sm:$0xff] %v3187_v39  ;;  %6745 = vst [vmem:[%s8976_s4 + $0x990] sm:$0xff] %v3636_v40  ;;  %v3189_v41 = vpop.f32.mrb[185].mxu0  ;;  %v3638_v17 = vpop.f32.mrb[249].mxu1  ;;  %7817 = vmatmul.mubr.msk.f32.gmra.mrb[34].mxu0 %vm273_vm0, %v4207_v37  ;;  %v4229_v40 = vld [vmem:[%s11243_s0 + $0xc8] sm:$0xff] }
 0x40c   : > { %6744 = vst [vmem:[%s8976_s4 + $0x988] sm:$0xff] %v3189_v41  ;;  %6746 = vst [vmem:[%s8976_s4 + $0x998] sm:$0xff] %v3638_v17  ;;  %7819 = vmatprep.mubr.msk.f32.mxu0 %vm273_vm0, %v4208_v38  ;;  %v4230_v41 = vld [vmem:[%s11243_s0 + $0xd0] sm:$0xff] }
 0x40e   : > { %v3193_v44 = vpop.f32.mrb[186].mxu0  ;;  %v3642_v45 = vpop.f32.mrb[250].mxu1 }
 0x40f   : > { %6747 = vst [vmem:[%s8976_s4 + $0x9a0] sm:$0xff] %v3193_v44  ;;  %6749 = vst [vmem:[%s8976_s4 + $0x9b0] sm:$0xff] %v3642_v45  ;;  %v3195_v46 = vpop.f32.mrb[187].mxu0  ;;  %v3644_v47 = vpop.f32.mrb[251].mxu1  ;;  %7820 = vmatmul.mubr.msk.f32.gmra.mrb[36].mxu0 %vm273_vm0, %v4209_v42  ;;  %v4231_v45 = vld [vmem:[%s11243_s0 + $0xd8] sm:$0xff] }
 0x410   : > { %6748 = vst [vmem:[%s8976_s4 + $0x9a8] sm:$0xff] %v3195_v46  ;;  %6750 = vst [vmem:[%s8976_s4 + $0x9b8] sm:$0xff] %v3644_v47  ;;  %7822 = vmatprep.mubr.msk.f32.mxu0 %vm273_vm0, %v4210_v43  ;;  %v4232_v46 = vld [vmem:[%s11243_s0 + $0xe0] sm:$0xff] }
 0x412   : > { %v3199_v50 = vpop.f32.mrb[188].mxu0  ;;  %v3648_v51 = vpop.f32.mrb[252].mxu1 }
 0x413   : > { %6751 = vst [vmem:[%s8976_s4 + $0x9c0] sm:$0xff] %v3199_v50  ;;  %6753 = vst [vmem:[%s8976_s4 + $0x9d0] sm:$0xff] %v3648_v51  ;;  %v3201_v52 = vpop.f32.mrb[189].mxu0  ;;  %v3650_v53 = vpop.f32.mrb[253].mxu1  ;;  %7823 = vmatmul.mubr.msk.f32.gmra.mrb[38].mxu0 %vm273_vm0, %v4211_v48  ;;  %v4233_v51 = vld [vmem:[%s11243_s0 + $0xe8] sm:$0xff] }
 0x414   : > { %6752 = vst [vmem:[%s8976_s4 + $0x9c8] sm:$0xff] %v3201_v52  ;;  %6754 = vst [vmem:[%s8976_s4 + $0x9d8] sm:$0xff] %v3650_v53  ;;  %7825 = vmatprep.mubr.msk.f32.mxu0 %vm273_vm0, %v4212_v49  ;;  %v4234_v52 = vld [vmem:[%s11243_s0 + $0xf0] sm:$0xff] }
 0x416   : > { %v3205_v56 = vpop.f32.mrb[190].mxu0  ;;  %v3654_v57 = vpop.f32.mrb[254].mxu1 }
 0x417   : > { %6755 = vst [vmem:[%s8976_s4 + $0x9e0] sm:$0xff] %v3205_v56  ;;  %6757 = vst [vmem:[%s8976_s4 + $0x9f0] sm:$0xff] %v3654_v57  ;;  %v3207_v58 = vpop.f32.mrb[191].mxu0  ;;  %v3656_v59 = vpop.f32.mrb[255].mxu1  ;;  %7826 = vmatmul.mubr.msk.f32.gmra.mrb[40].mxu0 %vm273_vm0, %v4213_v54  ;;  %v4235_v57 = vld [vmem:[%s11243_s0 + $0xf8] sm:$0xff] }
 0x418   : > { %6756 = vst [vmem:[%s8976_s4 + $0x9e8] sm:$0xff] %v3207_v58  ;;  %6758 = vst [vmem:[%s8976_s4 + $0x9f8] sm:$0xff] %v3656_v59  ;;  %7828 = vmatprep.mubr.msk.f32.mxu0 %vm273_vm0, %v4214_v55  ;;  %v4236_v58 = vld [vmem:[%s11243_s0 + $0x100] sm:$0xff] }
 0x41a   : > { %v3211_v62 = vpop.f32.mrb[192].mxu0  ;;  %v3660_v63 = vpop.f32.mrb[0].mxu1 }
 0x41b   : > { %6759 = vst [vmem:[%s8976_s4 + $0xa00] sm:$0xff] %v3211_v62  ;;  %6761 = vst [vmem:[%s8976_s4 + $0xa10] sm:$0xff] %v3660_v63  ;;  %v3213_v0 = vpop.f32.mrb[193].mxu0  ;;  %v3662_v1 = vpop.f32.mrb[1].mxu1  ;;  %7829 = vmatmul.mubr.msk.f32.gmra.mrb[42].mxu0 %vm273_vm0, %v4215_v60  ;;  %v4237_v63 = vld [vmem:[%s11243_s0 + $0x108] sm:$0xff] }
 0x41c   : > { %6760 = vst [vmem:[%s8976_s4 + $0xa08] sm:$0xff] %v3213_v0  ;;  %6762 = vst [vmem:[%s8976_s4 + $0xa18] sm:$0xff] %v3662_v1  ;;  %7831 = vmatprep.mubr.msk.f32.mxu0 %vm273_vm0, %v4216_v61  ;;  %v4238_v0 = vld [vmem:[%s11243_s0 + $0x110] sm:$0xff] }
 0x41e   : > { %v3217_v4 = vpop.f32.mrb[194].mxu0  ;;  %v3666_v5 = vpop.f32.mrb[2].mxu1 }
 0x41f   : > { %6763 = vst [vmem:[%s8976_s4 + $0xa20] sm:$0xff] %v3217_v4  ;;  %6765 = vst [vmem:[%s8976_s4 + $0xa30] sm:$0xff] %v3666_v5  ;;  %v3219_v6 = vpop.f32.mrb[195].mxu0  ;;  %v3668_v7 = vpop.f32.mrb[3].mxu1  ;;  %7832 = vmatmul.mubr.msk.f32.gmra.mrb[44].mxu0 %vm273_vm0, %v4217_v2  ;;  %v4239_v5 = vld [vmem:[%s11243_s0 + $0x118] sm:$0xff] }
 0x420   : > { %6764 = vst [vmem:[%s8976_s4 + $0xa28] sm:$0xff] %v3219_v6  ;;  %6766 = vst [vmem:[%s8976_s4 + $0xa38] sm:$0xff] %v3668_v7  ;;  %7834 = vmatprep.mubr.msk.f32.mxu0 %vm273_vm0, %v4218_v3  ;;  %v4240_v6 = vld [vmem:[%s11243_s0 + $0x120] sm:$0xff] }
 0x422   : > { %v3223_v10 = vpop.f32.mrb[196].mxu0  ;;  %v3672_v11 = vpop.f32.mrb[4].mxu1 }
 0x423   : > { %6767 = vst [vmem:[%s8976_s4 + $0xa40] sm:$0xff] %v3223_v10  ;;  %6769 = vst [vmem:[%s8976_s4 + $0xa50] sm:$0xff] %v3672_v11  ;;  %v3225_v12 = vpop.f32.mrb[197].mxu0  ;;  %v3674_v13 = vpop.f32.mrb[5].mxu1  ;;  %7835 = vmatmul.mubr.msk.f32.gmra.mrb[46].mxu0 %vm273_vm0, %v4219_v8  ;;  %v4241_v11 = vld [vmem:[%s11243_s0 + $0x128] sm:$0xff] }
 0x424   : > { %6768 = vst [vmem:[%s8976_s4 + $0xa48] sm:$0xff] %v3225_v12  ;;  %6770 = vst [vmem:[%s8976_s4 + $0xa58] sm:$0xff] %v3674_v13  ;;  %7837 = vmatprep.mubr.msk.f32.mxu0 %vm273_vm0, %v4220_v9  ;;  %v4242_v12 = vld [vmem:[%s11243_s0 + $0x130] sm:$0xff] }
 0x426   : > { %v3229_v18 = vpop.f32.mrb[198].mxu0  ;;  %v3678_v19 = vpop.f32.mrb[6].mxu1 }
 0x427   : > { %6771 = vst [vmem:[%s8976_s4 + $0xa60] sm:$0xff] %v3229_v18  ;;  %6773 = vst [vmem:[%s8976_s4 + $0xa70] sm:$0xff] %v3678_v19  ;;  %v3231_v21 = vpop.f32.mrb[199].mxu0  ;;  %v3680_v22 = vpop.f32.mrb[7].mxu1  ;;  %7838 = vmatmul.mubr.msk.f32.gmra.mrb[48].mxu0 %vm273_vm0, %v4221_v14  ;;  %v4243_v19 = vld [vmem:[%s11243_s0 + $0x138] sm:$0xff] }
 0x428   : > { %6772 = vst [vmem:[%s8976_s4 + $0xa68] sm:$0xff] %v3231_v21  ;;  %6774 = vst [vmem:[%s8976_s4 + $0xa78] sm:$0xff] %v3680_v22  ;;  %7840 = vmatprep.mubr.msk.f32.mxu0 %vm273_vm0, %v4222_v16  ;;  %v4244_v21 = vld [vmem:[%s11243_s0 + $0x140] sm:$0xff] }
 0x42a   : > { %v3235_v25 = vpop.f32.mrb[200].mxu0  ;;  %v3684_v26 = vpop.f32.mrb[8].mxu1 }
 0x42b   : > { %6775 = vst [vmem:[%s8976_s4 + $0xa80] sm:$0xff] %v3235_v25  ;;  %6777 = vst [vmem:[%s8976_s4 + $0xa90] sm:$0xff] %v3684_v26  ;;  %v3237_v27 = vpop.f32.mrb[201].mxu0  ;;  %v3686_v20 = vpop.f32.mrb[9].mxu1  ;;  %7841 = vmatmul.mubr.msk.f32.gmra.mrb[50].mxu0 %vm273_vm0, %v4223_v23  ;;  %v4245_v26 = vld [vmem:[%s11243_s0 + $0x148] sm:$0xff] }
 0x42c   : > { %6776 = vst [vmem:[%s8976_s4 + $0xa88] sm:$0xff] %v3237_v27  ;;  %6778 = vst [vmem:[%s8976_s4 + $0xa98] sm:$0xff] %v3686_v20  ;;  %7843 = vmatprep.mubr.msk.f32.mxu0 %vm273_vm0, %v4224_v24  ;;  %v4246_v27 = vld [vmem:[%s11243_s0 + $0x150] sm:$0xff] }
 0x42e   : > { %v3241_v30 = vpop.f32.mrb[202].mxu0  ;;  %v3690_v31 = vpop.f32.mrb[10].mxu1 }
 0x42f   : > { %6779 = vst [vmem:[%s8976_s4 + $0xaa0] sm:$0xff] %v3241_v30  ;;  %6781 = vst [vmem:[%s8976_s4 + $0xab0] sm:$0xff] %v3690_v31  ;;  %v3243_v32 = vpop.f32.mrb[203].mxu0  ;;  %v3692_v33 = vpop.f32.mrb[11].mxu1  ;;  %7844 = vmatmul.mubr.msk.f32.gmra.mrb[52].mxu0 %vm273_vm0, %v4225_v28  ;;  %v4247_v31 = vld [vmem:[%s11243_s0 + $0x158] sm:$0xff] }
 0x430   : > { %6780 = vst [vmem:[%s8976_s4 + $0xaa8] sm:$0xff] %v3243_v32  ;;  %6782 = vst [vmem:[%s8976_s4 + $0xab8] sm:$0xff] %v3692_v33  ;;  %7846 = vmatprep.mubr.msk.f32.mxu0 %vm273_vm0, %v4226_v29  ;;  %v4248_v32 = vld [vmem:[%s11243_s0 + $0x160] sm:$0xff] }
 0x432   : > { %v3247_v36 = vpop.f32.mrb[204].mxu0  ;;  %v3696_v37 = vpop.f32.mrb[12].mxu1 }
 0x433   : > { %6783 = vst [vmem:[%s8976_s4 + $0xac0] sm:$0xff] %v3247_v36  ;;  %6785 = vst [vmem:[%s8976_s4 + $0xad0] sm:$0xff] %v3696_v37  ;;  %v3249_v38 = vpop.f32.mrb[205].mxu0  ;;  %v3698_v39 = vpop.f32.mrb[13].mxu1  ;;  %7847 = vmatmul.mubr.msk.f32.gmra.mrb[54].mxu0 %vm273_vm0, %v4227_v34  ;;  %v4249_v37 = vld [vmem:[%s11243_s0 + $0x168] sm:$0xff] }
 0x434   : > { %6784 = vst [vmem:[%s8976_s4 + $0xac8] sm:$0xff] %v3249_v38  ;;  %6786 = vst [vmem:[%s8976_s4 + $0xad8] sm:$0xff] %v3698_v39  ;;  %7849 = vmatprep.mubr.msk.f32.mxu0 %vm273_vm0, %v4228_v35  ;;  %v4250_v38 = vld [vmem:[%s11243_s0 + $0x170] sm:$0xff] }
 0x436   : > { %v3253_v17 = vpop.f32.mrb[206].mxu0  ;;  %v3702_v42 = vpop.f32.mrb[14].mxu1 }
 0x437   : > { %6787 = vst [vmem:[%s8976_s4 + $0xae0] sm:$0xff] %v3253_v17  ;;  %6789 = vst [vmem:[%s8976_s4 + $0xaf0] sm:$0xff] %v3702_v42  ;;  %v3255_v43 = vpop.f32.mrb[207].mxu0  ;;  %v3704_v44 = vpop.f32.mrb[15].mxu1  ;;  %7850 = vmatmul.mubr.msk.f32.gmra.mrb[56].mxu0 %vm273_vm0, %v4229_v40  ;;  %v4251_v42 = vld [vmem:[%s11243_s0 + $0x178] sm:$0xff] }
 0x438   : > { %6788 = vst [vmem:[%s8976_s4 + $0xae8] sm:$0xff] %v3255_v43  ;;  %6790 = vst [vmem:[%s8976_s4 + $0xaf8] sm:$0xff] %v3704_v44  ;;  %7852 = vmatprep.mubr.msk.f32.mxu0 %vm273_vm0, %v4230_v41  ;;  %v4252_v43 = vld [vmem:[%s11243_s0 + $0x180] sm:$0xff] }
 0x43a   : > { %v3259_v47 = vpop.f32.mrb[208].mxu0  ;;  %v3708_v48 = vpop.f32.mrb[16].mxu1 }
 0x43b   : > { %6791 = vst [vmem:[%s8976_s4 + $0xb00] sm:$0xff] %v3259_v47  ;;  %6793 = vst [vmem:[%s8976_s4 + $0xb10] sm:$0xff] %v3708_v48  ;;  %v3261_v49 = vpop.f32.mrb[209].mxu0  ;;  %v3710_v50 = vpop.f32.mrb[17].mxu1  ;;  %7853 = vmatmul.mubr.msk.f32.gmra.mrb[58].mxu0 %vm273_vm0, %v4231_v45  ;;  %v4253_v48 = vld [vmem:[%s11243_s0 + $0x188] sm:$0xff] }
 0x43c   : > { %6792 = vst [vmem:[%s8976_s4 + $0xb08] sm:$0xff] %v3261_v49  ;;  %6794 = vst [vmem:[%s8976_s4 + $0xb18] sm:$0xff] %v3710_v50  ;;  %7855 = vmatprep.mubr.msk.f32.mxu0 %vm273_vm0, %v4232_v46  ;;  %v4254_v49 = vld [vmem:[%s11243_s0 + $0x190] sm:$0xff] }
 0x43e   : > { %v3265_v53 = vpop.f32.mrb[210].mxu0  ;;  %v3714_v54 = vpop.f32.mrb[18].mxu1 }
 0x43f   : > { %6795 = vst [vmem:[%s8976_s4 + $0xb20] sm:$0xff] %v3265_v53  ;;  %6797 = vst [vmem:[%s8976_s4 + $0xb30] sm:$0xff] %v3714_v54  ;;  %v3267_v55 = vpop.f32.mrb[211].mxu0  ;;  %v3716_v56 = vpop.f32.mrb[19].mxu1  ;;  %7856 = vmatmul.mubr.msk.f32.gmra.mrb[60].mxu0 %vm273_vm0, %v4233_v51  ;;  %v4255_v54 = vld [vmem:[%s11243_s0 + $0x198] sm:$0xff] }
 0x440   : > { %6796 = vst [vmem:[%s8976_s4 + $0xb28] sm:$0xff] %v3267_v55  ;;  %6798 = vst [vmem:[%s8976_s4 + $0xb38] sm:$0xff] %v3716_v56  ;;  %7858 = vmatprep.mubr.msk.f32.mxu0 %vm273_vm0, %v4234_v52  ;;  %v4256_v55 = vld [vmem:[%s11243_s0 + $0x1a0] sm:$0xff] }
 0x442   : > { %v3271_v59 = vpop.f32.mrb[212].mxu0  ;;  %v3720_v60 = vpop.f32.mrb[20].mxu1 }
 0x443   : > { %6799 = vst [vmem:[%s8976_s4 + $0xb40] sm:$0xff] %v3271_v59  ;;  %6801 = vst [vmem:[%s8976_s4 + $0xb50] sm:$0xff] %v3720_v60  ;;  %v3273_v61 = vpop.f32.mrb[213].mxu0  ;;  %v3722_v62 = vpop.f32.mrb[21].mxu1  ;;  %7859 = vmatmul.mubr.msk.f32.gmra.mrb[62].mxu0 %vm273_vm0, %v4235_v57  ;;  %v4257_v60 = vld [vmem:[%s11243_s0 + $0x1a8] sm:$0xff] }
 0x444   : > { %6800 = vst [vmem:[%s8976_s4 + $0xb48] sm:$0xff] %v3273_v61  ;;  %6802 = vst [vmem:[%s8976_s4 + $0xb58] sm:$0xff] %v3722_v62  ;;  %7861 = vmatprep.mubr.msk.f32.mxu0 %vm273_vm0, %v4236_v58  ;;  %v4258_v61 = vld [vmem:[%s11243_s0 + $0x1b0] sm:$0xff] }
 0x446   : > { %v3277_v1 = vpop.f32.mrb[214].mxu0  ;;  %v3726_v2 = vpop.f32.mrb[22].mxu1 }
 0x447   : > { %6803 = vst [vmem:[%s8976_s4 + $0xb60] sm:$0xff] %v3277_v1  ;;  %6805 = vst [vmem:[%s8976_s4 + $0xb70] sm:$0xff] %v3726_v2  ;;  %v3279_v3 = vpop.f32.mrb[215].mxu0  ;;  %v3728_v4 = vpop.f32.mrb[23].mxu1  ;;  %7862 = vmatmul.mubr.msk.f32.gmra.mrb[64].mxu0 %vm273_vm0, %v4237_v63  ;;  %v4259_v2 = vld [vmem:[%s11243_s0 + $0x1b8] sm:$0xff] }
 0x448   : > { %6804 = vst [vmem:[%s8976_s4 + $0xb68] sm:$0xff] %v3279_v3  ;;  %6806 = vst [vmem:[%s8976_s4 + $0xb78] sm:$0xff] %v3728_v4  ;;  %7864 = vmatprep.mubr.msk.f32.mxu0 %vm273_vm0, %v4238_v0  ;;  %v4260_v3 = vld [vmem:[%s11243_s0 + $0x1c0] sm:$0xff] }
 0x44a   : > { %v3283_v7 = vpop.f32.mrb[216].mxu0  ;;  %v3732_v8 = vpop.f32.mrb[24].mxu1 }
 0x44b   : > { %6807 = vst [vmem:[%s8976_s4 + $0xb80] sm:$0xff] %v3283_v7  ;;  %6809 = vst [vmem:[%s8976_s4 + $0xb90] sm:$0xff] %v3732_v8  ;;  %v3285_v9 = vpop.f32.mrb[217].mxu0  ;;  %v3734_v10 = vpop.f32.mrb[25].mxu1  ;;  %7865 = vmatmul.mubr.msk.f32.gmra.mrb[66].mxu0 %vm273_vm0, %v4239_v5  ;;  %v4261_v8 = vld [vmem:[%s11243_s0 + $0x1c8] sm:$0xff] }
 0x44c   : > { %6808 = vst [vmem:[%s8976_s4 + $0xb88] sm:$0xff] %v3285_v9  ;;  %6810 = vst [vmem:[%s8976_s4 + $0xb98] sm:$0xff] %v3734_v10  ;;  %7867 = vmatprep.mubr.msk.f32.mxu0 %vm273_vm0, %v4240_v6  ;;  %v4262_v9 = vld [vmem:[%s11243_s0 + $0x1d0] sm:$0xff] }
 0x44e   : > { %v3289_v13 = vpop.f32.mrb[218].mxu0  ;;  %v3738_v14 = vpop.f32.mrb[26].mxu1 }
 0x44f   : > { %6811 = vst [vmem:[%s8976_s4 + $0xba0] sm:$0xff] %v3289_v13  ;;  %6813 = vst [vmem:[%s8976_s4 + $0xbb0] sm:$0xff] %v3738_v14  ;;  %v3291_v16 = vpop.f32.mrb[219].mxu0  ;;  %v3740_v18 = vpop.f32.mrb[27].mxu1  ;;  %7868 = vmatmul.mubr.msk.f32.gmra.mrb[68].mxu0 %vm273_vm0, %v4241_v11  ;;  %v4263_v14 = vld [vmem:[%s11243_s0 + $0x1d8] sm:$0xff] }
 0x450   : > { %6812 = vst [vmem:[%s8976_s4 + $0xba8] sm:$0xff] %v3291_v16  ;;  %6814 = vst [vmem:[%s8976_s4 + $0xbb8] sm:$0xff] %v3740_v18  ;;  %7870 = vmatprep.mubr.msk.f32.mxu0 %vm273_vm0, %v4242_v12  ;;  %v4264_v16 = vld [vmem:[%s11243_s0 + $0x1e0] sm:$0xff] }
 0x452   : > { %v3295_v22 = vpop.f32.mrb[220].mxu0  ;;  %v3744_v23 = vpop.f32.mrb[28].mxu1 }
 0x453   : > { %6815 = vst [vmem:[%s8976_s4 + $0xbc0] sm:$0xff] %v3295_v22  ;;  %6817 = vst [vmem:[%s8976_s4 + $0xbd0] sm:$0xff] %v3744_v23  ;;  %v3297_v24 = vpop.f32.mrb[221].mxu0  ;;  %v3746_v25 = vpop.f32.mrb[29].mxu1  ;;  %7871 = vmatmul.mubr.msk.f32.gmra.mrb[70].mxu0 %vm273_vm0, %v4243_v19  ;;  %v4265_v23 = vld [vmem:[%s11243_s0 + $0x1e8] sm:$0xff] }
 0x454   : > { %6816 = vst [vmem:[%s8976_s4 + $0xbc8] sm:$0xff] %v3297_v24  ;;  %6818 = vst [vmem:[%s8976_s4 + $0xbd8] sm:$0xff] %v3746_v25  ;;  %7873 = vmatprep.mubr.msk.f32.mxu0 %vm273_vm0, %v4244_v21  ;;  %v4266_v24 = vld [vmem:[%s11243_s0 + $0x1f0] sm:$0xff] }
 0x456   : > { %v3301_v20 = vpop.f32.mrb[222].mxu0  ;;  %v3750_v28 = vpop.f32.mrb[30].mxu1 }
 0x457   : > { %6819 = vst [vmem:[%s8976_s4 + $0xbe0] sm:$0xff] %v3301_v20  ;;  %6821 = vst [vmem:[%s8976_s4 + $0xbf0] sm:$0xff] %v3750_v28  ;;  %v3303_v29 = vpop.f32.mrb[223].mxu0  ;;  %v3752_v30 = vpop.f32.mrb[31].mxu1  ;;  %7874 = vmatmul.mubr.msk.f32.gmra.mrb[72].mxu0 %vm273_vm0, %v4245_v26  ;;  %v4267_v28 = vld [vmem:[%s11243_s0 + $0x1f8] sm:$0xff] }
 0x458   : > { %6820 = vst [vmem:[%s8976_s4 + $0xbe8] sm:$0xff] %v3303_v29  ;;  %6822 = vst [vmem:[%s8976_s4 + $0xbf8] sm:$0xff] %v3752_v30  ;;  %7876 = vmatprep.mubr.msk.f32.mxu0 %vm273_vm0, %v4246_v27 }
 0x45a   : > { %v3307_v33 = vpop.f32.mrb[224].mxu0  ;;  %v3756_v34 = vpop.f32.mrb[32].mxu1 }
 0x45b   : > { %6823 = vst [vmem:[%s8976_s4 + $0xc00] sm:$0xff] %v3307_v33  ;;  %6825 = vst [vmem:[%s8976_s4 + $0xc10] sm:$0xff] %v3756_v34  ;;  %v3309_v35 = vpop.f32.mrb[225].mxu0  ;;  %v3758_v36 = vpop.f32.mrb[33].mxu1  ;;  %7877 = vmatmul.mubr.msk.f32.gmra.mrb[74].mxu0 %vm273_vm0, %v4247_v31 }
 0x45c   : > { %6824 = vst [vmem:[%s8976_s4 + $0xc08] sm:$0xff] %v3309_v35  ;;  %6826 = vst [vmem:[%s8976_s4 + $0xc18] sm:$0xff] %v3758_v36  ;;  %7879 = vmatprep.mubr.msk.f32.mxu0 %vm273_vm0, %v4248_v32 }
 0x45e   : > { %v3313_v39 = vpop.f32.mrb[226].mxu0  ;;  %v3762_v40 = vpop.f32.mrb[34].mxu1 }
 0x45f   : > { %6827 = vst [vmem:[%s8976_s4 + $0xc20] sm:$0xff] %v3313_v39  ;;  %6829 = vst [vmem:[%s8976_s4 + $0xc30] sm:$0xff] %v3762_v40  ;;  %v3315_v41 = vpop.f32.mrb[227].mxu0  ;;  %v3764_v17 = vpop.f32.mrb[35].mxu1  ;;  %7880 = vmatmul.mubr.msk.f32.gmra.mrb[76].mxu0 %vm273_vm0, %v4249_v37 }
 0x460   : > { %6828 = vst [vmem:[%s8976_s4 + $0xc28] sm:$0xff] %v3315_v41  ;;  %6830 = vst [vmem:[%s8976_s4 + $0xc38] sm:$0xff] %v3764_v17  ;;  %7882 = vmatprep.mubr.msk.f32.mxu0 %vm273_vm0, %v4250_v38 }
 0x462   : > { %v3319_v44 = vpop.f32.mrb[228].mxu0  ;;  %v3768_v45 = vpop.f32.mrb[36].mxu1 }
 0x463   : > { %6831 = vst [vmem:[%s8976_s4 + $0xc40] sm:$0xff] %v3319_v44  ;;  %6833 = vst [vmem:[%s8976_s4 + $0xc50] sm:$0xff] %v3768_v45  ;;  %v3321_v46 = vpop.f32.mrb[229].mxu0  ;;  %v3770_v47 = vpop.f32.mrb[37].mxu1  ;;  %7883 = vmatmul.mubr.msk.f32.gmra.mrb[78].mxu0 %vm273_vm0, %v4251_v42 }
 0x464   : > { %6832 = vst [vmem:[%s8976_s4 + $0xc48] sm:$0xff] %v3321_v46  ;;  %6834 = vst [vmem:[%s8976_s4 + $0xc58] sm:$0xff] %v3770_v47  ;;  %7885 = vmatprep.mubr.msk.f32.mxu0 %vm273_vm0, %v4252_v43 }
 0x466   : > { %v3325_v50 = vpop.f32.mrb[230].mxu0  ;;  %v3774_v51 = vpop.f32.mrb[38].mxu1 }
 0x467   : > { %6835 = vst [vmem:[%s8976_s4 + $0xc60] sm:$0xff] %v3325_v50  ;;  %6837 = vst [vmem:[%s8976_s4 + $0xc70] sm:$0xff] %v3774_v51  ;;  %v3327_v52 = vpop.f32.mrb[231].mxu0  ;;  %v3776_v53 = vpop.f32.mrb[39].mxu1  ;;  %7886 = vmatmul.mubr.msk.f32.gmra.mrb[80].mxu0 %vm273_vm0, %v4253_v48 }
 0x468   : > { %6836 = vst [vmem:[%s8976_s4 + $0xc68] sm:$0xff] %v3327_v52  ;;  %6838 = vst [vmem:[%s8976_s4 + $0xc78] sm:$0xff] %v3776_v53  ;;  %7888 = vmatprep.mubr.msk.f32.mxu0 %vm273_vm0, %v4254_v49 }
 0x46a   : > { %v3331_v56 = vpop.f32.mrb[232].mxu0  ;;  %v3780_v57 = vpop.f32.mrb[40].mxu1 }
 0x46b   : > { %6839 = vst [vmem:[%s8976_s4 + $0xc80] sm:$0xff] %v3331_v56  ;;  %6841 = vst [vmem:[%s8976_s4 + $0xc90] sm:$0xff] %v3780_v57  ;;  %v3333_v58 = vpop.f32.mrb[233].mxu0  ;;  %v3782_v59 = vpop.f32.mrb[41].mxu1  ;;  %7889 = vmatmul.mubr.msk.f32.gmra.mrb[82].mxu0 %vm273_vm0, %v4255_v54 }
 0x46c   : > { %6840 = vst [vmem:[%s8976_s4 + $0xc88] sm:$0xff] %v3333_v58  ;;  %6842 = vst [vmem:[%s8976_s4 + $0xc98] sm:$0xff] %v3782_v59  ;;  %7891 = vmatprep.mubr.msk.f32.mxu0 %vm273_vm0, %v4256_v55 }
 0x46e   : > { %v3337_v62 = vpop.f32.mrb[234].mxu0  ;;  %v3786_v63 = vpop.f32.mrb[42].mxu1 }
 0x46f   : > { %6843 = vst [vmem:[%s8976_s4 + $0xca0] sm:$0xff] %v3337_v62  ;;  %6845 = vst [vmem:[%s8976_s4 + $0xcb0] sm:$0xff] %v3786_v63  ;;  %v3339_v0 = vpop.f32.mrb[235].mxu0  ;;  %v3788_v1 = vpop.f32.mrb[43].mxu1  ;;  %7892 = vmatmul.mubr.msk.f32.gmra.mrb[84].mxu0 %vm273_vm0, %v4257_v60 }
 0x470   : > { %6844 = vst [vmem:[%s8976_s4 + $0xca8] sm:$0xff] %v3339_v0  ;;  %6846 = vst [vmem:[%s8976_s4 + $0xcb8] sm:$0xff] %v3788_v1  ;;  %7894 = vmatprep.mubr.msk.f32.mxu0 %vm273_vm0, %v4258_v61 }
 0x472   : > { %v3343_v4 = vpop.f32.mrb[236].mxu0  ;;  %v3792_v5 = vpop.f32.mrb[44].mxu1 }
 0x473   : > { %6847 = vst [vmem:[%s8976_s4 + $0xcc0] sm:$0xff] %v3343_v4  ;;  %6849 = vst [vmem:[%s8976_s4 + $0xcd0] sm:$0xff] %v3792_v5  ;;  %v3345_v6 = vpop.f32.mrb[237].mxu0  ;;  %v3794_v7 = vpop.f32.mrb[45].mxu1  ;;  %7895 = vmatmul.mubr.msk.f32.gmra.mrb[86].mxu0 %vm273_vm0, %v4259_v2 }
 0x474   : > { %6848 = vst [vmem:[%s8976_s4 + $0xcc8] sm:$0xff] %v3345_v6  ;;  %6850 = vst [vmem:[%s8976_s4 + $0xcd8] sm:$0xff] %v3794_v7  ;;  %7897 = vmatprep.mubr.msk.f32.mxu0 %vm273_vm0, %v4260_v3 }
 0x476   : > { %v3349_v10 = vpop.f32.mrb[238].mxu0  ;;  %v3798_v11 = vpop.f32.mrb[46].mxu1 }
 0x477   : > { %6851 = vst [vmem:[%s8976_s4 + $0xce0] sm:$0xff] %v3349_v10  ;;  %6853 = vst [vmem:[%s8976_s4 + $0xcf0] sm:$0xff] %v3798_v11  ;;  %v3351_v12 = vpop.f32.mrb[239].mxu0  ;;  %v3800_v13 = vpop.f32.mrb[47].mxu1  ;;  %7898 = vmatmul.mubr.msk.f32.gmra.mrb[88].mxu0 %vm273_vm0, %v4261_v8 }
 0x478   : > { %6852 = vst [vmem:[%s8976_s4 + $0xce8] sm:$0xff] %v3351_v12  ;;  %6854 = vst [vmem:[%s8976_s4 + $0xcf8] sm:$0xff] %v3800_v13  ;;  %7900 = vmatprep.mubr.msk.f32.mxu0 %vm273_vm0, %v4262_v9 }
 0x47a   : > { %v3355_v18 = vpop.f32.mrb[240].mxu0  ;;  %v3804_v19 = vpop.f32.mrb[48].mxu1 }
 0x47b   : > { %6855 = vst [vmem:[%s8976_s4 + $0xd00] sm:$0xff] %v3355_v18  ;;  %6857 = vst [vmem:[%s8976_s4 + $0xd10] sm:$0xff] %v3804_v19  ;;  %v3357_v21 = vpop.f32.mrb[241].mxu0  ;;  %v3806_v22 = vpop.f32.mrb[49].mxu1  ;;  %7901 = vmatmul.mubr.msk.f32.gmra.mrb[90].mxu0 %vm273_vm0, %v4263_v14 }
 0x47c   : > { %6856 = vst [vmem:[%s8976_s4 + $0xd08] sm:$0xff] %v3357_v21  ;;  %6858 = vst [vmem:[%s8976_s4 + $0xd18] sm:$0xff] %v3806_v22  ;;  %7903 = vmatprep.mubr.msk.f32.mxu0 %vm273_vm0, %v4264_v16 }
 0x47e   : > { %v3361_v25 = vpop.f32.mrb[242].mxu0  ;;  %v3810_v26 = vpop.f32.mrb[50].mxu1 }
 0x47f   : > { %6859 = vst [vmem:[%s8976_s4 + $0xd20] sm:$0xff] %v3361_v25  ;;  %6861 = vst [vmem:[%s8976_s4 + $0xd30] sm:$0xff] %v3810_v26  ;;  %v3363_v27 = vpop.f32.mrb[243].mxu0  ;;  %v3812_v20 = vpop.f32.mrb[51].mxu1  ;;  %7904 = vmatmul.mubr.msk.f32.gmra.mrb[92].mxu0 %vm273_vm0, %v4265_v23 }
 0x480   : > { %6860 = vst [vmem:[%s8976_s4 + $0xd28] sm:$0xff] %v3363_v27  ;;  %6862 = vst [vmem:[%s8976_s4 + $0xd38] sm:$0xff] %v3812_v20  ;;  %7906 = vmatprep.mubr.msk.f32.mxu0 %vm273_vm0, %v4266_v24 }
 0x482   : > { %v3367_v29 = vpop.f32.mrb[244].mxu0  ;;  %v3816_v30 = vpop.f32.mrb[52].mxu1 }
 0x483   : > { %6863 = vst [vmem:[%s8976_s4 + $0xd40] sm:$0xff] %v3367_v29  ;;  %6865 = vst [vmem:[%s8976_s4 + $0xd50] sm:$0xff] %v3816_v30  ;;  %v3369_v31 = vpop.f32.mrb[245].mxu0  ;;  %v3818_v32 = vpop.f32.mrb[53].mxu1  ;;  %7907 = vmatmul.mubr.msk.f32.gmra.mrb[94].mxu0 %vm273_vm0, %v4267_v28 }
 0x484   : > { %6864 = vst [vmem:[%s8976_s4 + $0xd48] sm:$0xff] %v3369_v31  ;;  %6866 = vst [vmem:[%s8976_s4 + $0xd58] sm:$0xff] %v3818_v32  ;;  %5561 = vmatprep.mubr.f32.mxu0 %v8150_v15 }
 0x486   : > { %v3373_v33 = vpop.f32.mrb[246].mxu0  ;;  %v3822_v34 = vpop.f32.mrb[54].mxu1 }
 0x487   : > { %6867 = vst [vmem:[%s8976_s4 + $0xd60] sm:$0xff] %v3373_v33  ;;  %6869 = vst [vmem:[%s8976_s4 + $0xd70] sm:$0xff] %v3822_v34  ;;  %v3375_v35 = vpop.f32.mrb[247].mxu0  ;;  %v3824_v36 = vpop.f32.mrb[55].mxu1 }
 0x488   : > { %6868 = vst [vmem:[%s8976_s4 + $0xd68] sm:$0xff] %v3375_v35  ;;  %6870 = vst [vmem:[%s8976_s4 + $0xd78] sm:$0xff] %v3824_v36 }
 0x48a   : > { %v3379_v37 = vpop.f32.mrb[248].mxu0  ;;  %v3828_v38 = vpop.f32.mrb[56].mxu1 }
 0x48b   : > { %6871 = vst [vmem:[%s8976_s4 + $0xd80] sm:$0xff] %v3379_v37  ;;  %6873 = vst [vmem:[%s8976_s4 + $0xd90] sm:$0xff] %v3828_v38  ;;  %v3381_v39 = vpop.f32.mrb[249].mxu0  ;;  %v3830_v40 = vpop.f32.mrb[57].mxu1 }
 0x48c   : > { %6872 = vst [vmem:[%s8976_s4 + $0xd88] sm:$0xff] %v3381_v39  ;;  %6874 = vst [vmem:[%s8976_s4 + $0xd98] sm:$0xff] %v3830_v40 }
 0x48e   : > { %v3385_v41 = vpop.f32.mrb[250].mxu0  ;;  %v3834_v17 = vpop.f32.mrb[58].mxu1 }
 0x48f   : > { %6875 = vst [vmem:[%s8976_s4 + $0xda0] sm:$0xff] %v3385_v41  ;;  %6877 = vst [vmem:[%s8976_s4 + $0xdb0] sm:$0xff] %v3834_v17  ;;  %v3387_v42 = vpop.f32.mrb[251].mxu0  ;;  %v3836_v43 = vpop.f32.mrb[59].mxu1 }
 0x490   : > { %6876 = vst [vmem:[%s8976_s4 + $0xda8] sm:$0xff] %v3387_v42  ;;  %6878 = vst [vmem:[%s8976_s4 + $0xdb8] sm:$0xff] %v3836_v43 }
 0x492   : > { %v3391_v44 = vpop.f32.mrb[252].mxu0  ;;  %v3840_v45 = vpop.f32.mrb[60].mxu1 }
 0x493   : > { %6879 = vst [vmem:[%s8976_s4 + $0xdc0] sm:$0xff] %v3391_v44  ;;  %6881 = vst [vmem:[%s8976_s4 + $0xdd0] sm:$0xff] %v3840_v45  ;;  %v3393_v46 = vpop.f32.mrb[253].mxu0  ;;  %v3842_v47 = vpop.f32.mrb[61].mxu1 }
 0x494   : > { %6880 = vst [vmem:[%s8976_s4 + $0xdc8] sm:$0xff] %v3393_v46  ;;  %6882 = vst [vmem:[%s8976_s4 + $0xdd8] sm:$0xff] %v3842_v47 }
 0x496   : > { %v3397_v48 = vpop.f32.mrb[254].mxu0  ;;  %v3846_v49 = vpop.f32.mrb[62].mxu1 }
 0x497   : > { %6883 = vst [vmem:[%s8976_s4 + $0xde0] sm:$0xff] %v3397_v48  ;;  %6885 = vst [vmem:[%s8976_s4 + $0xdf0] sm:$0xff] %v3846_v49  ;;  %v3399_v50 = vpop.f32.mrb[255].mxu0  ;;  %v3848_v51 = vpop.f32.mrb[63].mxu1 }
 0x498   : > { %6884 = vst [vmem:[%s8976_s4 + $0xde8] sm:$0xff] %v3399_v50  ;;  %6886 = vst [vmem:[%s8976_s4 + $0xdf8] sm:$0xff] %v3848_v51 }
 0x49a   : > { %v3403_v52 = vpop.f32.mrb[0].mxu0  ;;  %v3852_v53 = vpop.f32.mrb[64].mxu1 }
 0x49b   : > { %6887 = vst [vmem:[%s8976_s4 + $0xe00] sm:$0xff] %v3403_v52  ;;  %6889 = vst [vmem:[%s8976_s4 + $0xe10] sm:$0xff] %v3852_v53  ;;  %v3405_v54 = vpop.f32.mrb[1].mxu0  ;;  %v3854_v55 = vpop.f32.mrb[65].mxu1 }
 0x49c   : > { %6888 = vst [vmem:[%s8976_s4 + $0xe08] sm:$0xff] %v3405_v54  ;;  %6890 = vst [vmem:[%s8976_s4 + $0xe18] sm:$0xff] %v3854_v55 }
 0x49e   : > { %v3409_v56 = vpop.f32.mrb[2].mxu0  ;;  %v3858_v57 = vpop.f32.mrb[66].mxu1 }
 0x49f   : > { %6891 = vst [vmem:[%s8976_s4 + $0xe20] sm:$0xff] %v3409_v56  ;;  %6893 = vst [vmem:[%s8976_s4 + $0xe30] sm:$0xff] %v3858_v57  ;;  %v3411_v58 = vpop.f32.mrb[3].mxu0  ;;  %v3860_v59 = vpop.f32.mrb[67].mxu1 }
 0x4a0   : > { %6892 = vst [vmem:[%s8976_s4 + $0xe28] sm:$0xff] %v3411_v58  ;;  %6894 = vst [vmem:[%s8976_s4 + $0xe38] sm:$0xff] %v3860_v59 }
 0x4a2   : > { %v3415_v60 = vpop.f32.mrb[4].mxu0  ;;  %v3864_v61 = vpop.f32.mrb[68].mxu1 }
 0x4a3   : > { %6895 = vst [vmem:[%s8976_s4 + $0xe40] sm:$0xff] %v3415_v60  ;;  %6897 = vst [vmem:[%s8976_s4 + $0xe50] sm:$0xff] %v3864_v61  ;;  %v3417_v62 = vpop.f32.mrb[5].mxu0  ;;  %v3866_v63 = vpop.f32.mrb[69].mxu1 }
 0x4a4   : > { %6896 = vst [vmem:[%s8976_s4 + $0xe48] sm:$0xff] %v3417_v62  ;;  %6898 = vst [vmem:[%s8976_s4 + $0xe58] sm:$0xff] %v3866_v63 }
 0x4a6   : > { %v3421_v0 = vpop.f32.mrb[6].mxu0  ;;  %v3870_v1 = vpop.f32.mrb[70].mxu1 }
 0x4a7   : > { %6899 = vst [vmem:[%s8976_s4 + $0xe60] sm:$0xff] %v3421_v0  ;;  %6901 = vst [vmem:[%s8976_s4 + $0xe70] sm:$0xff] %v3870_v1  ;;  %v3423_v2 = vpop.f32.mrb[7].mxu0  ;;  %v3872_v3 = vpop.f32.mrb[71].mxu1 }
 0x4a8   : > { %6900 = vst [vmem:[%s8976_s4 + $0xe68] sm:$0xff] %v3423_v2  ;;  %6902 = vst [vmem:[%s8976_s4 + $0xe78] sm:$0xff] %v3872_v3 }
 0x4aa   : > { %v3427_v4 = vpop.f32.mrb[8].mxu0  ;;  %v3876_v5 = vpop.f32.mrb[72].mxu1 }
 0x4ab   : > { %6903 = vst [vmem:[%s8976_s4 + $0xe80] sm:$0xff] %v3427_v4  ;;  %6905 = vst [vmem:[%s8976_s4 + $0xe90] sm:$0xff] %v3876_v5  ;;  %v3429_v6 = vpop.f32.mrb[9].mxu0  ;;  %v3878_v7 = vpop.f32.mrb[73].mxu1 }
 0x4ac   : > { %6904 = vst [vmem:[%s8976_s4 + $0xe88] sm:$0xff] %v3429_v6  ;;  %6906 = vst [vmem:[%s8976_s4 + $0xe98] sm:$0xff] %v3878_v7 }
 0x4ae   : > { %v3433_v8 = vpop.f32.mrb[10].mxu0  ;;  %v3882_v9 = vpop.f32.mrb[74].mxu1 }
 0x4af   : > { %6907 = vst [vmem:[%s8976_s4 + $0xea0] sm:$0xff] %v3433_v8  ;;  %6909 = vst [vmem:[%s8976_s4 + $0xeb0] sm:$0xff] %v3882_v9  ;;  %v3435_v10 = vpop.f32.mrb[11].mxu0  ;;  %v3884_v11 = vpop.f32.mrb[75].mxu1 }
 0x4b0   : > { %6908 = vst [vmem:[%s8976_s4 + $0xea8] sm:$0xff] %v3435_v10  ;;  %6910 = vst [vmem:[%s8976_s4 + $0xeb8] sm:$0xff] %v3884_v11 }
 0x4b2   : > { %v3439_v12 = vpop.f32.mrb[12].mxu0  ;;  %v3888_v13 = vpop.f32.mrb[76].mxu1 }
 0x4b3   : > { %6911 = vst [vmem:[%s8976_s4 + $0xec0] sm:$0xff] %v3439_v12  ;;  %6913 = vst [vmem:[%s8976_s4 + $0xed0] sm:$0xff] %v3888_v13  ;;  %v3441_v14 = vpop.f32.mrb[13].mxu0  ;;  %v3890_v16 = vpop.f32.mrb[77].mxu1 }
 0x4b4   : > { %6912 = vst [vmem:[%s8976_s4 + $0xec8] sm:$0xff] %v3441_v14  ;;  %6914 = vst [vmem:[%s8976_s4 + $0xed8] sm:$0xff] %v3890_v16 }
 0x4b6   : > { %v3445_v18 = vpop.f32.mrb[14].mxu0  ;;  %v3894_v19 = vpop.f32.mrb[78].mxu1 }
 0x4b7   : > { %6915 = vst [vmem:[%s8976_s4 + $0xee0] sm:$0xff] %v3445_v18  ;;  %6917 = vst [vmem:[%s8976_s4 + $0xef0] sm:$0xff] %v3894_v19  ;;  %v3447_v21 = vpop.f32.mrb[15].mxu0  ;;  %v3896_v22 = vpop.f32.mrb[79].mxu1 }
 0x4b8   : > { %6916 = vst [vmem:[%s8976_s4 + $0xee8] sm:$0xff] %v3447_v21  ;;  %6918 = vst [vmem:[%s8976_s4 + $0xef8] sm:$0xff] %v3896_v22 }
 0x4ba   : > { %v3451_v23 = vpop.f32.mrb[16].mxu0  ;;  %v3900_v24 = vpop.f32.mrb[80].mxu1 }
 0x4bb   : > { %6919 = vst [vmem:[%s8976_s4 + $0xf00] sm:$0xff] %v3451_v23  ;;  %6921 = vst [vmem:[%s8976_s4 + $0xf10] sm:$0xff] %v3900_v24  ;;  %v3453_v25 = vpop.f32.mrb[17].mxu0  ;;  %v3902_v26 = vpop.f32.mrb[81].mxu1 }
 0x4bc   : > { %6920 = vst [vmem:[%s8976_s4 + $0xf08] sm:$0xff] %v3453_v25  ;;  %6922 = vst [vmem:[%s8976_s4 + $0xf18] sm:$0xff] %v3902_v26 }
 0x4be   : > { %v3457_v27 = vpop.f32.mrb[18].mxu0  ;;  %v3906_v20 = vpop.f32.mrb[82].mxu1 }
 0x4bf   : > { %6923 = vst [vmem:[%s8976_s4 + $0xf20] sm:$0xff] %v3457_v27  ;;  %6925 = vst [vmem:[%s8976_s4 + $0xf30] sm:$0xff] %v3906_v20  ;;  %v3459_v28 = vpop.f32.mrb[19].mxu0  ;;  %v3908_v29 = vpop.f32.mrb[83].mxu1 }
 0x4c0   : > { %6924 = vst [vmem:[%s8976_s4 + $0xf28] sm:$0xff] %v3459_v28  ;;  %6926 = vst [vmem:[%s8976_s4 + $0xf38] sm:$0xff] %v3908_v29 }
 0x4c2   : > { %v3463_v30 = vpop.f32.mrb[20].mxu0  ;;  %v3912_v31 = vpop.f32.mrb[84].mxu1 }
 0x4c3   : > { %6927 = vst [vmem:[%s8976_s4 + $0xf40] sm:$0xff] %v3463_v30  ;;  %6929 = vst [vmem:[%s8976_s4 + $0xf50] sm:$0xff] %v3912_v31  ;;  %v3465_v32 = vpop.f32.mrb[21].mxu0  ;;  %v3914_v33 = vpop.f32.mrb[85].mxu1 }
 0x4c4   : > { %6928 = vst [vmem:[%s8976_s4 + $0xf48] sm:$0xff] %v3465_v32  ;;  %6930 = vst [vmem:[%s8976_s4 + $0xf58] sm:$0xff] %v3914_v33 }
 0x4c6   : > { %v3469_v34 = vpop.f32.mrb[22].mxu0  ;;  %v3918_v35 = vpop.f32.mrb[86].mxu1 }
 0x4c7   : > { %6931 = vst [vmem:[%s8976_s4 + $0xf60] sm:$0xff] %v3469_v34  ;;  %6933 = vst [vmem:[%s8976_s4 + $0xf70] sm:$0xff] %v3918_v35  ;;  %v3471_v36 = vpop.f32.mrb[23].mxu0  ;;  %v3920_v37 = vpop.f32.mrb[87].mxu1 }
 0x4c8   : > { %6932 = vst [vmem:[%s8976_s4 + $0xf68] sm:$0xff] %v3471_v36  ;;  %6934 = vst [vmem:[%s8976_s4 + $0xf78] sm:$0xff] %v3920_v37 }
 0x4ca   : > { %v3475_v38 = vpop.f32.mrb[24].mxu0  ;;  %v3924_v39 = vpop.f32.mrb[88].mxu1 }
 0x4cb   : > { %6935 = vst [vmem:[%s8976_s4 + $0xf80] sm:$0xff] %v3475_v38  ;;  %6937 = vst [vmem:[%s8976_s4 + $0xf90] sm:$0xff] %v3924_v39  ;;  %v3477_v40 = vpop.f32.mrb[25].mxu0  ;;  %v3926_v41 = vpop.f32.mrb[89].mxu1 }
 0x4cc   : > { %6936 = vst [vmem:[%s8976_s4 + $0xf88] sm:$0xff] %v3477_v40  ;;  %6938 = vst [vmem:[%s8976_s4 + $0xf98] sm:$0xff] %v3926_v41 }
 0x4ce   : > { %v3481_v17 = vpop.f32.mrb[26].mxu0  ;;  %v3930_v42 = vpop.f32.mrb[90].mxu1 }
 0x4cf   : > { %6939 = vst [vmem:[%s8976_s4 + $0xfa0] sm:$0xff] %v3481_v17  ;;  %6941 = vst [vmem:[%s8976_s4 + $0xfb0] sm:$0xff] %v3930_v42  ;;  %v3483_v43 = vpop.f32.mrb[27].mxu0  ;;  %v3932_v44 = vpop.f32.mrb[91].mxu1 }
 0x4d0   : > { %6940 = vst [vmem:[%s8976_s4 + $0xfa8] sm:$0xff] %v3483_v43  ;;  %6942 = vst [vmem:[%s8976_s4 + $0xfb8] sm:$0xff] %v3932_v44 }
 0x4d2   : > { %v3487_v45 = vpop.f32.mrb[28].mxu0  ;;  %v3936_v46 = vpop.f32.mrb[92].mxu1 }
 0x4d3   : > { %6943 = vst [vmem:[%s8976_s4 + $0xfc0] sm:$0xff] %v3487_v45  ;;  %6945 = vst [vmem:[%s8976_s4 + $0xfd0] sm:$0xff] %v3936_v46  ;;  %v3489_v47 = vpop.f32.mrb[29].mxu0  ;;  %v3938_v48 = vpop.f32.mrb[93].mxu1 }
 0x4d4   : > { %6944 = vst [vmem:[%s8976_s4 + $0xfc8] sm:$0xff] %v3489_v47  ;;  %6946 = vst [vmem:[%s8976_s4 + $0xfd8] sm:$0xff] %v3938_v48 }
 0x4d6   : > { %v3493_v49 = vpop.f32.mrb[30].mxu0  ;;  %v3942_v50 = vpop.f32.mrb[94].mxu1 }
 0x4d7   : > { %6947 = vst [vmem:[%s8976_s4 + $0xfe0] sm:$0xff] %v3493_v49  ;;  %6949 = vst [vmem:[%s8976_s4 + $0xff0] sm:$0xff] %v3942_v50  ;;  %v3495_v51 = vpop.f32.mrb[31].mxu0  ;;  %v3944_v52 = vpop.f32.mrb[95].mxu1 }
 0x4d8   : > { %6948 = vst [vmem:[%s8976_s4 + $0xfe8] sm:$0xff] %v3495_v51  ;;  %6950 = vst [vmem:[%s8976_s4 + $0xff8] sm:$0xff] %v3944_v52 }
 0x4da   : > { %v7815_v53 = vpop.f32.mrb[32].mxu0 }
 0x4db   : > { %v4529_v54 = vpop.f32.mrb[33].mxu0 }
 0x4dc   : > { %7017 = vmatmul.mubr.msk.f32.vlgmr.msra.gmra.mrb[96].mxu1 %vm273_vm0, %v4529_v54  ;;  %7081 = vmatmul.mubr.msk.f32.vlgmr.msra.gmra.mrb[96].mxu0 %vm273_vm0, %v4529_v54 }
 0x4dd   : > { %5118 = vmatprep.mubr.f32.mxu1 %v8150_v15  ;;  %5567 = vmatprep.mubr.f32.mxu0 %v8150_v15 }
 0x4de   : > { %v7818_v55 = vpop.f32.mrb[34].mxu0 }
 0x4df   : > { %v4539_v56 = vpop.f32.mrb[35].mxu0 }
 0x4e0   : > { %7018 = vmatmul.mubr.msk.f32.gmra.mrb[98].mxu1 %vm273_vm0, %v7815_v53  ;;  %7082 = vmatmul.mubr.msk.f32.gmra.mrb[98].mxu0 %vm273_vm0, %v7815_v53 }
 0x4e1   : > { %5124 = vmatprep.mubr.f32.mxu1 %v8150_v15  ;;  %5573 = vmatprep.mubr.f32.mxu0 %v8150_v15 }
 0x4e2   : > { %v7821_v57 = vpop.f32.mrb[36].mxu0 }
 0x4e3   : > { %v4549_v58 = vpop.f32.mrb[37].mxu0 }
 0x4e4   : > { %7019 = vmatmul.mubr.msk.f32.gmra.mrb[100].mxu1 %vm273_vm0, %v4539_v56  ;;  %7083 = vmatmul.mubr.msk.f32.gmra.mrb[100].mxu0 %vm273_vm0, %v4539_v56 }
 0x4e5   : > { %5130 = vmatprep.mubr.f32.mxu1 %v8150_v15  ;;  %5579 = vmatprep.mubr.f32.mxu0 %v8150_v15 }
 0x4e6   : > { %v7824_v59 = vpop.f32.mrb[38].mxu0 }
 0x4e7   : > { %v4559_v60 = vpop.f32.mrb[39].mxu0 }
 0x4e8   : > { %7020 = vmatmul.mubr.msk.f32.gmra.mrb[102].mxu1 %vm273_vm0, %v7818_v55  ;;  %7084 = vmatmul.mubr.msk.f32.gmra.mrb[102].mxu0 %vm273_vm0, %v7818_v55 }
 0x4e9   : > { %5136 = vmatprep.mubr.f32.mxu1 %v8150_v15  ;;  %5585 = vmatprep.mubr.f32.mxu0 %v8150_v15 }
 0x4ea   : > { %v7827_v61 = vpop.f32.mrb[40].mxu0 }
 0x4eb   : > { %v4569_v62 = vpop.f32.mrb[41].mxu0 }
 0x4ec   : > { %7021 = vmatmul.mubr.msk.f32.gmra.mrb[104].mxu1 %vm273_vm0, %v4549_v58  ;;  %7085 = vmatmul.mubr.msk.f32.gmra.mrb[104].mxu0 %vm273_vm0, %v4549_v58 }
 0x4ed   : > { %5142 = vmatprep.mubr.f32.mxu1 %v8150_v15  ;;  %5591 = vmatprep.mubr.f32.mxu0 %v8150_v15 }
 0x4ee   : > { %v7830_v63 = vpop.f32.mrb[42].mxu0 }
 0x4ef   : > { %v4579_v0 = vpop.f32.mrb[43].mxu0 }
 0x4f0   : > { %7022 = vmatmul.mubr.msk.f32.gmra.mrb[106].mxu1 %vm273_vm0, %v7821_v57  ;;  %7086 = vmatmul.mubr.msk.f32.gmra.mrb[106].mxu0 %vm273_vm0, %v7821_v57 }
 0x4f1   : > { %5148 = vmatprep.mubr.f32.mxu1 %v8150_v15  ;;  %5597 = vmatprep.mubr.f32.mxu0 %v8150_v15 }
 0x4f2   : > { %v7833_v1 = vpop.f32.mrb[44].mxu0 }
 0x4f3   : > { %v4589_v2 = vpop.f32.mrb[45].mxu0 }
 0x4f4   : > { %7023 = vmatmul.mubr.msk.f32.gmra.mrb[108].mxu1 %vm273_vm0, %v4559_v60  ;;  %7087 = vmatmul.mubr.msk.f32.gmra.mrb[108].mxu0 %vm273_vm0, %v4559_v60 }
 0x4f5   : > { %5154 = vmatprep.mubr.f32.mxu1 %v8150_v15  ;;  %5603 = vmatprep.mubr.f32.mxu0 %v8150_v15 }
 0x4f6   : > { %v7836_v3 = vpop.f32.mrb[46].mxu0 }
 0x4f7   : > { %v4599_v4 = vpop.f32.mrb[47].mxu0 }
 0x4f8   : > { %7024 = vmatmul.mubr.msk.f32.gmra.mrb[110].mxu1 %vm273_vm0, %v7824_v59  ;;  %7088 = vmatmul.mubr.msk.f32.gmra.mrb[110].mxu0 %vm273_vm0, %v7824_v59 }
 0x4f9   : > { %5160 = vmatprep.mubr.f32.mxu1 %v8150_v15  ;;  %5609 = vmatprep.mubr.f32.mxu0 %v8150_v15 }
 0x4fa   : > { %v7839_v5 = vpop.f32.mrb[48].mxu0 }
 0x4fb   : > { %v4609_v6 = vpop.f32.mrb[49].mxu0 }
 0x4fc   : > { %7025 = vmatmul.mubr.msk.f32.gmra.mrb[112].mxu1 %vm273_vm0, %v4569_v62  ;;  %7089 = vmatmul.mubr.msk.f32.gmra.mrb[112].mxu0 %vm273_vm0, %v4569_v62 }
 0x4fd   : > { %5166 = vmatprep.mubr.f32.mxu1 %v8150_v15  ;;  %5615 = vmatprep.mubr.f32.mxu0 %v8150_v15 }
 0x4fe   : > { %v10542_v7 = vpop.f32.mrb[50].mxu0 }
 0x4ff   : > { %v4619_v8 = vpop.f32.mrb[51].mxu0 }
 0x500   : > { %7026 = vmatmul.mubr.msk.f32.gmra.mrb[114].mxu1 %vm273_vm0, %v7827_v61  ;;  %7090 = vmatmul.mubr.msk.f32.gmra.mrb[114].mxu0 %vm273_vm0, %v7827_v61 }
 0x501   : > { %5172 = vmatprep.mubr.f32.mxu1 %v8150_v15  ;;  %5621 = vmatprep.mubr.f32.mxu0 %v8150_v15 }
 0x502   : > { %v10548_v9 = vpop.f32.mrb[52].mxu0 }
 0x503   : > { %v4629_v10 = vpop.f32.mrb[53].mxu0 }
 0x504   : > { %7027 = vmatmul.mubr.msk.f32.gmra.mrb[116].mxu1 %vm273_vm0, %v4579_v0  ;;  %7091 = vmatmul.mubr.msk.f32.gmra.mrb[116].mxu0 %vm273_vm0, %v4579_v0 }
 0x505   : > { %5178 = vmatprep.mubr.f32.mxu1 %v8150_v15  ;;  %5627 = vmatprep.mubr.f32.mxu0 %v8150_v15 }
 0x506   : > { %v10554_v11 = vpop.f32.mrb[54].mxu0 }
 0x507   : > { %v10556_v12 = vpop.f32.mrb[55].mxu0 }
 0x508   : > { %7028 = vmatmul.mubr.msk.f32.gmra.mrb[118].mxu1 %vm273_vm0, %v7830_v63  ;;  %7092 = vmatmul.mubr.msk.f32.gmra.mrb[118].mxu0 %vm273_vm0, %v7830_v63 }
 0x509   : > { %5184 = vmatprep.mubr.f32.mxu1 %v8150_v15  ;;  %5633 = vmatprep.mubr.f32.mxu0 %v8150_v15 }
 0x50a   : > { %v10562_v13 = vpop.f32.mrb[56].mxu0 }
 0x50b   : > { %v10564_v14 = vpop.f32.mrb[57].mxu0 }
 0x50c   : > { %7029 = vmatmul.mubr.msk.f32.gmra.mrb[120].mxu1 %vm273_vm0, %v4589_v2  ;;  %7093 = vmatmul.mubr.msk.f32.gmra.mrb[120].mxu0 %vm273_vm0, %v4589_v2 }
 0x50d   : > { %5190 = vmatprep.mubr.f32.mxu1 %v8150_v15  ;;  %5639 = vmatprep.mubr.f32.mxu0 %v8150_v15 }
 0x50e   : > { %v10570_v16 = vpop.f32.mrb[58].mxu0 }
 0x50f   : > { %v10572_v18 = vpop.f32.mrb[59].mxu0 }
 0x510   : > { %7030 = vmatmul.mubr.msk.f32.gmra.mrb[122].mxu1 %vm273_vm0, %v7833_v1  ;;  %7094 = vmatmul.mubr.msk.f32.gmra.mrb[122].mxu0 %vm273_vm0, %v7833_v1 }
 0x511   : > { %5196 = vmatprep.mubr.f32.mxu1 %v8150_v15  ;;  %5645 = vmatprep.mubr.f32.mxu0 %v8150_v15 }
 0x512   : > { %v10578_v19 = vpop.f32.mrb[60].mxu0 }
 0x513   : > { %v10580_v21 = vpop.f32.mrb[61].mxu0 }
 0x514   : > { %7031 = vmatmul.mubr.msk.f32.gmra.mrb[124].mxu1 %vm273_vm0, %v4599_v4  ;;  %7095 = vmatmul.mubr.msk.f32.gmra.mrb[124].mxu0 %vm273_vm0, %v4599_v4 }
 0x515   : > { %5202 = vmatprep.mubr.f32.mxu1 %v8150_v15  ;;  %5651 = vmatprep.mubr.f32.mxu0 %v8150_v15 }
 0x516   : > { %v10586_v22 = vpop.f32.mrb[62].mxu0 }
 0x517   : > { %v10588_v23 = vpop.f32.mrb[63].mxu0 }
 0x518   : > { %7032 = vmatmul.mubr.msk.f32.gmra.mrb[126].mxu1 %vm273_vm0, %v7836_v3  ;;  %7096 = vmatmul.mubr.msk.f32.gmra.mrb[126].mxu0 %vm273_vm0, %v7836_v3 }
 0x519   : > { %5208 = vmatprep.mubr.f32.mxu1 %v8150_v15  ;;  %5657 = vmatprep.mubr.f32.mxu0 %v8150_v15 }
 0x51a   : > { %v10594_v24 = vpop.f32.mrb[64].mxu0 }
 0x51b   : > { %v10596_v25 = vpop.f32.mrb[65].mxu0 }
 0x51c   : > { %7033 = vmatmul.mubr.msk.f32.gmra.mrb[128].mxu1 %vm273_vm0, %v4609_v6  ;;  %7097 = vmatmul.mubr.msk.f32.gmra.mrb[128].mxu0 %vm273_vm0, %v4609_v6 }
 0x51d   : > { %5214 = vmatprep.mubr.f32.mxu1 %v8150_v15  ;;  %5663 = vmatprep.mubr.f32.mxu0 %v8150_v15 }
 0x51e   : > { %v10602_v26 = vpop.f32.mrb[66].mxu0 }
 0x51f   : > { %v10604_v27 = vpop.f32.mrb[67].mxu0 }
 0x520   : > { %7034 = vmatmul.mubr.msk.f32.gmra.mrb[130].mxu1 %vm273_vm0, %v7839_v5  ;;  %7098 = vmatmul.mubr.msk.f32.gmra.mrb[130].mxu0 %vm273_vm0, %v7839_v5 }
 0x521   : > { %5220 = vmatprep.mubr.f32.mxu1 %v8150_v15  ;;  %5669 = vmatprep.mubr.f32.mxu0 %v8150_v15 }
 0x522   : > { %v10610_v20 = vpop.f32.mrb[68].mxu0 }
 0x523   : > { %v10612_v28 = vpop.f32.mrb[69].mxu0 }
 0x524   : > { %7035 = vmatmul.mubr.msk.f32.gmra.mrb[132].mxu1 %vm273_vm0, %v4619_v8  ;;  %7099 = vmatmul.mubr.msk.f32.gmra.mrb[132].mxu0 %vm273_vm0, %v4619_v8 }
 0x525   : > { %5226 = vmatprep.mubr.f32.mxu1 %v8150_v15  ;;  %5675 = vmatprep.mubr.f32.mxu0 %v8150_v15 }
 0x526   : > { %v10618_v29 = vpop.f32.mrb[70].mxu0 }
 0x527   : > { %v10620_v30 = vpop.f32.mrb[71].mxu0 }
 0x528   : > { %7036 = vmatmul.mubr.msk.f32.gmra.mrb[134].mxu1 %vm273_vm0, %v10542_v7  ;;  %7100 = vmatmul.mubr.msk.f32.gmra.mrb[134].mxu0 %vm273_vm0, %v10542_v7 }
 0x529   : > { %5232 = vmatprep.mubr.f32.mxu1 %v8150_v15  ;;  %5681 = vmatprep.mubr.f32.mxu0 %v8150_v15 }
 0x52a   : > { %v10628_v31 = vpop.f32.mrb[72].mxu0 }
 0x52b   : > { %v10630_v32 = vpop.f32.mrb[73].mxu0 }
 0x52c   : > { %7037 = vmatmul.mubr.msk.f32.gmra.mrb[136].mxu1 %vm273_vm0, %v4629_v10  ;;  %7101 = vmatmul.mubr.msk.f32.gmra.mrb[136].mxu0 %vm273_vm0, %v4629_v10 }
 0x52d   : > { %5238 = vmatprep.mubr.f32.mxu1 %v8150_v15  ;;  %5687 = vmatprep.mubr.f32.mxu0 %v8150_v15 }
 0x52e   : > { %v10636_v33 = vpop.f32.mrb[74].mxu0 }
 0x52f   : > { %v10638_v34 = vpop.f32.mrb[75].mxu0 }
 0x530   : > { %7038 = vmatmul.mubr.msk.f32.gmra.mrb[138].mxu1 %vm273_vm0, %v10548_v9  ;;  %7102 = vmatmul.mubr.msk.f32.gmra.mrb[138].mxu0 %vm273_vm0, %v10548_v9 }
 0x531   : > { %5244 = vmatprep.mubr.f32.mxu1 %v8150_v15  ;;  %5693 = vmatprep.mubr.f32.mxu0 %v8150_v15 }
 0x532   : > { %v10646_v35 = vpop.f32.mrb[76].mxu0 }
 0x533   : > { %v10648_v36 = vpop.f32.mrb[77].mxu0 }
 0x534   : > { %7039 = vmatmul.mubr.msk.f32.gmra.mrb[140].mxu1 %vm273_vm0, %v10556_v12  ;;  %7103 = vmatmul.mubr.msk.f32.gmra.mrb[140].mxu0 %vm273_vm0, %v10556_v12 }
 0x535   : > { %5250 = vmatprep.mubr.f32.mxu1 %v8150_v15  ;;  %5699 = vmatprep.mubr.f32.mxu0 %v8150_v15 }
 0x536   : > { %v10656_v37 = vpop.f32.mrb[78].mxu0 }
 0x537   : > { %v10658_v38 = vpop.f32.mrb[79].mxu0 }
 0x538   : > { %7040 = vmatmul.mubr.msk.f32.gmra.mrb[142].mxu1 %vm273_vm0, %v10554_v11  ;;  %7104 = vmatmul.mubr.msk.f32.gmra.mrb[142].mxu0 %vm273_vm0, %v10554_v11 }
 0x539   : > { %5256 = vmatprep.mubr.f32.mxu1 %v8150_v15  ;;  %5705 = vmatprep.mubr.f32.mxu0 %v8150_v15 }
 0x53a   : > { %v10666_v39 = vpop.f32.mrb[80].mxu0 }
 0x53b   : > { %v10668_v40 = vpop.f32.mrb[81].mxu0 }
 0x53c   : > { %7041 = vmatmul.mubr.msk.f32.gmra.mrb[144].mxu1 %vm273_vm0, %v10564_v14  ;;  %7105 = vmatmul.mubr.msk.f32.gmra.mrb[144].mxu0 %vm273_vm0, %v10564_v14 }
 0x53d   : > { %5262 = vmatprep.mubr.f32.mxu1 %v8150_v15  ;;  %5711 = vmatprep.mubr.f32.mxu0 %v8150_v15 }
 0x53e   : > { %v10676_v41 = vpop.f32.mrb[82].mxu0 }
 0x53f   : > { %v10678_v17 = vpop.f32.mrb[83].mxu0 }
 0x540   : > { %7042 = vmatmul.mubr.msk.f32.gmra.mrb[146].mxu1 %vm273_vm0, %v10562_v13  ;;  %7106 = vmatmul.mubr.msk.f32.gmra.mrb[146].mxu0 %vm273_vm0, %v10562_v13 }
 0x541   : > { %5268 = vmatprep.mubr.f32.mxu1 %v8150_v15  ;;  %5717 = vmatprep.mubr.f32.mxu0 %v8150_v15 }
 0x542   : > { %v10686_v42 = vpop.f32.mrb[84].mxu0 }
 0x543   : > { %v10688_v43 = vpop.f32.mrb[85].mxu0 }
 0x544   : > { %7043 = vmatmul.mubr.msk.f32.gmra.mrb[148].mxu1 %vm273_vm0, %v10572_v18  ;;  %7107 = vmatmul.mubr.msk.f32.gmra.mrb[148].mxu0 %vm273_vm0, %v10572_v18 }
 0x545   : > { %5274 = vmatprep.mubr.f32.mxu1 %v8150_v15  ;;  %5723 = vmatprep.mubr.f32.mxu0 %v8150_v15 }
 0x546   : > { %v10696_v44 = vpop.f32.mrb[86].mxu0 }
 0x547   : > { %v10698_v45 = vpop.f32.mrb[87].mxu0 }
 0x548   : > { %7044 = vmatmul.mubr.msk.f32.gmra.mrb[150].mxu1 %vm273_vm0, %v10570_v16  ;;  %7108 = vmatmul.mubr.msk.f32.gmra.mrb[150].mxu0 %vm273_vm0, %v10570_v16 }
 0x549   : > { %5280 = vmatprep.mubr.f32.mxu1 %v8150_v15  ;;  %5729 = vmatprep.mubr.f32.mxu0 %v8150_v15 }
 0x54a   : > { %v10706_v46 = vpop.f32.mrb[88].mxu0 }
 0x54b   : > { %v10708_v47 = vpop.f32.mrb[89].mxu0 }
 0x54c   : > { %7045 = vmatmul.mubr.msk.f32.gmra.mrb[152].mxu1 %vm273_vm0, %v10580_v21  ;;  %7109 = vmatmul.mubr.msk.f32.gmra.mrb[152].mxu0 %vm273_vm0, %v10580_v21 }
 0x54d   : > { %5286 = vmatprep.mubr.f32.mxu1 %v8150_v15  ;;  %5735 = vmatprep.mubr.f32.mxu0 %v8150_v15 }
 0x54e   : > { %v10716_v48 = vpop.f32.mrb[90].mxu0 }
 0x54f   : > { %v10718_v49 = vpop.f32.mrb[91].mxu0 }
 0x550   : > { %7046 = vmatmul.mubr.msk.f32.gmra.mrb[154].mxu1 %vm273_vm0, %v10578_v19  ;;  %7110 = vmatmul.mubr.msk.f32.gmra.mrb[154].mxu0 %vm273_vm0, %v10578_v19 }
 0x551   : > { %5292 = vmatprep.mubr.f32.mxu1 %v8150_v15  ;;  %5741 = vmatprep.mubr.f32.mxu0 %v8150_v15 }
 0x552   : > { %v10726_v50 = vpop.f32.mrb[92].mxu0 }
 0x553   : > { %v10728_v51 = vpop.f32.mrb[93].mxu0 }
 0x554   : > { %7047 = vmatmul.mubr.msk.f32.gmra.mrb[156].mxu1 %vm273_vm0, %v10588_v23  ;;  %7111 = vmatmul.mubr.msk.f32.gmra.mrb[156].mxu0 %vm273_vm0, %v10588_v23 }
 0x555   : > { %5298 = vmatprep.mubr.f32.mxu1 %v8150_v15  ;;  %5747 = vmatprep.mubr.f32.mxu0 %v8150_v15 }
 0x556   : > { %v10736_v52 = vpop.f32.mrb[94].mxu0 }
 0x557   : > { %v10738_v53 = vpop.f32.mrb[95].mxu0 }
 0x558   : > { %7048 = vmatmul.mubr.msk.f32.gmra.mrb[158].mxu1 %vm273_vm0, %v10586_v22  ;;  %7112 = vmatmul.mubr.msk.f32.gmra.mrb[158].mxu0 %vm273_vm0, %v10586_v22 }
 0x559   : > { %5304 = vmatprep.mubr.f32.mxu1 %v8150_v15  ;;  %5753 = vmatprep.mubr.f32.mxu0 %v8150_v15 }
 0x55c   : > { %7049 = vmatmul.mubr.msk.f32.gmra.mrb[160].mxu1 %vm273_vm0, %v10596_v25  ;;  %7113 = vmatmul.mubr.msk.f32.gmra.mrb[160].mxu0 %vm273_vm0, %v10596_v25 }
 0x55d   : > { %5310 = vmatprep.mubr.f32.mxu1 %v8150_v15  ;;  %5759 = vmatprep.mubr.f32.mxu0 %v8150_v15 }
 0x560   : > { %7050 = vmatmul.mubr.msk.f32.gmra.mrb[162].mxu1 %vm273_vm0, %v10594_v24  ;;  %7114 = vmatmul.mubr.msk.f32.gmra.mrb[162].mxu0 %vm273_vm0, %v10594_v24 }
 0x561   : > { %5316 = vmatprep.mubr.f32.mxu1 %v8150_v15  ;;  %5765 = vmatprep.mubr.f32.mxu0 %v8150_v15 }
 0x564   : > { %7051 = vmatmul.mubr.msk.f32.gmra.mrb[164].mxu1 %vm273_vm0, %v10604_v27  ;;  %7115 = vmatmul.mubr.msk.f32.gmra.mrb[164].mxu0 %vm273_vm0, %v10604_v27 }
 0x565   : > { %5322 = vmatprep.mubr.f32.mxu1 %v8150_v15  ;;  %5771 = vmatprep.mubr.f32.mxu0 %v8150_v15 }
 0x568   : > { %7052 = vmatmul.mubr.msk.f32.gmra.mrb[166].mxu1 %vm273_vm0, %v10602_v26  ;;  %7116 = vmatmul.mubr.msk.f32.gmra.mrb[166].mxu0 %vm273_vm0, %v10602_v26 }
 0x569   : > { %5328 = vmatprep.mubr.f32.mxu1 %v8150_v15  ;;  %5777 = vmatprep.mubr.f32.mxu0 %v8150_v15 }
 0x56c   : > { %7053 = vmatmul.mubr.msk.f32.gmra.mrb[168].mxu1 %vm273_vm0, %v10612_v28  ;;  %7117 = vmatmul.mubr.msk.f32.gmra.mrb[168].mxu0 %vm273_vm0, %v10612_v28 }
 0x56d   : > { %5334 = vmatprep.mubr.f32.mxu1 %v8150_v15  ;;  %5783 = vmatprep.mubr.f32.mxu0 %v8150_v15 }
 0x570   : > { %7054 = vmatmul.mubr.msk.f32.gmra.mrb[170].mxu1 %vm273_vm0, %v10610_v20  ;;  %7118 = vmatmul.mubr.msk.f32.gmra.mrb[170].mxu0 %vm273_vm0, %v10610_v20 }
 0x571   : > { %5340 = vmatprep.mubr.f32.mxu1 %v8150_v15  ;;  %5789 = vmatprep.mubr.f32.mxu0 %v8150_v15 }
 0x574   : > { %7055 = vmatmul.mubr.msk.f32.gmra.mrb[172].mxu1 %vm273_vm0, %v10620_v30  ;;  %7119 = vmatmul.mubr.msk.f32.gmra.mrb[172].mxu0 %vm273_vm0, %v10620_v30 }
 0x575   : > { %5346 = vmatprep.mubr.f32.mxu1 %v8150_v15  ;;  %5795 = vmatprep.mubr.f32.mxu0 %v8150_v15 }
 0x578   : > { %7056 = vmatmul.mubr.msk.f32.gmra.mrb[174].mxu1 %vm273_vm0, %v10618_v29  ;;  %7120 = vmatmul.mubr.msk.f32.gmra.mrb[174].mxu0 %vm273_vm0, %v10618_v29 }
 0x579   : > { %5352 = vmatprep.mubr.f32.mxu1 %v8150_v15  ;;  %5801 = vmatprep.mubr.f32.mxu0 %v8150_v15 }
 0x57c   : > { %7057 = vmatmul.mubr.msk.f32.gmra.mrb[176].mxu1 %vm273_vm0, %v10630_v32  ;;  %7121 = vmatmul.mubr.msk.f32.gmra.mrb[176].mxu0 %vm273_vm0, %v10630_v32 }
 0x57d   : > { %5358 = vmatprep.mubr.f32.mxu1 %v8150_v15  ;;  %5807 = vmatprep.mubr.f32.mxu0 %v8150_v15 }
 0x580   : > { %7058 = vmatmul.mubr.msk.f32.gmra.mrb[178].mxu1 %vm273_vm0, %v10628_v31  ;;  %7122 = vmatmul.mubr.msk.f32.gmra.mrb[178].mxu0 %vm273_vm0, %v10628_v31 }
 0x581   : > { %5364 = vmatprep.mubr.f32.mxu1 %v8150_v15  ;;  %5813 = vmatprep.mubr.f32.mxu0 %v8150_v15 }
 0x584   : > { %7059 = vmatmul.mubr.msk.f32.gmra.mrb[180].mxu1 %vm273_vm0, %v10638_v34  ;;  %7123 = vmatmul.mubr.msk.f32.gmra.mrb[180].mxu0 %vm273_vm0, %v10638_v34 }
 0x585   : > { %5370 = vmatprep.mubr.f32.mxu1 %v8150_v15  ;;  %5819 = vmatprep.mubr.f32.mxu0 %v8150_v15 }
 0x588   : > { %7060 = vmatmul.mubr.msk.f32.gmra.mrb[182].mxu1 %vm273_vm0, %v10636_v33  ;;  %7124 = vmatmul.mubr.msk.f32.gmra.mrb[182].mxu0 %vm273_vm0, %v10636_v33 }
 0x589   : > { %5376 = vmatprep.mubr.f32.mxu1 %v8150_v15  ;;  %5825 = vmatprep.mubr.f32.mxu0 %v8150_v15 }
 0x58c   : > { %7061 = vmatmul.mubr.msk.f32.gmra.mrb[184].mxu1 %vm273_vm0, %v10648_v36  ;;  %7125 = vmatmul.mubr.msk.f32.gmra.mrb[184].mxu0 %vm273_vm0, %v10648_v36 }
 0x58d   : > { %5382 = vmatprep.mubr.f32.mxu1 %v8150_v15  ;;  %5831 = vmatprep.mubr.f32.mxu0 %v8150_v15 }
 0x590   : > { %7062 = vmatmul.mubr.msk.f32.gmra.mrb[186].mxu1 %vm273_vm0, %v10646_v35  ;;  %7126 = vmatmul.mubr.msk.f32.gmra.mrb[186].mxu0 %vm273_vm0, %v10646_v35 }
 0x591   : > { %5388 = vmatprep.mubr.f32.mxu1 %v8150_v15  ;;  %5837 = vmatprep.mubr.f32.mxu0 %v8150_v15 }
 0x594   : > { %7063 = vmatmul.mubr.msk.f32.gmra.mrb[188].mxu1 %vm273_vm0, %v10658_v38  ;;  %7127 = vmatmul.mubr.msk.f32.gmra.mrb[188].mxu0 %vm273_vm0, %v10658_v38 }
 0x595   : > { %5394 = vmatprep.mubr.f32.mxu1 %v8150_v15  ;;  %5843 = vmatprep.mubr.f32.mxu0 %v8150_v15 }
 0x598   : > { %7064 = vmatmul.mubr.msk.f32.gmra.mrb[190].mxu1 %vm273_vm0, %v10656_v37  ;;  %7128 = vmatmul.mubr.msk.f32.gmra.mrb[190].mxu0 %vm273_vm0, %v10656_v37 }
 0x599   : > { %5400 = vmatprep.mubr.f32.mxu1 %v8150_v15  ;;  %5849 = vmatprep.mubr.f32.mxu0 %v8150_v15 }
 0x59c   : > { %7065 = vmatmul.mubr.msk.f32.gmra.mrb[192].mxu1 %vm273_vm0, %v10668_v40  ;;  %7129 = vmatmul.mubr.msk.f32.gmra.mrb[192].mxu0 %vm273_vm0, %v10668_v40 }
 0x59d   : > { %5406 = vmatprep.mubr.f32.mxu1 %v8150_v15  ;;  %5855 = vmatprep.mubr.f32.mxu0 %v8150_v15 }
 0x5a0   : > { %7066 = vmatmul.mubr.msk.f32.gmra.mrb[194].mxu1 %vm273_vm0, %v10666_v39  ;;  %7130 = vmatmul.mubr.msk.f32.gmra.mrb[194].mxu0 %vm273_vm0, %v10666_v39 }
 0x5a1   : > { %5412 = vmatprep.mubr.f32.mxu1 %v8150_v15  ;;  %5861 = vmatprep.mubr.f32.mxu0 %v8150_v15 }
 0x5a4   : > { %7067 = vmatmul.mubr.msk.f32.gmra.mrb[196].mxu1 %vm273_vm0, %v10678_v17  ;;  %7131 = vmatmul.mubr.msk.f32.gmra.mrb[196].mxu0 %vm273_vm0, %v10678_v17 }
 0x5a5   : > { %5418 = vmatprep.mubr.f32.mxu1 %v8150_v15  ;;  %5867 = vmatprep.mubr.f32.mxu0 %v8150_v15 }
 0x5a8   : > { %7068 = vmatmul.mubr.msk.f32.gmra.mrb[198].mxu1 %vm273_vm0, %v10676_v41  ;;  %7132 = vmatmul.mubr.msk.f32.gmra.mrb[198].mxu0 %vm273_vm0, %v10676_v41 }
 0x5a9   : > { %5424 = vmatprep.mubr.f32.mxu1 %v8150_v15  ;;  %5873 = vmatprep.mubr.f32.mxu0 %v8150_v15 }
 0x5ac   : > { %7069 = vmatmul.mubr.msk.f32.gmra.mrb[200].mxu1 %vm273_vm0, %v10688_v43  ;;  %7133 = vmatmul.mubr.msk.f32.gmra.mrb[200].mxu0 %vm273_vm0, %v10688_v43 }
 0x5ad   : > { %5430 = vmatprep.mubr.f32.mxu1 %v8150_v15  ;;  %5879 = vmatprep.mubr.f32.mxu0 %v8150_v15 }
 0x5af   : > { %v5114_v54 = vpop.f32.mrb[96].mxu1  ;;  %v5563_v55 = vpop.f32.mrb[96].mxu0 }
 0x5b0   : > { %7145 = vst [vmem:[%s8976_s4 + $0x1000] sm:$0xff] %v5114_v54  ;;  %7147 = vst [vmem:[%s8976_s4 + $0x1010] sm:$0xff] %v5563_v55  ;;  %v5116_v56 = vpop.f32.mrb[97].mxu1  ;;  %7070 = vmatmul.mubr.msk.f32.gmra.mrb[202].mxu1 %vm273_vm0, %v10686_v42  ;;  %v5565_v57 = vpop.f32.mrb[97].mxu0  ;;  %7134 = vmatmul.mubr.msk.f32.gmra.mrb[202].mxu0 %vm273_vm0, %v10686_v42 }
 0x5b1   : > { %7146 = vst [vmem:[%s8976_s4 + $0x1008] sm:$0xff] %v5116_v56  ;;  %7148 = vst [vmem:[%s8976_s4 + $0x1018] sm:$0xff] %v5565_v57  ;;  %5436 = vmatprep.mubr.f32.mxu1 %v8150_v15  ;;  %5885 = vmatprep.mubr.f32.mxu0 %v8150_v15 }
 0x5b3   : > { %v5120_v58 = vpop.f32.mrb[98].mxu1  ;;  %v5569_v59 = vpop.f32.mrb[98].mxu0 }
 0x5b4   : > { %7149 = vst [vmem:[%s8976_s4 + $0x1020] sm:$0xff] %v5120_v58  ;;  %7151 = vst [vmem:[%s8976_s4 + $0x1030] sm:$0xff] %v5569_v59  ;;  %v5122_v60 = vpop.f32.mrb[99].mxu1  ;;  %7071 = vmatmul.mubr.msk.f32.gmra.mrb[204].mxu1 %vm273_vm0, %v10698_v45  ;;  %v5571_v61 = vpop.f32.mrb[99].mxu0  ;;  %7135 = vmatmul.mubr.msk.f32.gmra.mrb[204].mxu0 %vm273_vm0, %v10698_v45 }
 0x5b5   : > { %7150 = vst [vmem:[%s8976_s4 + $0x1028] sm:$0xff] %v5122_v60  ;;  %7152 = vst [vmem:[%s8976_s4 + $0x1038] sm:$0xff] %v5571_v61  ;;  %5442 = vmatprep.mubr.f32.mxu1 %v8150_v15  ;;  %5891 = vmatprep.mubr.f32.mxu0 %v8150_v15 }
 0x5b7   : > { %v5126_v62 = vpop.f32.mrb[100].mxu1  ;;  %v5575_v63 = vpop.f32.mrb[100].mxu0 }
 0x5b8   : > { %7153 = vst [vmem:[%s8976_s4 + $0x1040] sm:$0xff] %v5126_v62  ;;  %7155 = vst [vmem:[%s8976_s4 + $0x1050] sm:$0xff] %v5575_v63  ;;  %v5128_v0 = vpop.f32.mrb[101].mxu1  ;;  %7072 = vmatmul.mubr.msk.f32.gmra.mrb[206].mxu1 %vm273_vm0, %v10696_v44  ;;  %v5577_v1 = vpop.f32.mrb[101].mxu0  ;;  %7136 = vmatmul.mubr.msk.f32.gmra.mrb[206].mxu0 %vm273_vm0, %v10696_v44 }
 0x5b9   : > { %7154 = vst [vmem:[%s8976_s4 + $0x1048] sm:$0xff] %v5128_v0  ;;  %7156 = vst [vmem:[%s8976_s4 + $0x1058] sm:$0xff] %v5577_v1  ;;  %5448 = vmatprep.mubr.f32.mxu1 %v8150_v15  ;;  %5897 = vmatprep.mubr.f32.mxu0 %v8150_v15 }
 0x5bb   : > { %v5132_v2 = vpop.f32.mrb[102].mxu1  ;;  %v5581_v3 = vpop.f32.mrb[102].mxu0 }
 0x5bc   : > { %7157 = vst [vmem:[%s8976_s4 + $0x1060] sm:$0xff] %v5132_v2  ;;  %7159 = vst [vmem:[%s8976_s4 + $0x1070] sm:$0xff] %v5581_v3  ;;  %v5134_v4 = vpop.f32.mrb[103].mxu1  ;;  %7073 = vmatmul.mubr.msk.f32.gmra.mrb[208].mxu1 %vm273_vm0, %v10708_v47  ;;  %v5583_v5 = vpop.f32.mrb[103].mxu0  ;;  %7137 = vmatmul.mubr.msk.f32.gmra.mrb[208].mxu0 %vm273_vm0, %v10708_v47 }
 0x5bd   : > { %7158 = vst [vmem:[%s8976_s4 + $0x1068] sm:$0xff] %v5134_v4  ;;  %7160 = vst [vmem:[%s8976_s4 + $0x1078] sm:$0xff] %v5583_v5  ;;  %5454 = vmatprep.mubr.f32.mxu1 %v8150_v15  ;;  %5903 = vmatprep.mubr.f32.mxu0 %v8150_v15 }
 0x5bf   : > { %v5138_v6 = vpop.f32.mrb[104].mxu1  ;;  %v5587_v7 = vpop.f32.mrb[104].mxu0 }
 0x5c0   : > { %7161 = vst [vmem:[%s8976_s4 + $0x1080] sm:$0xff] %v5138_v6  ;;  %7163 = vst [vmem:[%s8976_s4 + $0x1090] sm:$0xff] %v5587_v7  ;;  %v5140_v8 = vpop.f32.mrb[105].mxu1  ;;  %7074 = vmatmul.mubr.msk.f32.gmra.mrb[210].mxu1 %vm273_vm0, %v10706_v46  ;;  %v5589_v9 = vpop.f32.mrb[105].mxu0  ;;  %7138 = vmatmul.mubr.msk.f32.gmra.mrb[210].mxu0 %vm273_vm0, %v10706_v46 }
 0x5c1   : > { %7162 = vst [vmem:[%s8976_s4 + $0x1088] sm:$0xff] %v5140_v8  ;;  %7164 = vst [vmem:[%s8976_s4 + $0x1098] sm:$0xff] %v5589_v9  ;;  %5460 = vmatprep.mubr.f32.mxu1 %v8150_v15  ;;  %5909 = vmatprep.mubr.f32.mxu0 %v8150_v15 }
 0x5c3   : > { %v5144_v10 = vpop.f32.mrb[106].mxu1  ;;  %v5593_v11 = vpop.f32.mrb[106].mxu0 }
 0x5c4   : > { %7165 = vst [vmem:[%s8976_s4 + $0x10a0] sm:$0xff] %v5144_v10  ;;  %7167 = vst [vmem:[%s8976_s4 + $0x10b0] sm:$0xff] %v5593_v11  ;;  %v5146_v12 = vpop.f32.mrb[107].mxu1  ;;  %7075 = vmatmul.mubr.msk.f32.gmra.mrb[212].mxu1 %vm273_vm0, %v10718_v49  ;;  %v5595_v13 = vpop.f32.mrb[107].mxu0  ;;  %7139 = vmatmul.mubr.msk.f32.gmra.mrb[212].mxu0 %vm273_vm0, %v10718_v49 }
 0x5c5   : > { %7166 = vst [vmem:[%s8976_s4 + $0x10a8] sm:$0xff] %v5146_v12  ;;  %7168 = vst [vmem:[%s8976_s4 + $0x10b8] sm:$0xff] %v5595_v13  ;;  %5466 = vmatprep.mubr.f32.mxu1 %v8150_v15  ;;  %5915 = vmatprep.mubr.f32.mxu0 %v8150_v15 }
 0x5c7   : > { %v5150_v14 = vpop.f32.mrb[108].mxu1  ;;  %v5599_v16 = vpop.f32.mrb[108].mxu0 }
 0x5c8   : > { %7169 = vst [vmem:[%s8976_s4 + $0x10c0] sm:$0xff] %v5150_v14  ;;  %7171 = vst [vmem:[%s8976_s4 + $0x10d0] sm:$0xff] %v5599_v16  ;;  %v5152_v18 = vpop.f32.mrb[109].mxu1  ;;  %7076 = vmatmul.mubr.msk.f32.gmra.mrb[214].mxu1 %vm273_vm0, %v10716_v48  ;;  %v5601_v19 = vpop.f32.mrb[109].mxu0  ;;  %7140 = vmatmul.mubr.msk.f32.gmra.mrb[214].mxu0 %vm273_vm0, %v10716_v48 }
 0x5c9   : > { %7170 = vst [vmem:[%s8976_s4 + $0x10c8] sm:$0xff] %v5152_v18  ;;  %7172 = vst [vmem:[%s8976_s4 + $0x10d8] sm:$0xff] %v5601_v19  ;;  %5472 = vmatprep.mubr.f32.mxu1 %v8150_v15  ;;  %5921 = vmatprep.mubr.f32.mxu0 %v8150_v15 }
 0x5cb   : > { %v5156_v21 = vpop.f32.mrb[110].mxu1  ;;  %v5605_v22 = vpop.f32.mrb[110].mxu0 }
 0x5cc   : > { %7173 = vst [vmem:[%s8976_s4 + $0x10e0] sm:$0xff] %v5156_v21  ;;  %7175 = vst [vmem:[%s8976_s4 + $0x10f0] sm:$0xff] %v5605_v22  ;;  %v5158_v23 = vpop.f32.mrb[111].mxu1  ;;  %7077 = vmatmul.mubr.msk.f32.gmra.mrb[216].mxu1 %vm273_vm0, %v10728_v51  ;;  %v5607_v24 = vpop.f32.mrb[111].mxu0  ;;  %7141 = vmatmul.mubr.msk.f32.gmra.mrb[216].mxu0 %vm273_vm0, %v10728_v51 }
 0x5cd   : > { %7174 = vst [vmem:[%s8976_s4 + $0x10e8] sm:$0xff] %v5158_v23  ;;  %7176 = vst [vmem:[%s8976_s4 + $0x10f8] sm:$0xff] %v5607_v24  ;;  %5478 = vmatprep.mubr.f32.mxu1 %v8150_v15  ;;  %5927 = vmatprep.mubr.f32.mxu0 %v8150_v15 }
 0x5cf   : > { %v5162_v25 = vpop.f32.mrb[112].mxu1  ;;  %v5611_v26 = vpop.f32.mrb[112].mxu0 }
 0x5d0   : > { %7177 = vst [vmem:[%s8976_s4 + $0x1100] sm:$0xff] %v5162_v25  ;;  %7179 = vst [vmem:[%s8976_s4 + $0x1110] sm:$0xff] %v5611_v26  ;;  %v5164_v27 = vpop.f32.mrb[113].mxu1  ;;  %7078 = vmatmul.mubr.msk.f32.gmra.mrb[218].mxu1 %vm273_vm0, %v10726_v50  ;;  %v5613_v20 = vpop.f32.mrb[113].mxu0  ;;  %7142 = vmatmul.mubr.msk.f32.gmra.mrb[218].mxu0 %vm273_vm0, %v10726_v50 }
 0x5d1   : > { %7178 = vst [vmem:[%s8976_s4 + $0x1108] sm:$0xff] %v5164_v27  ;;  %7180 = vst [vmem:[%s8976_s4 + $0x1118] sm:$0xff] %v5613_v20  ;;  %5484 = vmatprep.mubr.f32.mxu1 %v8150_v15  ;;  %5933 = vmatprep.mubr.f32.mxu0 %v8150_v15 }
 0x5d3   : > { %v5168_v28 = vpop.f32.mrb[114].mxu1  ;;  %v5617_v29 = vpop.f32.mrb[114].mxu0 }
 0x5d4   : > { %7181 = vst [vmem:[%s8976_s4 + $0x1120] sm:$0xff] %v5168_v28  ;;  %7183 = vst [vmem:[%s8976_s4 + $0x1130] sm:$0xff] %v5617_v29  ;;  %v5170_v30 = vpop.f32.mrb[115].mxu1  ;;  %7079 = vmatmul.mubr.msk.f32.gmra.mrb[220].mxu1 %vm273_vm0, %v10738_v53  ;;  %v5619_v31 = vpop.f32.mrb[115].mxu0  ;;  %7143 = vmatmul.mubr.msk.f32.gmra.mrb[220].mxu0 %vm273_vm0, %v10738_v53 }
 0x5d5   : > { %7182 = vst [vmem:[%s8976_s4 + $0x1128] sm:$0xff] %v5170_v30  ;;  %7184 = vst [vmem:[%s8976_s4 + $0x1138] sm:$0xff] %v5619_v31  ;;  %5490 = vmatprep.mubr.f32.mxu1 %v8150_v15  ;;  %5939 = vmatprep.mubr.f32.mxu0 %v8150_v15 }
 0x5d7   : > { %v5174_v32 = vpop.f32.mrb[116].mxu1  ;;  %v5623_v33 = vpop.f32.mrb[116].mxu0 }
 0x5d8   : > { %7185 = vst [vmem:[%s8976_s4 + $0x1140] sm:$0xff] %v5174_v32  ;;  %7187 = vst [vmem:[%s8976_s4 + $0x1150] sm:$0xff] %v5623_v33  ;;  %v5176_v34 = vpop.f32.mrb[117].mxu1  ;;  %7080 = vmatmul.mubr.msk.f32.gmra.mrb[222].mxu1 %vm273_vm0, %v10736_v52  ;;  %v5625_v35 = vpop.f32.mrb[117].mxu0  ;;  %7144 = vmatmul.mubr.msk.f32.gmra.mrb[222].mxu0 %vm273_vm0, %v10736_v52 }
 0x5d9   : > { %7186 = vst [vmem:[%s8976_s4 + $0x1148] sm:$0xff] %v5176_v34  ;;  %7188 = vst [vmem:[%s8976_s4 + $0x1158] sm:$0xff] %v5625_v35 }
 0x5db   : > { %v5180_v15 = vpop.f32.mrb[118].mxu1  ;;  %v5629_v36 = vpop.f32.mrb[118].mxu0 }
 0x5dc   : > { %7189 = vst [vmem:[%s8976_s4 + $0x1160] sm:$0xff] %v5180_v15  ;;  %7191 = vst [vmem:[%s8976_s4 + $0x1170] sm:$0xff] %v5629_v36  ;;  %v5182_v37 = vpop.f32.mrb[119].mxu1  ;;  %v5631_v38 = vpop.f32.mrb[119].mxu0 }
 0x5dd   : > { %7190 = vst [vmem:[%s8976_s4 + $0x1168] sm:$0xff] %v5182_v37  ;;  %7192 = vst [vmem:[%s8976_s4 + $0x1178] sm:$0xff] %v5631_v38 }
 0x5df   : > { %v5186_v39 = vpop.f32.mrb[120].mxu1  ;;  %v5635_v40 = vpop.f32.mrb[120].mxu0 }
 0x5e0   : > { %7193 = vst [vmem:[%s8976_s4 + $0x1180] sm:$0xff] %v5186_v39  ;;  %7195 = vst [vmem:[%s8976_s4 + $0x1190] sm:$0xff] %v5635_v40  ;;  %v5188_v41 = vpop.f32.mrb[121].mxu1  ;;  %v5637_v17 = vpop.f32.mrb[121].mxu0 }
 0x5e1   : > { %7194 = vst [vmem:[%s8976_s4 + $0x1188] sm:$0xff] %v5188_v41  ;;  %7196 = vst [vmem:[%s8976_s4 + $0x1198] sm:$0xff] %v5637_v17 }
 0x5e3   : > { %v5192_v42 = vpop.f32.mrb[122].mxu1  ;;  %v5641_v43 = vpop.f32.mrb[122].mxu0 }
 0x5e4   : > { %7197 = vst [vmem:[%s8976_s4 + $0x11a0] sm:$0xff] %v5192_v42  ;;  %7199 = vst [vmem:[%s8976_s4 + $0x11b0] sm:$0xff] %v5641_v43  ;;  %v5194_v44 = vpop.f32.mrb[123].mxu1  ;;  %v5643_v45 = vpop.f32.mrb[123].mxu0 }
 0x5e5   : > { %7198 = vst [vmem:[%s8976_s4 + $0x11a8] sm:$0xff] %v5194_v44  ;;  %7200 = vst [vmem:[%s8976_s4 + $0x11b8] sm:$0xff] %v5643_v45 }
 0x5e7   : > { %v5198_v46 = vpop.f32.mrb[124].mxu1  ;;  %v5647_v47 = vpop.f32.mrb[124].mxu0 }
 0x5e8   : > { %7201 = vst [vmem:[%s8976_s4 + $0x11c0] sm:$0xff] %v5198_v46  ;;  %7203 = vst [vmem:[%s8976_s4 + $0x11d0] sm:$0xff] %v5647_v47  ;;  %v5200_v48 = vpop.f32.mrb[125].mxu1  ;;  %v5649_v49 = vpop.f32.mrb[125].mxu0 }
 0x5e9   : > { %7202 = vst [vmem:[%s8976_s4 + $0x11c8] sm:$0xff] %v5200_v48  ;;  %7204 = vst [vmem:[%s8976_s4 + $0x11d8] sm:$0xff] %v5649_v49 }
 0x5eb   : > { %v5204_v50 = vpop.f32.mrb[126].mxu1  ;;  %v5653_v51 = vpop.f32.mrb[126].mxu0 }
 0x5ec   : > { %7205 = vst [vmem:[%s8976_s4 + $0x11e0] sm:$0xff] %v5204_v50  ;;  %7207 = vst [vmem:[%s8976_s4 + $0x11f0] sm:$0xff] %v5653_v51  ;;  %v5206_v52 = vpop.f32.mrb[127].mxu1  ;;  %v5655_v53 = vpop.f32.mrb[127].mxu0 }
 0x5ed   : > { %7206 = vst [vmem:[%s8976_s4 + $0x11e8] sm:$0xff] %v5206_v52  ;;  %7208 = vst [vmem:[%s8976_s4 + $0x11f8] sm:$0xff] %v5655_v53 }
 0x5ef   : > { %v5210_v54 = vpop.f32.mrb[128].mxu1  ;;  %v5659_v55 = vpop.f32.mrb[128].mxu0 }
 0x5f0   : > { %7209 = vst [vmem:[%s8976_s4 + $0x1200] sm:$0xff] %v5210_v54  ;;  %7211 = vst [vmem:[%s8976_s4 + $0x1210] sm:$0xff] %v5659_v55  ;;  %v5212_v56 = vpop.f32.mrb[129].mxu1  ;;  %v5661_v57 = vpop.f32.mrb[129].mxu0 }
 0x5f1   : > { %7210 = vst [vmem:[%s8976_s4 + $0x1208] sm:$0xff] %v5212_v56  ;;  %7212 = vst [vmem:[%s8976_s4 + $0x1218] sm:$0xff] %v5661_v57 }
 0x5f3   : > { %v5216_v58 = vpop.f32.mrb[130].mxu1  ;;  %v5665_v59 = vpop.f32.mrb[130].mxu0 }
 0x5f4   : > { %7213 = vst [vmem:[%s8976_s4 + $0x1220] sm:$0xff] %v5216_v58  ;;  %7215 = vst [vmem:[%s8976_s4 + $0x1230] sm:$0xff] %v5665_v59  ;;  %v5218_v60 = vpop.f32.mrb[131].mxu1  ;;  %v5667_v61 = vpop.f32.mrb[131].mxu0 }
 0x5f5   : > { %7214 = vst [vmem:[%s8976_s4 + $0x1228] sm:$0xff] %v5218_v60  ;;  %7216 = vst [vmem:[%s8976_s4 + $0x1238] sm:$0xff] %v5667_v61 }
 0x5f7   : > { %v5222_v62 = vpop.f32.mrb[132].mxu1  ;;  %v5671_v63 = vpop.f32.mrb[132].mxu0 }
 0x5f8   : > { %7217 = vst [vmem:[%s8976_s4 + $0x1240] sm:$0xff] %v5222_v62  ;;  %7219 = vst [vmem:[%s8976_s4 + $0x1250] sm:$0xff] %v5671_v63  ;;  %v5224_v0 = vpop.f32.mrb[133].mxu1  ;;  %v5673_v1 = vpop.f32.mrb[133].mxu0 }
 0x5f9   : > { %7218 = vst [vmem:[%s8976_s4 + $0x1248] sm:$0xff] %v5224_v0  ;;  %7220 = vst [vmem:[%s8976_s4 + $0x1258] sm:$0xff] %v5673_v1 }
 0x5fb   : > { %v5228_v2 = vpop.f32.mrb[134].mxu1  ;;  %v5677_v3 = vpop.f32.mrb[134].mxu0 }
 0x5fc   : > { %7221 = vst [vmem:[%s8976_s4 + $0x1260] sm:$0xff] %v5228_v2  ;;  %7223 = vst [vmem:[%s8976_s4 + $0x1270] sm:$0xff] %v5677_v3  ;;  %v5230_v4 = vpop.f32.mrb[135].mxu1  ;;  %v5679_v5 = vpop.f32.mrb[135].mxu0 }
 0x5fd   : > { %7222 = vst [vmem:[%s8976_s4 + $0x1268] sm:$0xff] %v5230_v4  ;;  %7224 = vst [vmem:[%s8976_s4 + $0x1278] sm:$0xff] %v5679_v5 }
 0x5ff   : > { %v5234_v6 = vpop.f32.mrb[136].mxu1  ;;  %v5683_v7 = vpop.f32.mrb[136].mxu0 }
 0x600   : > { %7225 = vst [vmem:[%s8976_s4 + $0x1280] sm:$0xff] %v5234_v6  ;;  %7227 = vst [vmem:[%s8976_s4 + $0x1290] sm:$0xff] %v5683_v7  ;;  %v5236_v8 = vpop.f32.mrb[137].mxu1  ;;  %v5685_v9 = vpop.f32.mrb[137].mxu0 }
 0x601   : > { %7226 = vst [vmem:[%s8976_s4 + $0x1288] sm:$0xff] %v5236_v8  ;;  %7228 = vst [vmem:[%s8976_s4 + $0x1298] sm:$0xff] %v5685_v9 }
 0x603   : > { %v5240_v10 = vpop.f32.mrb[138].mxu1  ;;  %v5689_v11 = vpop.f32.mrb[138].mxu0 }
 0x604   : > { %7229 = vst [vmem:[%s8976_s4 + $0x12a0] sm:$0xff] %v5240_v10  ;;  %7231 = vst [vmem:[%s8976_s4 + $0x12b0] sm:$0xff] %v5689_v11  ;;  %v5242_v12 = vpop.f32.mrb[139].mxu1  ;;  %v5691_v13 = vpop.f32.mrb[139].mxu0 }
 0x605   : > { %7230 = vst [vmem:[%s8976_s4 + $0x12a8] sm:$0xff] %v5242_v12  ;;  %7232 = vst [vmem:[%s8976_s4 + $0x12b8] sm:$0xff] %v5691_v13 }
 0x607   : > { %v5246_v14 = vpop.f32.mrb[140].mxu1  ;;  %v5695_v16 = vpop.f32.mrb[140].mxu0 }
 0x608   : > { %7233 = vst [vmem:[%s8976_s4 + $0x12c0] sm:$0xff] %v5246_v14  ;;  %7235 = vst [vmem:[%s8976_s4 + $0x12d0] sm:$0xff] %v5695_v16  ;;  %v5248_v18 = vpop.f32.mrb[141].mxu1  ;;  %v5697_v19 = vpop.f32.mrb[141].mxu0 }
 0x609   : > { %7234 = vst [vmem:[%s8976_s4 + $0x12c8] sm:$0xff] %v5248_v18  ;;  %7236 = vst [vmem:[%s8976_s4 + $0x12d8] sm:$0xff] %v5697_v19 }
 0x60b   : > { %v5252_v21 = vpop.f32.mrb[142].mxu1  ;;  %v5701_v22 = vpop.f32.mrb[142].mxu0 }
 0x60c   : > { %7237 = vst [vmem:[%s8976_s4 + $0x12e0] sm:$0xff] %v5252_v21  ;;  %7239 = vst [vmem:[%s8976_s4 + $0x12f0] sm:$0xff] %v5701_v22  ;;  %v5254_v23 = vpop.f32.mrb[143].mxu1  ;;  %v5703_v24 = vpop.f32.mrb[143].mxu0 }
 0x60d   : > { %7238 = vst [vmem:[%s8976_s4 + $0x12e8] sm:$0xff] %v5254_v23  ;;  %7240 = vst [vmem:[%s8976_s4 + $0x12f8] sm:$0xff] %v5703_v24 }
 0x60f   : > { %v5258_v25 = vpop.f32.mrb[144].mxu1  ;;  %v5707_v26 = vpop.f32.mrb[144].mxu0 }
 0x610   : > { %7241 = vst [vmem:[%s8976_s4 + $0x1300] sm:$0xff] %v5258_v25  ;;  %7243 = vst [vmem:[%s8976_s4 + $0x1310] sm:$0xff] %v5707_v26  ;;  %v5260_v27 = vpop.f32.mrb[145].mxu1  ;;  %v5709_v20 = vpop.f32.mrb[145].mxu0 }
 0x611   : > { %7242 = vst [vmem:[%s8976_s4 + $0x1308] sm:$0xff] %v5260_v27  ;;  %7244 = vst [vmem:[%s8976_s4 + $0x1318] sm:$0xff] %v5709_v20 }
 0x613   : > { %v5264_v28 = vpop.f32.mrb[146].mxu1  ;;  %v5713_v29 = vpop.f32.mrb[146].mxu0 }
 0x614   : > { %7245 = vst [vmem:[%s8976_s4 + $0x1320] sm:$0xff] %v5264_v28  ;;  %7247 = vst [vmem:[%s8976_s4 + $0x1330] sm:$0xff] %v5713_v29  ;;  %v5266_v30 = vpop.f32.mrb[147].mxu1  ;;  %v5715_v31 = vpop.f32.mrb[147].mxu0 }
 0x615   : > { %7246 = vst [vmem:[%s8976_s4 + $0x1328] sm:$0xff] %v5266_v30  ;;  %7248 = vst [vmem:[%s8976_s4 + $0x1338] sm:$0xff] %v5715_v31 }
 0x617   : > { %v5270_v32 = vpop.f32.mrb[148].mxu1  ;;  %v5719_v33 = vpop.f32.mrb[148].mxu0 }
 0x618   : > { %7249 = vst [vmem:[%s8976_s4 + $0x1340] sm:$0xff] %v5270_v32  ;;  %7251 = vst [vmem:[%s8976_s4 + $0x1350] sm:$0xff] %v5719_v33  ;;  %v5272_v34 = vpop.f32.mrb[149].mxu1  ;;  %v5721_v35 = vpop.f32.mrb[149].mxu0 }
 0x619   : > { %7250 = vst [vmem:[%s8976_s4 + $0x1348] sm:$0xff] %v5272_v34  ;;  %7252 = vst [vmem:[%s8976_s4 + $0x1358] sm:$0xff] %v5721_v35 }
 0x61b   : > { %v5276_v15 = vpop.f32.mrb[150].mxu1  ;;  %v5725_v36 = vpop.f32.mrb[150].mxu0 }
 0x61c   : > { %7253 = vst [vmem:[%s8976_s4 + $0x1360] sm:$0xff] %v5276_v15  ;;  %7255 = vst [vmem:[%s8976_s4 + $0x1370] sm:$0xff] %v5725_v36  ;;  %v5278_v37 = vpop.f32.mrb[151].mxu1  ;;  %v5727_v38 = vpop.f32.mrb[151].mxu0 }
 0x61d   : > { %7254 = vst [vmem:[%s8976_s4 + $0x1368] sm:$0xff] %v5278_v37  ;;  %7256 = vst [vmem:[%s8976_s4 + $0x1378] sm:$0xff] %v5727_v38 }
 0x61f   : > { %v5282_v39 = vpop.f32.mrb[152].mxu1  ;;  %v5731_v40 = vpop.f32.mrb[152].mxu0 }
 0x620   : > { %7257 = vst [vmem:[%s8976_s4 + $0x1380] sm:$0xff] %v5282_v39  ;;  %7259 = vst [vmem:[%s8976_s4 + $0x1390] sm:$0xff] %v5731_v40  ;;  %v5284_v41 = vpop.f32.mrb[153].mxu1  ;;  %v5733_v17 = vpop.f32.mrb[153].mxu0 }
 0x621   : > { %7258 = vst [vmem:[%s8976_s4 + $0x1388] sm:$0xff] %v5284_v41  ;;  %7260 = vst [vmem:[%s8976_s4 + $0x1398] sm:$0xff] %v5733_v17 }
 0x623   : > { %v5288_v42 = vpop.f32.mrb[154].mxu1  ;;  %v5737_v43 = vpop.f32.mrb[154].mxu0 }
 0x624   : > { %7261 = vst [vmem:[%s8976_s4 + $0x13a0] sm:$0xff] %v5288_v42  ;;  %7263 = vst [vmem:[%s8976_s4 + $0x13b0] sm:$0xff] %v5737_v43  ;;  %v5290_v44 = vpop.f32.mrb[155].mxu1  ;;  %v5739_v45 = vpop.f32.mrb[155].mxu0 }
 0x625   : > { %7262 = vst [vmem:[%s8976_s4 + $0x13a8] sm:$0xff] %v5290_v44  ;;  %7264 = vst [vmem:[%s8976_s4 + $0x13b8] sm:$0xff] %v5739_v45 }
 0x627   : > { %v5294_v46 = vpop.f32.mrb[156].mxu1  ;;  %v5743_v47 = vpop.f32.mrb[156].mxu0 }
 0x628   : > { %7265 = vst [vmem:[%s8976_s4 + $0x13c0] sm:$0xff] %v5294_v46  ;;  %7267 = vst [vmem:[%s8976_s4 + $0x13d0] sm:$0xff] %v5743_v47  ;;  %v5296_v48 = vpop.f32.mrb[157].mxu1  ;;  %v5745_v49 = vpop.f32.mrb[157].mxu0 }
 0x629   : > { %7266 = vst [vmem:[%s8976_s4 + $0x13c8] sm:$0xff] %v5296_v48  ;;  %7268 = vst [vmem:[%s8976_s4 + $0x13d8] sm:$0xff] %v5745_v49 }
 0x62b   : > { %v5300_v50 = vpop.f32.mrb[158].mxu1  ;;  %v5749_v51 = vpop.f32.mrb[158].mxu0 }
 0x62c   : > { %7269 = vst [vmem:[%s8976_s4 + $0x13e0] sm:$0xff] %v5300_v50  ;;  %7271 = vst [vmem:[%s8976_s4 + $0x13f0] sm:$0xff] %v5749_v51  ;;  %v5302_v52 = vpop.f32.mrb[159].mxu1  ;;  %v5751_v53 = vpop.f32.mrb[159].mxu0 }
 0x62d   : > { %7270 = vst [vmem:[%s8976_s4 + $0x13e8] sm:$0xff] %v5302_v52  ;;  %7272 = vst [vmem:[%s8976_s4 + $0x13f8] sm:$0xff] %v5751_v53 }
 0x62f   : > { %v5306_v54 = vpop.f32.mrb[160].mxu1  ;;  %v5755_v55 = vpop.f32.mrb[160].mxu0 }
 0x630   : > { %7273 = vst [vmem:[%s8976_s4 + $0x1400] sm:$0xff] %v5306_v54  ;;  %7275 = vst [vmem:[%s8976_s4 + $0x1410] sm:$0xff] %v5755_v55  ;;  %v5308_v56 = vpop.f32.mrb[161].mxu1  ;;  %v5757_v57 = vpop.f32.mrb[161].mxu0 }
 0x631   : > { %7274 = vst [vmem:[%s8976_s4 + $0x1408] sm:$0xff] %v5308_v56  ;;  %7276 = vst [vmem:[%s8976_s4 + $0x1418] sm:$0xff] %v5757_v57 }
 0x633   : > { %v5312_v58 = vpop.f32.mrb[162].mxu1  ;;  %v5761_v59 = vpop.f32.mrb[162].mxu0 }
 0x634   : > { %7277 = vst [vmem:[%s8976_s4 + $0x1420] sm:$0xff] %v5312_v58  ;;  %7279 = vst [vmem:[%s8976_s4 + $0x1430] sm:$0xff] %v5761_v59  ;;  %v5314_v60 = vpop.f32.mrb[163].mxu1  ;;  %v5763_v61 = vpop.f32.mrb[163].mxu0 }
 0x635   : > { %7278 = vst [vmem:[%s8976_s4 + $0x1428] sm:$0xff] %v5314_v60  ;;  %7280 = vst [vmem:[%s8976_s4 + $0x1438] sm:$0xff] %v5763_v61 }
 0x637   : > { %v5318_v62 = vpop.f32.mrb[164].mxu1  ;;  %v5767_v63 = vpop.f32.mrb[164].mxu0 }
 0x638   : > { %7281 = vst [vmem:[%s8976_s4 + $0x1440] sm:$0xff] %v5318_v62  ;;  %7283 = vst [vmem:[%s8976_s4 + $0x1450] sm:$0xff] %v5767_v63  ;;  %v5320_v0 = vpop.f32.mrb[165].mxu1  ;;  %v5769_v1 = vpop.f32.mrb[165].mxu0 }
 0x639   : > { %7282 = vst [vmem:[%s8976_s4 + $0x1448] sm:$0xff] %v5320_v0  ;;  %7284 = vst [vmem:[%s8976_s4 + $0x1458] sm:$0xff] %v5769_v1 }
 0x63b   : > { %v5324_v2 = vpop.f32.mrb[166].mxu1  ;;  %v5773_v3 = vpop.f32.mrb[166].mxu0 }
 0x63c   : > { %7285 = vst [vmem:[%s8976_s4 + $0x1460] sm:$0xff] %v5324_v2  ;;  %7287 = vst [vmem:[%s8976_s4 + $0x1470] sm:$0xff] %v5773_v3  ;;  %v5326_v4 = vpop.f32.mrb[167].mxu1  ;;  %v5775_v5 = vpop.f32.mrb[167].mxu0 }
 0x63d   : > { %7286 = vst [vmem:[%s8976_s4 + $0x1468] sm:$0xff] %v5326_v4  ;;  %7288 = vst [vmem:[%s8976_s4 + $0x1478] sm:$0xff] %v5775_v5 }
 0x63f   : > { %v5330_v6 = vpop.f32.mrb[168].mxu1  ;;  %v5779_v7 = vpop.f32.mrb[168].mxu0 }
 0x640   : > { %7289 = vst [vmem:[%s8976_s4 + $0x1480] sm:$0xff] %v5330_v6  ;;  %7291 = vst [vmem:[%s8976_s4 + $0x1490] sm:$0xff] %v5779_v7  ;;  %v5332_v8 = vpop.f32.mrb[169].mxu1  ;;  %v5781_v9 = vpop.f32.mrb[169].mxu0 }
 0x641   : > { %7290 = vst [vmem:[%s8976_s4 + $0x1488] sm:$0xff] %v5332_v8  ;;  %7292 = vst [vmem:[%s8976_s4 + $0x1498] sm:$0xff] %v5781_v9 }
 0x643   : > { %v5336_v10 = vpop.f32.mrb[170].mxu1  ;;  %v5785_v11 = vpop.f32.mrb[170].mxu0 }
 0x644   : > { %7293 = vst [vmem:[%s8976_s4 + $0x14a0] sm:$0xff] %v5336_v10  ;;  %7295 = vst [vmem:[%s8976_s4 + $0x14b0] sm:$0xff] %v5785_v11  ;;  %v5338_v12 = vpop.f32.mrb[171].mxu1  ;;  %v5787_v13 = vpop.f32.mrb[171].mxu0 }
 0x645   : > { %7294 = vst [vmem:[%s8976_s4 + $0x14a8] sm:$0xff] %v5338_v12  ;;  %7296 = vst [vmem:[%s8976_s4 + $0x14b8] sm:$0xff] %v5787_v13 }
 0x647   : > { %v5342_v14 = vpop.f32.mrb[172].mxu1  ;;  %v5791_v16 = vpop.f32.mrb[172].mxu0 }
 0x648   : > { %7297 = vst [vmem:[%s8976_s4 + $0x14c0] sm:$0xff] %v5342_v14  ;;  %7299 = vst [vmem:[%s8976_s4 + $0x14d0] sm:$0xff] %v5791_v16  ;;  %v5344_v18 = vpop.f32.mrb[173].mxu1  ;;  %v5793_v19 = vpop.f32.mrb[173].mxu0 }
 0x649   : > { %7298 = vst [vmem:[%s8976_s4 + $0x14c8] sm:$0xff] %v5344_v18  ;;  %7300 = vst [vmem:[%s8976_s4 + $0x14d8] sm:$0xff] %v5793_v19 }
 0x64b   : > { %v5348_v21 = vpop.f32.mrb[174].mxu1  ;;  %v5797_v22 = vpop.f32.mrb[174].mxu0 }
 0x64c   : > { %7301 = vst [vmem:[%s8976_s4 + $0x14e0] sm:$0xff] %v5348_v21  ;;  %7303 = vst [vmem:[%s8976_s4 + $0x14f0] sm:$0xff] %v5797_v22  ;;  %v5350_v23 = vpop.f32.mrb[175].mxu1  ;;  %v5799_v24 = vpop.f32.mrb[175].mxu0 }
 0x64d   : > { %7302 = vst [vmem:[%s8976_s4 + $0x14e8] sm:$0xff] %v5350_v23  ;;  %7304 = vst [vmem:[%s8976_s4 + $0x14f8] sm:$0xff] %v5799_v24 }
 0x64f   : > { %v5354_v25 = vpop.f32.mrb[176].mxu1  ;;  %v5803_v26 = vpop.f32.mrb[176].mxu0 }
 0x650   : > { %7305 = vst [vmem:[%s8976_s4 + $0x1500] sm:$0xff] %v5354_v25  ;;  %7307 = vst [vmem:[%s8976_s4 + $0x1510] sm:$0xff] %v5803_v26  ;;  %v5356_v27 = vpop.f32.mrb[177].mxu1  ;;  %v5805_v20 = vpop.f32.mrb[177].mxu0 }
 0x651   : > { %7306 = vst [vmem:[%s8976_s4 + $0x1508] sm:$0xff] %v5356_v27  ;;  %7308 = vst [vmem:[%s8976_s4 + $0x1518] sm:$0xff] %v5805_v20 }
 0x653   : > { %v5360_v28 = vpop.f32.mrb[178].mxu1  ;;  %v5809_v29 = vpop.f32.mrb[178].mxu0 }
 0x654   : > { %7309 = vst [vmem:[%s8976_s4 + $0x1520] sm:$0xff] %v5360_v28  ;;  %7311 = vst [vmem:[%s8976_s4 + $0x1530] sm:$0xff] %v5809_v29  ;;  %v5362_v30 = vpop.f32.mrb[179].mxu1  ;;  %v5811_v31 = vpop.f32.mrb[179].mxu0 }
 0x655   : > { %7310 = vst [vmem:[%s8976_s4 + $0x1528] sm:$0xff] %v5362_v30  ;;  %7312 = vst [vmem:[%s8976_s4 + $0x1538] sm:$0xff] %v5811_v31 }
 0x657   : > { %v5366_v32 = vpop.f32.mrb[180].mxu1  ;;  %v5815_v33 = vpop.f32.mrb[180].mxu0 }
 0x658   : > { %7313 = vst [vmem:[%s8976_s4 + $0x1540] sm:$0xff] %v5366_v32  ;;  %7315 = vst [vmem:[%s8976_s4 + $0x1550] sm:$0xff] %v5815_v33  ;;  %v5368_v34 = vpop.f32.mrb[181].mxu1  ;;  %v5817_v35 = vpop.f32.mrb[181].mxu0 }
 0x659   : > { %7314 = vst [vmem:[%s8976_s4 + $0x1548] sm:$0xff] %v5368_v34  ;;  %7316 = vst [vmem:[%s8976_s4 + $0x1558] sm:$0xff] %v5817_v35 }
 0x65b   : > { %v5372_v15 = vpop.f32.mrb[182].mxu1  ;;  %v5821_v36 = vpop.f32.mrb[182].mxu0 }
 0x65c   : > { %7317 = vst [vmem:[%s8976_s4 + $0x1560] sm:$0xff] %v5372_v15  ;;  %7319 = vst [vmem:[%s8976_s4 + $0x1570] sm:$0xff] %v5821_v36  ;;  %v5374_v37 = vpop.f32.mrb[183].mxu1  ;;  %v5823_v38 = vpop.f32.mrb[183].mxu0 }
 0x65d   : > { %7318 = vst [vmem:[%s8976_s4 + $0x1568] sm:$0xff] %v5374_v37  ;;  %7320 = vst [vmem:[%s8976_s4 + $0x1578] sm:$0xff] %v5823_v38 }
 0x65f   : > { %v5378_v39 = vpop.f32.mrb[184].mxu1  ;;  %v5827_v40 = vpop.f32.mrb[184].mxu0 }
 0x660   : > { %7321 = vst [vmem:[%s8976_s4 + $0x1580] sm:$0xff] %v5378_v39  ;;  %7323 = vst [vmem:[%s8976_s4 + $0x1590] sm:$0xff] %v5827_v40  ;;  %v5380_v41 = vpop.f32.mrb[185].mxu1  ;;  %v5829_v17 = vpop.f32.mrb[185].mxu0 }
 0x661   : > { %7322 = vst [vmem:[%s8976_s4 + $0x1588] sm:$0xff] %v5380_v41  ;;  %7324 = vst [vmem:[%s8976_s4 + $0x1598] sm:$0xff] %v5829_v17 }
 0x663   : > { %v5384_v42 = vpop.f32.mrb[186].mxu1  ;;  %v5833_v43 = vpop.f32.mrb[186].mxu0 }
 0x664   : > { %7325 = vst [vmem:[%s8976_s4 + $0x15a0] sm:$0xff] %v5384_v42  ;;  %7327 = vst [vmem:[%s8976_s4 + $0x15b0] sm:$0xff] %v5833_v43  ;;  %v5386_v44 = vpop.f32.mrb[187].mxu1  ;;  %v5835_v45 = vpop.f32.mrb[187].mxu0 }
 0x665   : > { %7326 = vst [vmem:[%s8976_s4 + $0x15a8] sm:$0xff] %v5386_v44  ;;  %7328 = vst [vmem:[%s8976_s4 + $0x15b8] sm:$0xff] %v5835_v45 }
 0x667   : > { %v5390_v46 = vpop.f32.mrb[188].mxu1  ;;  %v5839_v47 = vpop.f32.mrb[188].mxu0 }
 0x668   : > { %7329 = vst [vmem:[%s8976_s4 + $0x15c0] sm:$0xff] %v5390_v46  ;;  %7331 = vst [vmem:[%s8976_s4 + $0x15d0] sm:$0xff] %v5839_v47  ;;  %v5392_v48 = vpop.f32.mrb[189].mxu1  ;;  %v5841_v49 = vpop.f32.mrb[189].mxu0 }
 0x669   : > { %7330 = vst [vmem:[%s8976_s4 + $0x15c8] sm:$0xff] %v5392_v48  ;;  %7332 = vst [vmem:[%s8976_s4 + $0x15d8] sm:$0xff] %v5841_v49 }
 0x66b   : > { %v5396_v50 = vpop.f32.mrb[190].mxu1  ;;  %v5845_v51 = vpop.f32.mrb[190].mxu0 }
 0x66c   : > { %7333 = vst [vmem:[%s8976_s4 + $0x15e0] sm:$0xff] %v5396_v50  ;;  %7335 = vst [vmem:[%s8976_s4 + $0x15f0] sm:$0xff] %v5845_v51  ;;  %v5398_v52 = vpop.f32.mrb[191].mxu1  ;;  %v5847_v53 = vpop.f32.mrb[191].mxu0 }
 0x66d   : > { %7334 = vst [vmem:[%s8976_s4 + $0x15e8] sm:$0xff] %v5398_v52  ;;  %7336 = vst [vmem:[%s8976_s4 + $0x15f8] sm:$0xff] %v5847_v53 }
 0x66f   : > { %v5402_v54 = vpop.f32.mrb[192].mxu1  ;;  %v5851_v55 = vpop.f32.mrb[192].mxu0 }
 0x670   : > { %7337 = vst [vmem:[%s8976_s4 + $0x1600] sm:$0xff] %v5402_v54  ;;  %7339 = vst [vmem:[%s8976_s4 + $0x1610] sm:$0xff] %v5851_v55  ;;  %v5404_v56 = vpop.f32.mrb[193].mxu1  ;;  %v5853_v57 = vpop.f32.mrb[193].mxu0 }
 0x671   : > { %7338 = vst [vmem:[%s8976_s4 + $0x1608] sm:$0xff] %v5404_v56  ;;  %7340 = vst [vmem:[%s8976_s4 + $0x1618] sm:$0xff] %v5853_v57 }
 0x673   : > { %v5408_v58 = vpop.f32.mrb[194].mxu1  ;;  %v5857_v59 = vpop.f32.mrb[194].mxu0 }
 0x674   : > { %7341 = vst [vmem:[%s8976_s4 + $0x1620] sm:$0xff] %v5408_v58  ;;  %7343 = vst [vmem:[%s8976_s4 + $0x1630] sm:$0xff] %v5857_v59  ;;  %v5410_v60 = vpop.f32.mrb[195].mxu1  ;;  %v5859_v61 = vpop.f32.mrb[195].mxu0 }
 0x675   : > { %7342 = vst [vmem:[%s8976_s4 + $0x1628] sm:$0xff] %v5410_v60  ;;  %7344 = vst [vmem:[%s8976_s4 + $0x1638] sm:$0xff] %v5859_v61 }
 0x677   : > { %v5414_v62 = vpop.f32.mrb[196].mxu1  ;;  %v5863_v63 = vpop.f32.mrb[196].mxu0 }
 0x678   : > { %7345 = vst [vmem:[%s8976_s4 + $0x1640] sm:$0xff] %v5414_v62  ;;  %7347 = vst [vmem:[%s8976_s4 + $0x1650] sm:$0xff] %v5863_v63  ;;  %v5416_v0 = vpop.f32.mrb[197].mxu1  ;;  %v5865_v1 = vpop.f32.mrb[197].mxu0 }
 0x679   : > { %7346 = vst [vmem:[%s8976_s4 + $0x1648] sm:$0xff] %v5416_v0  ;;  %7348 = vst [vmem:[%s8976_s4 + $0x1658] sm:$0xff] %v5865_v1 }
 0x67b   : > { %v5420_v2 = vpop.f32.mrb[198].mxu1  ;;  %v5869_v3 = vpop.f32.mrb[198].mxu0 }
 0x67c   : > { %7349 = vst [vmem:[%s8976_s4 + $0x1660] sm:$0xff] %v5420_v2  ;;  %7351 = vst [vmem:[%s8976_s4 + $0x1670] sm:$0xff] %v5869_v3  ;;  %v5422_v4 = vpop.f32.mrb[199].mxu1  ;;  %v5871_v5 = vpop.f32.mrb[199].mxu0 }
 0x67d   : > { %7350 = vst [vmem:[%s8976_s4 + $0x1668] sm:$0xff] %v5422_v4  ;;  %7352 = vst [vmem:[%s8976_s4 + $0x1678] sm:$0xff] %v5871_v5 }
 0x67f   : > { %v5426_v6 = vpop.f32.mrb[200].mxu1  ;;  %v5875_v7 = vpop.f32.mrb[200].mxu0 }
 0x680   : > { %7353 = vst [vmem:[%s8976_s4 + $0x1680] sm:$0xff] %v5426_v6  ;;  %7355 = vst [vmem:[%s8976_s4 + $0x1690] sm:$0xff] %v5875_v7  ;;  %v5428_v8 = vpop.f32.mrb[201].mxu1  ;;  %v5877_v9 = vpop.f32.mrb[201].mxu0 }
 0x681   : > { %7354 = vst [vmem:[%s8976_s4 + $0x1688] sm:$0xff] %v5428_v8  ;;  %7356 = vst [vmem:[%s8976_s4 + $0x1698] sm:$0xff] %v5877_v9 }
 0x683   : > { %v5432_v10 = vpop.f32.mrb[202].mxu1  ;;  %v5881_v11 = vpop.f32.mrb[202].mxu0 }
 0x684   : > { %7357 = vst [vmem:[%s8976_s4 + $0x16a0] sm:$0xff] %v5432_v10  ;;  %7359 = vst [vmem:[%s8976_s4 + $0x16b0] sm:$0xff] %v5881_v11  ;;  %v5434_v12 = vpop.f32.mrb[203].mxu1  ;;  %v5883_v13 = vpop.f32.mrb[203].mxu0 }
 0x685   : > { %7358 = vst [vmem:[%s8976_s4 + $0x16a8] sm:$0xff] %v5434_v12  ;;  %7360 = vst [vmem:[%s8976_s4 + $0x16b8] sm:$0xff] %v5883_v13 }
 0x687   : > { %v5438_v14 = vpop.f32.mrb[204].mxu1  ;;  %v5887_v16 = vpop.f32.mrb[204].mxu0 }
 0x688   : > { %7361 = vst [vmem:[%s8976_s4 + $0x16c0] sm:$0xff] %v5438_v14  ;;  %7363 = vst [vmem:[%s8976_s4 + $0x16d0] sm:$0xff] %v5887_v16  ;;  %v5440_v18 = vpop.f32.mrb[205].mxu1  ;;  %v5889_v19 = vpop.f32.mrb[205].mxu0 }
 0x689   : > { %7362 = vst [vmem:[%s8976_s4 + $0x16c8] sm:$0xff] %v5440_v18  ;;  %7364 = vst [vmem:[%s8976_s4 + $0x16d8] sm:$0xff] %v5889_v19 }
 0x68b   : > { %v5444_v21 = vpop.f32.mrb[206].mxu1  ;;  %v5893_v22 = vpop.f32.mrb[206].mxu0 }
 0x68c   : > { %7365 = vst [vmem:[%s8976_s4 + $0x16e0] sm:$0xff] %v5444_v21  ;;  %7367 = vst [vmem:[%s8976_s4 + $0x16f0] sm:$0xff] %v5893_v22  ;;  %v5446_v23 = vpop.f32.mrb[207].mxu1  ;;  %v5895_v24 = vpop.f32.mrb[207].mxu0 }
 0x68d   : > { %7366 = vst [vmem:[%s8976_s4 + $0x16e8] sm:$0xff] %v5446_v23  ;;  %7368 = vst [vmem:[%s8976_s4 + $0x16f8] sm:$0xff] %v5895_v24 }
 0x68f   : > { %v5450_v25 = vpop.f32.mrb[208].mxu1  ;;  %v5899_v26 = vpop.f32.mrb[208].mxu0 }
 0x690   : > { %7369 = vst [vmem:[%s8976_s4 + $0x1700] sm:$0xff] %v5450_v25  ;;  %7371 = vst [vmem:[%s8976_s4 + $0x1710] sm:$0xff] %v5899_v26  ;;  %v5452_v27 = vpop.f32.mrb[209].mxu1  ;;  %v5901_v20 = vpop.f32.mrb[209].mxu0 }
 0x691   : > { %7370 = vst [vmem:[%s8976_s4 + $0x1708] sm:$0xff] %v5452_v27  ;;  %7372 = vst [vmem:[%s8976_s4 + $0x1718] sm:$0xff] %v5901_v20 }
 0x693   : > { %v5456_v28 = vpop.f32.mrb[210].mxu1  ;;  %v5905_v29 = vpop.f32.mrb[210].mxu0 }
 0x694   : > { %7373 = vst [vmem:[%s8976_s4 + $0x1720] sm:$0xff] %v5456_v28  ;;  %7375 = vst [vmem:[%s8976_s4 + $0x1730] sm:$0xff] %v5905_v29  ;;  %v5458_v30 = vpop.f32.mrb[211].mxu1  ;;  %v5907_v31 = vpop.f32.mrb[211].mxu0 }
 0x695   : > { %7374 = vst [vmem:[%s8976_s4 + $0x1728] sm:$0xff] %v5458_v30  ;;  %7376 = vst [vmem:[%s8976_s4 + $0x1738] sm:$0xff] %v5907_v31 }
 0x697   : > { %v5462_v32 = vpop.f32.mrb[212].mxu1  ;;  %v5911_v33 = vpop.f32.mrb[212].mxu0 }
 0x698   : > { %7377 = vst [vmem:[%s8976_s4 + $0x1740] sm:$0xff] %v5462_v32  ;;  %7379 = vst [vmem:[%s8976_s4 + $0x1750] sm:$0xff] %v5911_v33  ;;  %v5464_v34 = vpop.f32.mrb[213].mxu1  ;;  %v5913_v35 = vpop.f32.mrb[213].mxu0 }
 0x699   : > { %7378 = vst [vmem:[%s8976_s4 + $0x1748] sm:$0xff] %v5464_v34  ;;  %7380 = vst [vmem:[%s8976_s4 + $0x1758] sm:$0xff] %v5913_v35 }
 0x69b   : > { %v5468_v15 = vpop.f32.mrb[214].mxu1  ;;  %v5917_v36 = vpop.f32.mrb[214].mxu0 }
 0x69c   : > { %7381 = vst [vmem:[%s8976_s4 + $0x1760] sm:$0xff] %v5468_v15  ;;  %7383 = vst [vmem:[%s8976_s4 + $0x1770] sm:$0xff] %v5917_v36  ;;  %v5470_v37 = vpop.f32.mrb[215].mxu1  ;;  %v5919_v38 = vpop.f32.mrb[215].mxu0 }
 0x69d   : > { %7382 = vst [vmem:[%s8976_s4 + $0x1768] sm:$0xff] %v5470_v37  ;;  %7384 = vst [vmem:[%s8976_s4 + $0x1778] sm:$0xff] %v5919_v38 }
 0x69f   : > { %v5474_v39 = vpop.f32.mrb[216].mxu1  ;;  %v5923_v40 = vpop.f32.mrb[216].mxu0 }
 0x6a0   : > { %7385 = vst [vmem:[%s8976_s4 + $0x1780] sm:$0xff] %v5474_v39  ;;  %7387 = vst [vmem:[%s8976_s4 + $0x1790] sm:$0xff] %v5923_v40  ;;  %v5476_v41 = vpop.f32.mrb[217].mxu1  ;;  %v5925_v17 = vpop.f32.mrb[217].mxu0 }
 0x6a1   : > { %7386 = vst [vmem:[%s8976_s4 + $0x1788] sm:$0xff] %v5476_v41  ;;  %7388 = vst [vmem:[%s8976_s4 + $0x1798] sm:$0xff] %v5925_v17 }
 0x6a3   : > { %v5480_v42 = vpop.f32.mrb[218].mxu1  ;;  %v5929_v43 = vpop.f32.mrb[218].mxu0 }
 0x6a4   : > { %7389 = vst [vmem:[%s8976_s4 + $0x17a0] sm:$0xff] %v5480_v42  ;;  %7391 = vst [vmem:[%s8976_s4 + $0x17b0] sm:$0xff] %v5929_v43  ;;  %v5482_v44 = vpop.f32.mrb[219].mxu1  ;;  %v5931_v45 = vpop.f32.mrb[219].mxu0 }
 0x6a5   : > { %7390 = vst [vmem:[%s8976_s4 + $0x17a8] sm:$0xff] %v5482_v44  ;;  %7392 = vst [vmem:[%s8976_s4 + $0x17b8] sm:$0xff] %v5931_v45 }
 0x6a7   : > { %v5486_v46 = vpop.f32.mrb[220].mxu1  ;;  %v5935_v47 = vpop.f32.mrb[220].mxu0 }
 0x6a8   : > { %7393 = vst [vmem:[%s8976_s4 + $0x17c0] sm:$0xff] %v5486_v46  ;;  %7395 = vst [vmem:[%s8976_s4 + $0x17d0] sm:$0xff] %v5935_v47  ;;  %v5488_v48 = vpop.f32.mrb[221].mxu1  ;;  %v5937_v49 = vpop.f32.mrb[221].mxu0 }
 0x6a9   : > { %7394 = vst [vmem:[%s8976_s4 + $0x17c8] sm:$0xff] %v5488_v48  ;;  %7396 = vst [vmem:[%s8976_s4 + $0x17d8] sm:$0xff] %v5937_v49 }
 0x6ab   : > { %v5492_v50 = vpop.f32.mrb[222].mxu1  ;;  %v5941_v51 = vpop.f32.mrb[222].mxu0 }
 0x6ac   : > { %7397 = vst [vmem:[%s8976_s4 + $0x17e0] sm:$0xff] %v5492_v50  ;;  %7399 = vst [vmem:[%s8976_s4 + $0x17f0] sm:$0xff] %v5941_v51  ;;  %v5494_v52 = vpop.f32.mrb[223].mxu1  ;;  %v5943_v53 = vpop.f32.mrb[223].mxu0 }
 0x6ad   : > { %7398 = vst [vmem:[%s8976_s4 + $0x17e8] sm:$0xff] %v5494_v52  ;;  %7400 = vst [vmem:[%s8976_s4 + $0x17f8] sm:$0xff] %v5943_v53 }
 0x6ae   : > { %8085 = shalt.err (!%p8082_p7)
}
 0x6af   : > { %s8086_s4 = scalar_lea.hbm %s11193_s23, 98304  ;;  %s8090_s22 = scalar_lea.hbm %s11246_s3, 196608 }
 0x6b0   : > { %p8087_p9 = scmp.ne.s32.totalorder %s11193_s23, %s8086_s4  ;;  %p8091_p5 = scmp.lt.u32.totalorder %s11193_s23, %s11246_s3 }
 0x6b1   : > { %p8092_p11 = scmp.lt.u32.totalorder %s8090_s22, %s8086_s4  ;;  %p8094_p4 = scmp.lt.u32.totalorder %s8086_s4, %s11193_s23 }
 0x6b2   : > { %p8088_p2 = pnand %p8087_p9, %p8265_p12 }
 0x6b3   : > { %p8093_p1 = por %p8092_p11, %p8091_p5 }
 0x6b4   : > { %p8089_p0 = pneg %p8088_p2 }
 0x6b5   : > { %p8095_p6 = por %p8094_p4, %p8093_p1 }
 0x6b7   : > { %p8096_p8 = pnand %p8095_p6, %p8089_p0 }
 0x6b9   : > { %8099 = shalt.err (!%p8096_p8)
}
 0x6ba   : > { %s8152_s9 = smov 512   ;;  %s8153_s10 = smov 32  }
 0x6bb   : > { %7956 = dma.vmem_to_hbm [thread:$0]  (%p8265_p12), %s11195_s27, 98304, %s11193_s23, %s6204_s16, %s8152_s9, %s8152_s9, %s8153_s10  }
 0x6bc PF: > { %s6233_s11 = sand.u32 1, %s8130_s12   ;;  %p11261_p10 = scmp.ne.s32.totalorder %s11251_s19, 0 }
 0x6bd   : > { %p11262_p13 = scmp.ge.s32.totalorder %s8142_s15, 2  ;;  %s6234_s28 = scalar_lea.sflag [#allocation4], %s6233_s11 }
 0x6bf   : > { %p7967_p3 = pnand %p11262_p13, %p11261_p10 }
 0x6c1   : > { %8125 = dma.done.wait (!%p7967_p3), %s6234_s28, 98304  }
 0x6c2   : > { %8127 = vsyncadd (!%p7967_p3), %s6234_s28, 4294868992  ;;  %p17_p7 = scmp.ge.s32.totalorder %s8230_s24, 4   ;;  %s11263_s12 = smov %s8134_s13 }
 0x6c3   : > { %s11264_s13 = smov %s8138_s14  ;;  %s11265_s14 = smov %s8261_s17 }
 0x6c4   : > { %s11266_s15 = smov %s8230_s24  ;;  %19 = sbr.rel (!%p17_p7) target bundleno = 6 (0x6), region = 85 }
 0x6cb   :  { %6239 = vsyncpa [#allocation3], 1 }
 0x6cc   :  { %6241 = vsyncpa [#allocation3 + $0x1], 1 }
 0x6cd   :  { %6242 = vsyncpa [#allocation6], 1 }
 0x6ce   :  { %6243 = vsyncpa [#allocation4], 1 }
 0x6cf   :  { %6245 = vsyncpa [#allocation4 + $0x1], 1 }

</bundles_post_ra>
